<compile_context>
chip_gen: v7x
topology: tpu7x:2x2x1
jax: 0.10.0
libtpu: 0.0.40
codegen_flags: <defaults>
</compile_context>

<pallas_src>
import functools

import jax
import jax.numpy as jnp
from jax import lax
from jax.experimental import pallas as pl
from jax.experimental.pallas import tpu as pltpu

COMPUTE_DTYPE = jnp.float32  # set to jnp.bfloat16 on v6e/v7x for ~2x less HBM traffic


def _compiler_params():
    # Grid is over batch; "parallel" lets megacore (v7x: 2 TCs) shard images.
    return pltpu.CompilerParams(dimension_semantics=("parallel",))


# ---------------------------------------------------------------------------
# Kernels (all convolution work happens in VMEM; no HBM im2col)
# ---------------------------------------------------------------------------
def _conv3x3_kernel(xpad_ref, w_ref, b_ref, o_ref, *, H, W, relu_in, relu_out):
    """o = [relu](conv3x3([relu](x)) + b); x arrives zero-padded by 1."""
    x = xpad_ref[0]                                   # (H+2, W+2, Cin)
    if relu_in:
        x = jnp.maximum(x, 0.0)
    cout = w_ref.shape[-1]
    acc = jnp.zeros((H * W, cout), jnp.float32) + b_ref[...]
    for dy in range(3):                               # in-VMEM "im2col": shifted slices
        for dx in range(3):
            xs = x[dy:dy + H, dx:dx + W, :].reshape(H * W, -1)
            acc = acc + jnp.dot(xs, w_ref[dy * 3 + dx],
                                preferred_element_type=jnp.float32)
    if relu_out:
        acc = jnp.maximum(acc, 0.0)
    o_ref[0] = acc.reshape(H, W, cout).astype(o_ref.dtype)


def _resblock_kernel(xpad_ref, w1_ref, b1_ref, w2_ref, b2_ref, o_ref, *, H, W):
    """Fused ResBlock: o = x + conv1x1(relu(conv3x3(relu(x))))."""
    xpad = xpad_ref[0]                                # (H+2, W+2, C), zero ring
    C = xpad.shape[-1]
    nres = w1_ref.shape[-1]
    xr = jnp.maximum(xpad, 0.0)                       # first ReLU
    h = jnp.zeros((H * W, nres), jnp.float32) + b1_ref[...]
    for dy in range(3):
        for dx in range(3):
            xs = xr[dy:dy + H, dx:dx + W, :].reshape(H * W, C)
            h = h + jnp.dot(xs, w1_ref[dy * 3 + dx],
                            preferred_element_type=jnp.float32)
    h = jnp.maximum(h, 0.0)                           # (H*W, n_res): never leaves VMEM
    y = jnp.dot(h.astype(w2_ref.dtype), w2_ref[...],
                preferred_element_type=jnp.float32) + b2_ref[...]
    y = y + xpad[1:H + 1, 1:W + 1, :].reshape(H * W, C)   # residual (pre-ReLU x)
    o_ref[0] = y.reshape(H, W, C).astype(o_ref.dtype)


def _deconv_subpixel_kernel(xpad_ref, w_ref, b_ref, o_ref, *, H, W, relu_in):
    """ConvTranspose2d(k=4, s=2, p=1) via 4 sub-pixel 2x2 convs (no zero-multiplies).

    o_ref[0, 2r+c, i*W+j, :] == output pixel (2i+r, 2j+c); pixel-shuffle of the
    tiny result happens outside the kernel.
    """
    x = xpad_ref[0]                                   # (H+2, W+2, Cin), zero ring
    if relu_in:
        x = jnp.maximum(x, 0.0)
    cin = x.shape[-1]
    cout = w_ref.shape[-1]
    for r in range(2):
        for c in range(2):
            acc = jnp.zeros((H * W, cout), jnp.float32) + b_ref[...]
            for dy in range(2):
                for dx in range(2):
                    xs = x[r + dy:r + dy + H, c + dx:c + dx + W, :].reshape(H * W, cin)
                    acc = acc + jnp.dot(xs, w_ref[2 * r + c, 2 * dy + dx],
                                        preferred_element_type=jnp.float32)
            o_ref[0, 2 * r + c] = acc.astype(o_ref.dtype)


# ---------------------------------------------------------------------------
# Layer wrappers (pallas_call + weight reshaping; all glue is O(weights)/tiny)
# ---------------------------------------------------------------------------
def _pad1(x_nhwc):
    return jnp.pad(x_nhwc, ((0, 0), (1, 1), (1, 1), (0, 0)))


def conv3x3(xpad, w_oihw, b, relu_in=False, relu_out=False):
    """xpad: (B, H+2, W+2, Cin) zero-padded NHWC. Returns (B, H, W, Cout)."""
    B, Hp, Wp, cin = xpad.shape
    H, W = Hp - 2, Wp - 2
    cout = w_oihw.shape[0]
    w_taps = jnp.transpose(w_oihw, (2, 3, 1, 0)).reshape(9, cin, cout).astype(COMPUTE_DTYPE)
    b2 = b.reshape(1, cout).astype(jnp.float32)
    kernel = functools.partial(_conv3x3_kernel, H=H, W=W,
                               relu_in=relu_in, relu_out=relu_out)
    return pl.pallas_call(
        kernel,
        out_shape=jax.ShapeDtypeStruct((B, H, W, cout), COMPUTE_DTYPE),
        grid=(B,),
        in_specs=[
            pl.BlockSpec((1, Hp, Wp, cin), lambda n: (n, 0, 0, 0)),
            pl.BlockSpec((9, cin, cout), lambda n: (0, 0, 0)),   # VMEM-resident weights
            pl.BlockSpec((1, cout), lambda n: (0, 0)),
        ],
        out_specs=pl.BlockSpec((1, H, W, cout), lambda n: (n, 0, 0, 0)),
        compiler_params=_compiler_params(),
    )(xpad.astype(COMPUTE_DTYPE), w_taps, b2)


def resblock(xpad, w1_oihw, b1, w2_oihw, b2):
    """Fused ResBlock on a zero-padded input. Returns (B, H, W, C)."""
    B, Hp, Wp, C = xpad.shape
    H, W = Hp - 2, Wp - 2
    nres = w1_oihw.shape[0]
    w1 = jnp.transpose(w1_oihw, (2, 3, 1, 0)).reshape(9, C, nres).astype(COMPUTE_DTYPE)
    w2 = jnp.transpose(w2_oihw, (2, 3, 1, 0)).reshape(nres, C).astype(COMPUTE_DTYPE)
    b1r = b1.reshape(1, nres).astype(jnp.float32)
    b2r = b2.reshape(1, C).astype(jnp.float32)
    kernel = functools.partial(_resblock_kernel, H=H, W=W)
    return pl.pallas_call(
        kernel,
        out_shape=jax.ShapeDtypeStruct((B, H, W, C), COMPUTE_DTYPE),
        grid=(B,),
        in_specs=[
            pl.BlockSpec((1, Hp, Wp, C), lambda n: (n, 0, 0, 0)),
            pl.BlockSpec((9, C, nres), lambda n: (0, 0, 0)),
            pl.BlockSpec((1, nres), lambda n: (0, 0)),
            pl.BlockSpec((nres, C), lambda n: (0, 0)),
            pl.BlockSpec((1, C), lambda n: (0, 0)),
        ],
        out_specs=pl.BlockSpec((1, H, W, C), lambda n: (n, 0, 0, 0)),
        compiler_params=_compiler_params(),
    )(xpad.astype(COMPUTE_DTYPE), w1, b1r, w2, b2r)


def _subpixel_weights(w_iokk):
    """Split a (Cin, Cout, 4, 4) ConvTranspose weight into 4 sub-pixel 2x2 kernels.

    w_all[2r+c, 2dy+dx, ci, co] = W[ci, co, 3 - r - 2dy, 3 - c - 2dx]
    """
    sub = []
    for r in range(2):
        for c in range(2):
            taps = [w_iokk[:, :, 3 - r - 2 * dy, 3 - c - 2 * dx]
                    for dy in range(2) for dx in range(2)]
            sub.append(jnp.stack(taps, axis=0))       # (4, Cin, Cout)
    return jnp.stack(sub, axis=0)                     # (4, 4, Cin, Cout)


def conv_transpose2d(xpad, w_iokk, b, relu_in=False):
    """PyTorch ConvTranspose2d(Cin, Cout, 4, stride=2, padding=1) on a padded
    NHWC input (B, H+2, W+2, Cin). Returns (B, 2H, 2W, Cout)."""
    B, Hp, Wp, cin = xpad.shape
    H, W = Hp - 2, Wp - 2
    cout = w_iokk.shape[1]
    w_all = _subpixel_weights(w_iokk).astype(COMPUTE_DTYPE)       # (4, 4, Cin, Cout)
    b2 = b.reshape(1, cout).astype(jnp.float32)
    kernel = functools.partial(_deconv_subpixel_kernel, H=H, W=W, relu_in=relu_in)
    out = pl.pallas_call(
        kernel,
        out_shape=jax.ShapeDtypeStruct((B, 4, H * W, cout), COMPUTE_DTYPE),
        grid=(B,),
        in_specs=[
            pl.BlockSpec((1, Hp, Wp, cin), lambda n: (n, 0, 0, 0)),
            pl.BlockSpec((4, 4, cin, cout), lambda n: (0, 0, 0, 0)),
            pl.BlockSpec((1, cout), lambda n: (0, 0)),
        ],
        out_specs=pl.BlockSpec((1, 4, H * W, cout), lambda n: (n, 0, 0, 0)),
        compiler_params=_compiler_params(),
    )(xpad.astype(COMPUTE_DTYPE), w_all, b2)
    # pixel shuffle of a tiny tensor: (B, r, c, i, j, co) -> (B, 2H, 2W, Cout)
    out = out.reshape(B, 2, 2, H, W, cout)
    out = jnp.transpose(out, (0, 3, 1, 4, 2, 5)).reshape(B, 2 * H, 2 * W, cout)
    return out


# ---------------------------------------------------------------------------
# Decoder: parameter init + forward (matches the PyTorch module semantics)
# ---------------------------------------------------------------------------
def _conv_p(key, cout, cin, k, scale=0.05):
    k1, k2 = jax.random.split(key)
    w = jax.random.normal(k1, (cout, cin, k, k), jnp.float32) * scale
    b = jax.random.normal(k2, (cout,), jnp.float32) * scale
    return w, b


def _convt_p(key, cin, cout, k, scale=0.05):
    k1, k2 = jax.random.split(key)
    w = jax.random.normal(k1, (cin, cout, k, k), jnp.float32) * scale
    b = jax.random.normal(k2, (cout,), jnp.float32) * scale
    return w, b


def init_decoder_params(key, in_channel, out_channel, channel,
                        n_res_block, n_res_channel, stride):
    n_keys = 1 + 2 * n_res_block + (2 if stride == 4 else 1)
    keys = iter(jax.random.split(key, n_keys))
    params = {"conv_in": _conv_p(next(keys), channel, in_channel, 3), "res": []}
    for _ in range(n_res_block):
        w1 = _conv_p(next(keys), n_res_channel, channel, 3)
        w2 = _conv_p(next(keys), channel, n_res_channel, 1)
        params["res"].append((w1, w2))
    if stride == 4:
        params["deconv"] = [
            _convt_p(next(keys), channel, channel // 2, 4),
            _convt_p(next(keys), channel // 2, out_channel, 4),
        ]
    elif stride == 2:
        params["deconv"] = [_convt_p(next(keys), channel, out_channel, 4)]
    else:
        raise ValueError("stride must be 2 or 4")
    return params


def decoder_forward(params, x_nchw, stride):
    x = jnp.transpose(x_nchw, (0, 2, 3, 1))           # NCHW -> NHWC
    w, b = params["conv_in"]
    y = conv3x3(_pad1(x), w, b)                       # no ReLU on the stem conv
    for (w1, b1), (w2, b2) in params["res"]:
        y = resblock(_pad1(y), w1, b1, w2, b2)        # one fused kernel per ResBlock
    # trailing nn.ReLU (and the ReLU between deconvs) fused as relu_in below
    if stride == 4:
        (wt1, bt1), (wt2, bt2) = params["deconv"]
        y = conv_transpose2d(_pad1(y), wt1, bt1, relu_in=True)
        y = conv_transpose2d(_pad1(y), wt2, bt2, relu_in=True)
    elif stride == 2:
        ((wt1, bt1),) = params["deconv"]
        y = conv_transpose2d(_pad1(y), wt1, bt1, relu_in=True)
    else:
        raise ValueError("stride must be 2 or 4")
    return jnp.transpose(y, (0, 3, 1, 2)).astype(jnp.float32)   # NHWC -> NCHW


# ---------------------------------------------------------------------------
# Pure-JAX reference (lax convs) for a correctness cross-check
# ---------------------------------------------------------------------------
def _ref_conv2d(x, w_oihw, b, pad):
    w_hwio = jnp.transpose(w_oihw, (2, 3, 1, 0))
    out = lax.conv_general_dilated(x, w_hwio, (1, 1), ((pad, pad), (pad, pad)),
                                   dimension_numbers=("NHWC", "HWIO", "NHWC"))
    return out + b


def _ref_conv_transpose2d(x, w_iokk, b, stride, pad):
    k = w_iokk.shape[2]
    q = k - 1 - pad
    w_hwio = jnp.transpose(jnp.flip(w_iokk, (2, 3)), (2, 3, 0, 1))
    out = lax.conv_general_dilated(x, w_hwio, (1, 1), ((q, q), (q, q)),
                                   lhs_dilation=(stride, stride),
                                   dimension_numbers=("NHWC", "HWIO", "NHWC"))
    return out + b


def ref_decoder_forward(params, x_nchw, stride):
    x = jnp.transpose(x_nchw, (0, 2, 3, 1))
    w, b = params["conv_in"]
    x = _ref_conv2d(x, w, b, 1)
    for (w1, b1), (w2, b2) in params["res"]:
        h = _ref_conv2d(jnp.maximum(x, 0.0), w1, b1, 1)
        h = _ref_conv2d(jnp.maximum(h, 0.0), w2, b2, 0)
        x = x + h
    x = jnp.maximum(x, 0.0)
    if stride == 4:
        (wt1, bt1), (wt2, bt2) = params["deconv"]
        x = _ref_conv_transpose2d(x, wt1, bt1, 2, 1)
        x = jnp.maximum(x, 0.0)
        x = _ref_conv_transpose2d(x, wt2, bt2, 2, 1)
    else:
        ((wt1, bt1),) = params["deconv"]
        x = _ref_conv_transpose2d(x, wt1, bt1, 2, 1)
    return jnp.transpose(x, (0, 3, 1, 2))


if __name__ == "__main__":
    key = jax.random.PRNGKey(0)
    kp, kx = jax.random.split(key)

    in_channel, out_channel, channel = 4, 3, 32
    n_res_block, n_res_channel = 2, 8
    B, H, W = 2, 8, 8

    x = jax.random.normal(kx, (B, in_channel, H, W), jnp.float32)
    fwd = jax.jit(decoder_forward, static_argnames=("stride",))

    for stride in (4, 2):
        params = init_decoder_params(kp, in_channel, out_channel, channel,
                                     n_res_block, n_res_channel, stride)
        out = jax.block_until_ready(fwd(params, x, stride=stride))
        assert out.shape == (B, out_channel, H * stride, W * stride), out.shape
        ref = ref_decoder_forward(params, x, stride)
        err = float(jnp.max(jnp.abs(out - ref)))
        if err > 1e-3:
            raise AssertionError(f"stride={stride}: mismatch vs reference, max abs err={err}")

    print("KERNEL_OK")
</pallas_src>

<mosaic_0001>
module attributes {stable_mosaic.version = 11 : i64} {
  func.func @_conv3x3_kernel(%arg0: i32, %arg1: memref<1x10x10x4xf32, #tpu.memory_space<vmem>>, %arg2: memref<9x4x32xf32, #tpu.memory_space<vmem>>, %arg3: memref<1x32xf32, #tpu.memory_space<vmem>>, %arg4: memref<1x8x8x32xf32, #tpu.memory_space<vmem>>) attributes {dimension_semantics = [#tpu.dimension_semantics<parallel>], iteration_bounds = array<i64: 2>, scalar_prefetch = 0 : i64, scratch_operands = 0 : i64, tpu.core_type = #tpu.core_type<tc>, window_params = [{transform_indices = @transform_0, window_bounds = array<i64: 1, 10, 10, 4>}, {pipeline_mode = #tpu.pipeline_mode<synchronous>, transform_indices = @transform_1, window_bounds = array<i64: 9, 4, 32>}, {pipeline_mode = #tpu.pipeline_mode<synchronous>, transform_indices = @transform_2, window_bounds = array<i64: 1, 32>}, {transform_indices = @transform_3, window_bounds = array<i64: 1, 8, 8, 32>}]} {
    %c0 = arith.constant 0 : index
    %c0_0 = arith.constant 0 : index
    %c0_1 = arith.constant 0 : index
    %c0_2 = arith.constant 0 : index
    %0 = vector.load %arg1[%c0, %c0_0, %c0_1, %c0_2] : memref<1x10x10x4xf32, #tpu.memory_space<vmem>>, vector<1x10x10x4xf32>
    %1 = vector.shape_cast %0 : vector<1x10x10x4xf32> to vector<10x10x4xf32>
    %cst = arith.constant 0.000000e+00 : f32
    %2 = vector.broadcast %cst : f32 to vector<64x32xf32>
    %c0_3 = arith.constant 0 : index
    %c0_4 = arith.constant 0 : index
    %3 = vector.load %arg3[%c0_3, %c0_4] : memref<1x32xf32, #tpu.memory_space<vmem>>, vector<1x32xf32>
    %4 = vector.broadcast %3 : vector<1x32xf32> to vector<64x32xf32>
    %5 = arith.addf %2, %4 : vector<64x32xf32>
    %6 = vector.extract_strided_slice %1 {offsets = [0, 0, 0], sizes = [8, 8, 4], strides = [1, 1, 1]} : vector<10x10x4xf32> to vector<8x8x4xf32>
    %7 = vector.shape_cast %6 : vector<8x8x4xf32> to vector<64x4xf32>
    %c0_5 = arith.constant 0 : index
    %c0_6 = arith.constant 0 : index
    %c0_7 = arith.constant 0 : index
    %8 = vector.load %arg2[%c0_5, %c0_6, %c0_7] : memref<9x4x32xf32, #tpu.memory_space<vmem>>, vector<1x4x32xf32>
    %9 = vector.shape_cast %8 : vector<1x4x32xf32> to vector<4x32xf32>
    %cst_8 = arith.constant dense<0.000000e+00> : vector<64x32xf32>
    %10 = tpu.matmul %7, %9, %cst_8 {dimension_numbers = #tpu.dot_dimension_numbers<[1], [0], [0], [1], [0, 0, 1, 1], [], []>} : vector<64x4xf32>, vector<4x32xf32>, vector<64x32xf32> -> vector<64x32xf32>
    %11 = arith.addf %5, %10 : vector<64x32xf32>
    %12 = vector.extract_strided_slice %1 {offsets = [0, 1, 0], sizes = [8, 8, 4], strides = [1, 1, 1]} : vector<10x10x4xf32> to vector<8x8x4xf32>
    %13 = vector.shape_cast %12 : vector<8x8x4xf32> to vector<64x4xf32>
    %c1 = arith.constant 1 : index
    %c0_9 = arith.constant 0 : index
    %c0_10 = arith.constant 0 : index
    %14 = vector.load %arg2[%c1, %c0_9, %c0_10] : memref<9x4x32xf32, #tpu.memory_space<vmem>>, vector<1x4x32xf32>
    %15 = vector.shape_cast %14 : vector<1x4x32xf32> to vector<4x32xf32>
    %cst_11 = arith.constant dense<0.000000e+00> : vector<64x32xf32>
    %16 = tpu.matmul %13, %15, %cst_11 {dimension_numbers = #tpu.dot_dimension_numbers<[1], [0], [0], [1], [0, 0, 1, 1], [], []>} : vector<64x4xf32>, vector<4x32xf32>, vector<64x32xf32> -> vector<64x32xf32>
    %17 = arith.addf %11, %16 : vector<64x32xf32>
    %18 = vector.extract_strided_slice %1 {offsets = [0, 2, 0], sizes = [8, 8, 4], strides = [1, 1, 1]} : vector<10x10x4xf32> to vector<8x8x4xf32>
    %19 = vector.shape_cast %18 : vector<8x8x4xf32> to vector<64x4xf32>
    %c2 = arith.constant 2 : index
    %c0_12 = arith.constant 0 : index
    %c0_13 = arith.constant 0 : index
    %20 = vector.load %arg2[%c2, %c0_12, %c0_13] : memref<9x4x32xf32, #tpu.memory_space<vmem>>, vector<1x4x32xf32>
    %21 = vector.shape_cast %20 : vector<1x4x32xf32> to vector<4x32xf32>
    %cst_14 = arith.constant dense<0.000000e+00> : vector<64x32xf32>
    %22 = tpu.matmul %19, %21, %cst_14 {dimension_numbers = #tpu.dot_dimension_numbers<[1], [0], [0], [1], [0, 0, 1, 1], [], []>} : vector<64x4xf32>, vector<4x32xf32>, vector<64x32xf32> -> vector<64x32xf32>
    %23 = arith.addf %17, %22 : vector<64x32xf32>
    %24 = vector.extract_strided_slice %1 {offsets = [1, 0, 0], sizes = [8, 8, 4], strides = [1, 1, 1]} : vector<10x10x4xf32> to vector<8x8x4xf32>
    %25 = vector.shape_cast %24 : vector<8x8x4xf32> to vector<64x4xf32>
    %c3 = arith.constant 3 : index
    %c0_15 = arith.constant 0 : index
    %c0_16 = arith.constant 0 : index
    %26 = vector.load %arg2[%c3, %c0_15, %c0_16] : memref<9x4x32xf32, #tpu.memory_space<vmem>>, vector<1x4x32xf32>
    %27 = vector.shape_cast %26 : vector<1x4x32xf32> to vector<4x32xf32>
    %cst_17 = arith.constant dense<0.000000e+00> : vector<64x32xf32>
    %28 = tpu.matmul %25, %27, %cst_17 {dimension_numbers = #tpu.dot_dimension_numbers<[1], [0], [0], [1], [0, 0, 1, 1], [], []>} : vector<64x4xf32>, vector<4x32xf32>, vector<64x32xf32> -> vector<64x32xf32>
    %29 = arith.addf %23, %28 : vector<64x32xf32>
    %30 = vector.extract_strided_slice %1 {offsets = [1, 1, 0], sizes = [8, 8, 4], strides = [1, 1, 1]} : vector<10x10x4xf32> to vector<8x8x4xf32>
    %31 = vector.shape_cast %30 : vector<8x8x4xf32> to vector<64x4xf32>
    %c4 = arith.constant 4 : index
    %c0_18 = arith.constant 0 : index
    %c0_19 = arith.constant 0 : index
    %32 = vector.load %arg2[%c4, %c0_18, %c0_19] : memref<9x4x32xf32, #tpu.memory_space<vmem>>, vector<1x4x32xf32>
    %33 = vector.shape_cast %32 : vector<1x4x32xf32> to vector<4x32xf32>
    %cst_20 = arith.constant dense<0.000000e+00> : vector<64x32xf32>
    %34 = tpu.matmul %31, %33, %cst_20 {dimension_numbers = #tpu.dot_dimension_numbers<[1], [0], [0], [1], [0, 0, 1, 1], [], []>} : vector<64x4xf32>, vector<4x32xf32>, vector<64x32xf32> -> vector<64x32xf32>
    %35 = arith.addf %29, %34 : vector<64x32xf32>
    %36 = vector.extract_strided_slice %1 {offsets = [1, 2, 0], sizes = [8, 8, 4], strides = [1, 1, 1]} : vector<10x10x4xf32> to vector<8x8x4xf32>
    %37 = vector.shape_cast %36 : vector<8x8x4xf32> to vector<64x4xf32>
    %c5 = arith.constant 5 : index
    %c0_21 = arith.constant 0 : index
    %c0_22 = arith.constant 0 : index
    %38 = vector.load %arg2[%c5, %c0_21, %c0_22] : memref<9x4x32xf32, #tpu.memory_space<vmem>>, vector<1x4x32xf32>
    %39 = vector.shape_cast %38 : vector<1x4x32xf32> to vector<4x32xf32>
    %cst_23 = arith.constant dense<0.000000e+00> : vector<64x32xf32>
    %40 = tpu.matmul %37, %39, %cst_23 {dimension_numbers = #tpu.dot_dimension_numbers<[1], [0], [0], [1], [0, 0, 1, 1], [], []>} : vector<64x4xf32>, vector<4x32xf32>, vector<64x32xf32> -> vector<64x32xf32>
    %41 = arith.addf %35, %40 : vector<64x32xf32>
    %42 = vector.extract_strided_slice %1 {offsets = [2, 0, 0], sizes = [8, 8, 4], strides = [1, 1, 1]} : vector<10x10x4xf32> to vector<8x8x4xf32>
    %43 = vector.shape_cast %42 : vector<8x8x4xf32> to vector<64x4xf32>
    %c6 = arith.constant 6 : index
    %c0_24 = arith.constant 0 : index
    %c0_25 = arith.constant 0 : index
    %44 = vector.load %arg2[%c6, %c0_24, %c0_25] : memref<9x4x32xf32, #tpu.memory_space<vmem>>, vector<1x4x32xf32>
    %45 = vector.shape_cast %44 : vector<1x4x32xf32> to vector<4x32xf32>
    %cst_26 = arith.constant dense<0.000000e+00> : vector<64x32xf32>
    %46 = tpu.matmul %43, %45, %cst_26 {dimension_numbers = #tpu.dot_dimension_numbers<[1], [0], [0], [1], [0, 0, 1, 1], [], []>} : vector<64x4xf32>, vector<4x32xf32>, vector<64x32xf32> -> vector<64x32xf32>
    %47 = arith.addf %41, %46 : vector<64x32xf32>
    %48 = vector.extract_strided_slice %1 {offsets = [2, 1, 0], sizes = [8, 8, 4], strides = [1, 1, 1]} : vector<10x10x4xf32> to vector<8x8x4xf32>
    %49 = vector.shape_cast %48 : vector<8x8x4xf32> to vector<64x4xf32>
    %c7 = arith.constant 7 : index
    %c0_27 = arith.constant 0 : index
    %c0_28 = arith.constant 0 : index
    %50 = vector.load %arg2[%c7, %c0_27, %c0_28] : memref<9x4x32xf32, #tpu.memory_space<vmem>>, vector<1x4x32xf32>
    %51 = vector.shape_cast %50 : vector<1x4x32xf32> to vector<4x32xf32>
    %cst_29 = arith.constant dense<0.000000e+00> : vector<64x32xf32>
    %52 = tpu.matmul %49, %51, %cst_29 {dimension_numbers = #tpu.dot_dimension_numbers<[1], [0], [0], [1], [0, 0, 1, 1], [], []>} : vector<64x4xf32>, vector<4x32xf32>, vector<64x32xf32> -> vector<64x32xf32>
    %53 = arith.addf %47, %52 : vector<64x32xf32>
    %54 = vector.extract_strided_slice %1 {offsets = [2, 2, 0], sizes = [8, 8, 4], strides = [1, 1, 1]} : vector<10x10x4xf32> to vector<8x8x4xf32>
    %55 = vector.shape_cast %54 : vector<8x8x4xf32> to vector<64x4xf32>
    %c8 = arith.constant 8 : index
    %c0_30 = arith.constant 0 : index
    %c0_31 = arith.constant 0 : index
    %56 = vector.load %arg2[%c8, %c0_30, %c0_31] : memref<9x4x32xf32, #tpu.memory_space<vmem>>, vector<1x4x32xf32>
    %57 = vector.shape_cast %56 : vector<1x4x32xf32> to vector<4x32xf32>
    %cst_32 = arith.constant dense<0.000000e+00> : vector<64x32xf32>
    %58 = tpu.matmul %55, %57, %cst_32 {dimension_numbers = #tpu.dot_dimension_numbers<[1], [0], [0], [1], [0, 0, 1, 1], [], []>} : vector<64x4xf32>, vector<4x32xf32>, vector<64x32xf32> -> vector<64x32xf32>
    %59 = arith.addf %53, %58 : vector<64x32xf32>
    %60 = vector.shape_cast %59 : vector<64x32xf32> to vector<8x8x32xf32>
    %c0_33 = arith.constant 0 : index
    %c0_34 = arith.constant 0 : index
    %c0_35 = arith.constant 0 : index
    %c0_36 = arith.constant 0 : index
    %61 = vector.load %arg4[%c0_33, %c0_34, %c0_35, %c0_36] : memref<1x8x8x32xf32, #tpu.memory_space<vmem>>, vector<1x8x8x32xf32>
    %62 = vector.shape_cast %61 : vector<1x8x8x32xf32> to vector<8x8x32xf32>
    %63 = vector.shape_cast %60 : vector<8x8x32xf32> to vector<1x8x8x32xf32>
    tpu.vector_store %arg4[%c0_33, %c0_34, %c0_35, %c0_36], %63 {strides = array<i32>} : memref<1x8x8x32xf32, #tpu.memory_space<vmem>>, vector<1x8x8x32xf32>,
    return
  }
  func.func @transform_0(%arg0: i32) -> (i32, i32, i32, i32) {
    %c0_i32 = arith.constant 0 : i32
    %c0_i32_0 = arith.constant 0 : i32
    %c0_i32_1 = arith.constant 0 : i32
    %c0_i32_2 = arith.constant 0 : i32
    return %arg0, %c0_i32, %c0_i32_0, %c0_i32_1 : i32, i32, i32, i32
  }
  func.func @transform_1(%arg0: i32) -> (i32, i32, i32) {
    %c0_i32 = arith.constant 0 : i32
    %c0_i32_0 = arith.constant 0 : i32
    %c0_i32_1 = arith.constant 0 : i32
    %c0_i32_2 = arith.constant 0 : i32
    return %c0_i32, %c0_i32_0, %c0_i32_1 : i32, i32, i32
  }
  func.func @transform_2(%arg0: i32) -> (i32, i32) {
    %c0_i32 = arith.constant 0 : i32
    %c0_i32_0 = arith.constant 0 : i32
    %c0_i32_1 = arith.constant 0 : i32
    return %c0_i32, %c0_i32_0 : i32, i32
  }
  func.func @transform_3(%arg0: i32) -> (i32, i32, i32, i32) {
    %c0_i32 = arith.constant 0 : i32
    %c0_i32_0 = arith.constant 0 : i32
    %c0_i32_1 = arith.constant 0 : i32
    %c0_i32_2 = arith.constant 0 : i32
    return %arg0, %c0_i32, %c0_i32_0, %c0_i32_1 : i32, i32, i32, i32
  }
}

module attributes {stable_mosaic.version = 11 : i64} {
  func.func @_resblock_kernel(%arg0: i32, %arg1: memref<1x10x10x32xf32, #tpu.memory_space<vmem>>, %arg2: memref<9x32x8xf32, #tpu.memory_space<vmem>>, %arg3: memref<1x8xf32, #tpu.memory_space<vmem>>, %arg4: memref<8x32xf32, #tpu.memory_space<vmem>>, %arg5: memref<1x32xf32, #tpu.memory_space<vmem>>, %arg6: memref<1x8x8x32xf32, #tpu.memory_space<vmem>>) attributes {dimension_semantics = [#tpu.dimension_semantics<parallel>], iteration_bounds = array<i64: 2>, scalar_prefetch = 0 : i64, scratch_operands = 0 : i64, tpu.core_type = #tpu.core_type<tc>, window_params = [{transform_indices = @transform_0, window_bounds = array<i64: 1, 10, 10, 32>}, {pipeline_mode = #tpu.pipeline_mode<synchronous>, transform_indices = @transform_1, window_bounds = array<i64: 9, 32, 8>}, {pipeline_mode = #tpu.pipeline_mode<synchronous>, transform_indices = @transform_2, window_bounds = array<i64: 1, 8>}, {pipeline_mode = #tpu.pipeline_mode<synchronous>, transform_indices = @transform_3, window_bounds = array<i64: 8, 32>}, {pipeline_mode = #tpu.pipeline_mode<synchronous>, transform_indices = @transform_4, window_bounds = array<i64: 1, 32>}, {transform_indices = @transform_5, window_bounds = array<i64: 1, 8, 8, 32>}]} {
    %c0 = arith.constant 0 : index
    %c0_0 = arith.constant 0 : index
    %c0_1 = arith.constant 0 : index
    %c0_2 = arith.constant 0 : index
    %0 = vector.load %arg1[%c0, %c0_0, %c0_1, %c0_2] : memref<1x10x10x32xf32, #tpu.memory_space<vmem>>, vector<1x10x10x32xf32>
    %1 = vector.shape_cast %0 : vector<1x10x10x32xf32> to vector<10x10x32xf32>
    %cst = arith.constant 0.000000e+00 : f32
    %2 = vector.broadcast %cst : f32 to vector<10x10x32xf32>
    %3 = arith.maximumf %1, %2 : vector<10x10x32xf32>
    %cst_3 = arith.constant 0.000000e+00 : f32
    %4 = vector.broadcast %cst_3 : f32 to vector<64x8xf32>
    %c0_4 = arith.constant 0 : index
    %c0_5 = arith.constant 0 : index
    %5 = vector.load %arg3[%c0_4, %c0_5] : memref<1x8xf32, #tpu.memory_space<vmem>>, vector<1x8xf32>
    %6 = vector.broadcast %5 : vector<1x8xf32> to vector<64x8xf32>
    %7 = arith.addf %4, %6 : vector<64x8xf32>
    %8 = vector.extract_strided_slice %3 {offsets = [0, 0, 0], sizes = [8, 8, 32], strides = [1, 1, 1]} : vector<10x10x32xf32> to vector<8x8x32xf32>
    %9 = vector.shape_cast %8 : vector<8x8x32xf32> to vector<64x32xf32>
    %c0_6 = arith.constant 0 : index
    %c0_7 = arith.constant 0 : index
    %c0_8 = arith.constant 0 : index
    %10 = vector.load %arg2[%c0_6, %c0_7, %c0_8] : memref<9x32x8xf32, #tpu.memory_space<vmem>>, vector<1x32x8xf32>
    %11 = vector.shape_cast %10 : vector<1x32x8xf32> to vector<32x8xf32>
    %cst_9 = arith.constant dense<0.000000e+00> : vector<64x8xf32>
    %12 = tpu.matmul %9, %11, %cst_9 {dimension_numbers = #tpu.dot_dimension_numbers<[1], [0], [0], [1], [0, 0, 1, 1], [], []>} : vector<64x32xf32>, vector<32x8xf32>, vector<64x8xf32> -> vector<64x8xf32>
    %13 = arith.addf %7, %12 : vector<64x8xf32>
    %14 = vector.extract_strided_slice %3 {offsets = [0, 1, 0], sizes = [8, 8, 32], strides = [1, 1, 1]} : vector<10x10x32xf32> to vector<8x8x32xf32>
    %15 = vector.shape_cast %14 : vector<8x8x32xf32> to vector<64x32xf32>
    %c1 = arith.constant 1 : index
    %c0_10 = arith.constant 0 : index
    %c0_11 = arith.constant 0 : index
    %16 = vector.load %arg2[%c1, %c0_10, %c0_11] : memref<9x32x8xf32, #tpu.memory_space<vmem>>, vector<1x32x8xf32>
    %17 = vector.shape_cast %16 : vector<1x32x8xf32> to vector<32x8xf32>
    %cst_12 = arith.constant dense<0.000000e+00> : vector<64x8xf32>
    %18 = tpu.matmul %15, %17, %cst_12 {dimension_numbers = #tpu.dot_dimension_numbers<[1], [0], [0], [1], [0, 0, 1, 1], [], []>} : vector<64x32xf32>, vector<32x8xf32>, vector<64x8xf32> -> vector<64x8xf32>
    %19 = arith.addf %13, %18 : vector<64x8xf32>
    %20 = vector.extract_strided_slice %3 {offsets = [0, 2, 0], sizes = [8, 8, 32], strides = [1, 1, 1]} : vector<10x10x32xf32> to vector<8x8x32xf32>
    %21 = vector.shape_cast %20 : vector<8x8x32xf32> to vector<64x32xf32>
    %c2 = arith.constant 2 : index
    %c0_13 = arith.constant 0 : index
    %c0_14 = arith.constant 0 : index
    %22 = vector.load %arg2[%c2, %c0_13, %c0_14] : memref<9x32x8xf32, #tpu.memory_space<vmem>>, vector<1x32x8xf32>
    %23 = vector.shape_cast %22 : vector<1x32x8xf32> to vector<32x8xf32>
    %cst_15 = arith.constant dense<0.000000e+00> : vector<64x8xf32>
    %24 = tpu.matmul %21, %23, %cst_15 {dimension_numbers = #tpu.dot_dimension_numbers<[1], [0], [0], [1], [0, 0, 1, 1], [], []>} : vector<64x32xf32>, vector<32x8xf32>, vector<64x8xf32> -> vector<64x8xf32>
    %25 = arith.addf %19, %24 : vector<64x8xf32>
    %26 = vector.extract_strided_slice %3 {offsets = [1, 0, 0], sizes = [8, 8, 32], strides = [1, 1, 1]} : vector<10x10x32xf32> to vector<8x8x32xf32>
    %27 = vector.shape_cast %26 : vector<8x8x32xf32> to vector<64x32xf32>
    %c3 = arith.constant 3 : index
    %c0_16 = arith.constant 0 : index
    %c0_17 = arith.constant 0 : index
    %28 = vector.load %arg2[%c3, %c0_16, %c0_17] : memref<9x32x8xf32, #tpu.memory_space<vmem>>, vector<1x32x8xf32>
    %29 = vector.shape_cast %28 : vector<1x32x8xf32> to vector<32x8xf32>
    %cst_18 = arith.constant dense<0.000000e+00> : vector<64x8xf32>
    %30 = tpu.matmul %27, %29, %cst_18 {dimension_numbers = #tpu.dot_dimension_numbers<[1], [0], [0], [1], [0, 0, 1, 1], [], []>} : vector<64x32xf32>, vector<32x8xf32>, vector<64x8xf32> -> vector<64x8xf32>
    %31 = arith.addf %25, %30 : vector<64x8xf32>
    %32 = vector.extract_strided_slice %3 {offsets = [1, 1, 0], sizes = [8, 8, 32], strides = [1, 1, 1]} : vector<10x10x32xf32> to vector<8x8x32xf32>
    %33 = vector.shape_cast %32 : vector<8x8x32xf32> to vector<64x32xf32>
    %c4 = arith.constant 4 : index
    %c0_19 = arith.constant 0 : index
    %c0_20 = arith.constant 0 : index
    %34 = vector.load %arg2[%c4, %c0_19, %c0_20] : memref<9x32x8xf32, #tpu.memory_space<vmem>>, vector<1x32x8xf32>
    %35 = vector.shape_cast %34 : vector<1x32x8xf32> to vector<32x8xf32>
    %cst_21 = arith.constant dense<0.000000e+00> : vector<64x8xf32>
    %36 = tpu.matmul %33, %35, %cst_21 {dimension_numbers = #tpu.dot_dimension_numbers<[1], [0], [0], [1], [0, 0, 1, 1], [], []>} : vector<64x32xf32>, vector<32x8xf32>, vector<64x8xf32> -> vector<64x8xf32>
    %37 = arith.addf %31, %36 : vector<64x8xf32>
    %38 = vector.extract_strided_slice %3 {offsets = [1, 2, 0], sizes = [8, 8, 32], strides = [1, 1, 1]} : vector<10x10x32xf32> to vector<8x8x32xf32>
    %39 = vector.shape_cast %38 : vector<8x8x32xf32> to vector<64x32xf32>
    %c5 = arith.constant 5 : index
    %c0_22 = arith.constant 0 : index
    %c0_23 = arith.constant 0 : index
    %40 = vector.load %arg2[%c5, %c0_22, %c0_23] : memref<9x32x8xf32, #tpu.memory_space<vmem>>, vector<1x32x8xf32>
    %41 = vector.shape_cast %40 : vector<1x32x8xf32> to vector<32x8xf32>
    %cst_24 = arith.constant dense<0.000000e+00> : vector<64x8xf32>
    %42 = tpu.matmul %39, %41, %cst_24 {dimension_numbers = #tpu.dot_dimension_numbers<[1], [0], [0], [1], [0, 0, 1, 1], [], []>} : vector<64x32xf32>, vector<32x8xf32>, vector<64x8xf32> -> vector<64x8xf32>
    %43 = arith.addf %37, %42 : vector<64x8xf32>
    %44 = vector.extract_strided_slice %3 {offsets = [2, 0, 0], sizes = [8, 8, 32], strides = [1, 1, 1]} : vector<10x10x32xf32> to vector<8x8x32xf32>
    %45 = vector.shape_cast %44 : vector<8x8x32xf32> to vector<64x32xf32>
    %c6 = arith.constant 6 : index
    %c0_25 = arith.constant 0 : index
    %c0_26 = arith.constant 0 : index
    %46 = vector.load %arg2[%c6, %c0_25, %c0_26] : memref<9x32x8xf32, #tpu.memory_space<vmem>>, vector<1x32x8xf32>
    %47 = vector.shape_cast %46 : vector<1x32x8xf32> to vector<32x8xf32>
    %cst_27 = arith.constant dense<0.000000e+00> : vector<64x8xf32>
    %48 = tpu.matmul %45, %47, %cst_27 {dimension_numbers = #tpu.dot_dimension_numbers<[1], [0], [0], [1], [0, 0, 1, 1], [], []>} : vector<64x32xf32>, vector<32x8xf32>, vector<64x8xf32> -> vector<64x8xf32>
    %49 = arith.addf %43, %48 : vector<64x8xf32>
    %50 = vector.extract_strided_slice %3 {offsets = [2, 1, 0], sizes = [8, 8, 32], strides = [1, 1, 1]} : vector<10x10x32xf32> to vector<8x8x32xf32>
    %51 = vector.shape_cast %50 : vector<8x8x32xf32> to vector<64x32xf32>
    %c7 = arith.constant 7 : index
    %c0_28 = arith.constant 0 : index
    %c0_29 = arith.constant 0 : index
    %52 = vector.load %arg2[%c7, %c0_28, %c0_29] : memref<9x32x8xf32, #tpu.memory_space<vmem>>, vector<1x32x8xf32>
    %53 = vector.shape_cast %52 : vector<1x32x8xf32> to vector<32x8xf32>
    %cst_30 = arith.constant dense<0.000000e+00> : vector<64x8xf32>
    %54 = tpu.matmul %51, %53, %cst_30 {dimension_numbers = #tpu.dot_dimension_numbers<[1], [0], [0], [1], [0, 0, 1, 1], [], []>} : vector<64x32xf32>, vector<32x8xf32>, vector<64x8xf32> -> vector<64x8xf32>
    %55 = arith.addf %49, %54 : vector<64x8xf32>
    %56 = vector.extract_strided_slice %3 {offsets = [2, 2, 0], sizes = [8, 8, 32], strides = [1, 1, 1]} : vector<10x10x32xf32> to vector<8x8x32xf32>
    %57 = vector.shape_cast %56 : vector<8x8x32xf32> to vector<64x32xf32>
    %c8 = arith.constant 8 : index
    %c0_31 = arith.constant 0 : index
    %c0_32 = arith.constant 0 : index
    %58 = vector.load %arg2[%c8, %c0_31, %c0_32] : memref<9x32x8xf32, #tpu.memory_space<vmem>>, vector<1x32x8xf32>
    %59 = vector.shape_cast %58 : vector<1x32x8xf32> to vector<32x8xf32>
    %cst_33 = arith.constant dense<0.000000e+00> : vector<64x8xf32>
    %60 = tpu.matmul %57, %59, %cst_33 {dimension_numbers = #tpu.dot_dimension_numbers<[1], [0], [0], [1], [0, 0, 1, 1], [], []>} : vector<64x32xf32>, vector<32x8xf32>, vector<64x8xf32> -> vector<64x8xf32>
    %61 = arith.addf %55, %60 : vector<64x8xf32>
    %cst_34 = arith.constant 0.000000e+00 : f32
    %62 = vector.broadcast %cst_34 : f32 to vector<64x8xf32>
    %63 = arith.maximumf %61, %62 : vector<64x8xf32>
    %c0_35 = arith.constant 0 : index
    %c0_36 = arith.constant 0 : index
    %64 = vector.load %arg4[%c0_35, %c0_36] : memref<8x32xf32, #tpu.memory_space<vmem>>, vector<8x32xf32>
    %cst_37 = arith.constant dense<0.000000e+00> : vector<64x32xf32>
    %65 = tpu.matmul %63, %64, %cst_37 {dimension_numbers = #tpu.dot_dimension_numbers<[1], [0], [0], [1], [0, 0, 1, 1], [], []>} : vector<64x8xf32>, vector<8x32xf32>, vector<64x32xf32> -> vector<64x32xf32>
    %c0_38 = arith.constant 0 : index
    %c0_39 = arith.constant 0 : index
    %66 = vector.load %arg5[%c0_38, %c0_39] : memref<1x32xf32, #tpu.memory_space<vmem>>, vector<1x32xf32>
    %67 = vector.broadcast %66 : vector<1x32xf32> to vector<64x32xf32>
    %68 = arith.addf %65, %67 : vector<64x32xf32>
    %69 = vector.extract_strided_slice %1 {offsets = [1, 1, 0], sizes = [8, 8, 32], strides = [1, 1, 1]} : vector<10x10x32xf32> to vector<8x8x32xf32>
    %70 = vector.shape_cast %69 : vector<8x8x32xf32> to vector<64x32xf32>
    %71 = arith.addf %68, %70 : vector<64x32xf32>
    %72 = vector.shape_cast %71 : vector<64x32xf32> to vector<8x8x32xf32>
    %c0_40 = arith.constant 0 : index
    %c0_41 = arith.constant 0 : index
    %c0_42 = arith.constant 0 : index
    %c0_43 = arith.constant 0 : index
    %73 = vector.load %arg6[%c0_40, %c0_41, %c0_42, %c0_43] : memref<1x8x8x32xf32, #tpu.memory_space<vmem>>, vector<1x8x8x32xf32>
    %74 = vector.shape_cast %73 : vector<1x8x8x32xf32> to vector<8x8x32xf32>
    %75 = vector.shape_cast %72 : vector<8x8x32xf32> to vector<1x8x8x32xf32>
    tpu.vector_store %arg6[%c0_40, %c0_41, %c0_42, %c0_43], %75 {strides = array<i32>} : memref<1x8x8x32xf32, #tpu.memory_space<vmem>>, vector<1x8x8x32xf32>,
    return
  }
  func.func @transform_0(%arg0: i32) -> (i32, i32, i32, i32) {
    %c0_i32 = arith.constant 0 : i32
    %c0_i32_0 = arith.constant 0 : i32
    %c0_i32_1 = arith.constant 0 : i32
    %c0_i32_2 = arith.constant 0 : i32
    return %arg0, %c0_i32, %c0_i32_0, %c0_i32_1 : i32, i32, i32, i32
  }
  func.func @transform_1(%arg0: i32) -> (i32, i32, i32) {
    %c0_i32 = arith.constant 0 : i32
    %c0_i32_0 = arith.constant 0 : i32
    %c0_i32_1 = arith.constant 0 : i32
    %c0_i32_2 = arith.constant 0 : i32
    return %c0_i32, %c0_i32_0, %c0_i32_1 : i32, i32, i32
  }
  func.func @transform_2(%arg0: i32) -> (i32, i32) {
    %c0_i32 = arith.constant 0 : i32
    %c0_i32_0 = arith.constant 0 : i32
    %c0_i32_1 = arith.constant 0 : i32
    return %c0_i32, %c0_i32_0 : i32, i32
  }
  func.func @transform_3(%arg0: i32) -> (i32, i32) {
    %c0_i32 = arith.constant 0 : i32
    %c0_i32_0 = arith.constant 0 : i32
    %c0_i32_1 = arith.constant 0 : i32
    return %c0_i32, %c0_i32_0 : i32, i32
  }
  func.func @transform_4(%arg0: i32) -> (i32, i32) {
    %c0_i32 = arith.constant 0 : i32
    %c0_i32_0 = arith.constant 0 : i32
    %c0_i32_1 = arith.constant 0 : i32
    return %c0_i32, %c0_i32_0 : i32, i32
  }
  func.func @transform_5(%arg0: i32) -> (i32, i32, i32, i32) {
    %c0_i32 = arith.constant 0 : i32
    %c0_i32_0 = arith.constant 0 : i32
    %c0_i32_1 = arith.constant 0 : i32
    %c0_i32_2 = arith.constant 0 : i32
    return %arg0, %c0_i32, %c0_i32_0, %c0_i32_1 : i32, i32, i32, i32
  }
}

module attributes {stable_mosaic.version = 11 : i64} {
  func.func @_deconv_subpixel_kernel(%arg0: i32, %arg1: memref<1x10x10x32xf32, #tpu.memory_space<vmem>>, %arg2: memref<4x4x32x16xf32, #tpu.memory_space<vmem>>, %arg3: memref<1x16xf32, #tpu.memory_space<vmem>>, %arg4: memref<1x4x64x16xf32, #tpu.memory_space<vmem>>) attributes {dimension_semantics = [#tpu.dimension_semantics<parallel>], iteration_bounds = array<i64: 2>, scalar_prefetch = 0 : i64, scratch_operands = 0 : i64, tpu.core_type = #tpu.core_type<tc>, window_params = [{transform_indices = @transform_0, window_bounds = array<i64: 1, 10, 10, 32>}, {pipeline_mode = #tpu.pipeline_mode<synchronous>, transform_indices = @transform_1, window_bounds = array<i64: 4, 4, 32, 16>}, {pipeline_mode = #tpu.pipeline_mode<synchronous>, transform_indices = @transform_2, window_bounds = array<i64: 1, 16>}, {transform_indices = @transform_3, window_bounds = array<i64: 1, 4, 64, 16>}]} {
    %c0 = arith.constant 0 : index
    %c0_0 = arith.constant 0 : index
    %c0_1 = arith.constant 0 : index
    %c0_2 = arith.constant 0 : index
    %0 = vector.load %arg1[%c0, %c0_0, %c0_1, %c0_2] : memref<1x10x10x32xf32, #tpu.memory_space<vmem>>, vector<1x10x10x32xf32>
    %1 = vector.shape_cast %0 : vector<1x10x10x32xf32> to vector<10x10x32xf32>
    %cst = arith.constant 0.000000e+00 : f32
    %2 = vector.broadcast %cst : f32 to vector<10x10x32xf32>
    %3 = arith.maximumf %1, %2 : vector<10x10x32xf32>
    %cst_3 = arith.constant 0.000000e+00 : f32
    %4 = vector.broadcast %cst_3 : f32 to vector<64x16xf32>
    %c0_4 = arith.constant 0 : index
    %c0_5 = arith.constant 0 : index
    %5 = vector.load %arg3[%c0_4, %c0_5] : memref<1x16xf32, #tpu.memory_space<vmem>>, vector<1x16xf32>
    %6 = vector.broadcast %5 : vector<1x16xf32> to vector<64x16xf32>
    %7 = arith.addf %4, %6 : vector<64x16xf32>
    %8 = vector.extract_strided_slice %3 {offsets = [0, 0, 0], sizes = [8, 8, 32], strides = [1, 1, 1]} : vector<10x10x32xf32> to vector<8x8x32xf32>
    %9 = vector.shape_cast %8 : vector<8x8x32xf32> to vector<64x32xf32>
    %c0_6 = arith.constant 0 : index
    %c0_7 = arith.constant 0 : index
    %c0_8 = arith.constant 0 : index
    %c0_9 = arith.constant 0 : index
    %10 = vector.load %arg2[%c0_6, %c0_7, %c0_8, %c0_9] : memref<4x4x32x16xf32, #tpu.memory_space<vmem>>, vector<1x1x32x16xf32>
    %11 = vector.shape_cast %10 : vector<1x1x32x16xf32> to vector<32x16xf32>
    %cst_10 = arith.constant dense<0.000000e+00> : vector<64x16xf32>
    %12 = tpu.matmul %9, %11, %cst_10 {dimension_numbers = #tpu.dot_dimension_numbers<[1], [0], [0], [1], [0, 0, 1, 1], [], []>} : vector<64x32xf32>, vector<32x16xf32>, vector<64x16xf32> -> vector<64x16xf32>
    %13 = arith.addf %7, %12 : vector<64x16xf32>
    %14 = vector.extract_strided_slice %3 {offsets = [0, 1, 0], sizes = [8, 8, 32], strides = [1, 1, 1]} : vector<10x10x32xf32> to vector<8x8x32xf32>
    %15 = vector.shape_cast %14 : vector<8x8x32xf32> to vector<64x32xf32>
    %c0_11 = arith.constant 0 : index
    %c1 = arith.constant 1 : index
    %c0_12 = arith.constant 0 : index
    %c0_13 = arith.constant 0 : index
    %16 = vector.load %arg2[%c0_11, %c1, %c0_12, %c0_13] : memref<4x4x32x16xf32, #tpu.memory_space<vmem>>, vector<1x1x32x16xf32>
    %17 = vector.shape_cast %16 : vector<1x1x32x16xf32> to vector<32x16xf32>
    %cst_14 = arith.constant dense<0.000000e+00> : vector<64x16xf32>
    %18 = tpu.matmul %15, %17, %cst_14 {dimension_numbers = #tpu.dot_dimension_numbers<[1], [0], [0], [1], [0, 0, 1, 1], [], []>} : vector<64x32xf32>, vector<32x16xf32>, vector<64x16xf32> -> vector<64x16xf32>
    %19 = arith.addf %13, %18 : vector<64x16xf32>
    %20 = vector.extract_strided_slice %3 {offsets = [1, 0, 0], sizes = [8, 8, 32], strides = [1, 1, 1]} : vector<10x10x32xf32> to vector<8x8x32xf32>
    %21 = vector.shape_cast %20 : vector<8x8x32xf32> to vector<64x32xf32>
    %c0_15 = arith.constant 0 : index
    %c2 = arith.constant 2 : index
    %c0_16 = arith.constant 0 : index
    %c0_17 = arith.constant 0 : index
    %22 = vector.load %arg2[%c0_15, %c2, %c0_16, %c0_17] : memref<4x4x32x16xf32, #tpu.memory_space<vmem>>, vector<1x1x32x16xf32>
    %23 = vector.shape_cast %22 : vector<1x1x32x16xf32> to vector<32x16xf32>
    %cst_18 = arith.constant dense<0.000000e+00> : vector<64x16xf32>
    %24 = tpu.matmul %21, %23, %cst_18 {dimension_numbers = #tpu.dot_dimension_numbers<[1], [0], [0], [1], [0, 0, 1, 1], [], []>} : vector<64x32xf32>, vector<32x16xf32>, vector<64x16xf32> -> vector<64x16xf32>
    %25 = arith.addf %19, %24 : vector<64x16xf32>
    %26 = vector.extract_strided_slice %3 {offsets = [1, 1, 0], sizes = [8, 8, 32], strides = [1, 1, 1]} : vector<10x10x32xf32> to vector<8x8x32xf32>
    %27 = vector.shape_cast %26 : vector<8x8x32xf32> to vector<64x32xf32>
    %c0_19 = arith.constant 0 : index
    %c3 = arith.constant 3 : index
    %c0_20 = arith.constant 0 : index
    %c0_21 = arith.constant 0 : index
    %28 = vector.load %arg2[%c0_19, %c3, %c0_20, %c0_21] : memref<4x4x32x16xf32, #tpu.memory_space<vmem>>, vector<1x1x32x16xf32>
    %29 = vector.shape_cast %28 : vector<1x1x32x16xf32> to vector<32x16xf32>
    %cst_22 = arith.constant dense<0.000000e+00> : vector<64x16xf32>
    %30 = tpu.matmul %27, %29, %cst_22 {dimension_numbers = #tpu.dot_dimension_numbers<[1], [0], [0], [1], [0, 0, 1, 1], [], []>} : vector<64x32xf32>, vector<32x16xf32>, vector<64x16xf32> -> vector<64x16xf32>
    %31 = arith.addf %25, %30 : vector<64x16xf32>
    %c0_23 = arith.constant 0 : index
    %c0_24 = arith.constant 0 : index
    %c0_25 = arith.constant 0 : index
    %c0_26 = arith.constant 0 : index
    %32 = vector.load %arg4[%c0_23, %c0_24, %c0_25, %c0_26] : memref<1x4x64x16xf32, #tpu.memory_space<vmem>>, vector<1x1x64x16xf32>
    %33 = vector.shape_cast %32 : vector<1x1x64x16xf32> to vector<64x16xf32>
    %34 = vector.shape_cast %31 : vector<64x16xf32> to vector<1x1x64x16xf32>
    tpu.vector_store %arg4[%c0_23, %c0_24, %c0_25, %c0_26], %34 {strides = array<i32>} : memref<1x4x64x16xf32, #tpu.memory_space<vmem>>, vector<1x1x64x16xf32>,
    %cst_27 = arith.constant 0.000000e+00 : f32
    %35 = vector.broadcast %cst_27 : f32 to vector<64x16xf32>
    %c0_28 = arith.constant 0 : index
    %c0_29 = arith.constant 0 : index
    %36 = vector.load %arg3[%c0_28, %c0_29] : memref<1x16xf32, #tpu.memory_space<vmem>>, vector<1x16xf32>
    %37 = vector.broadcast %36 : vector<1x16xf32> to vector<64x16xf32>
    %38 = arith.addf %35, %37 : vector<64x16xf32>
    %39 = vector.extract_strided_slice %3 {offsets = [0, 1, 0], sizes = [8, 8, 32], strides = [1, 1, 1]} : vector<10x10x32xf32> to vector<8x8x32xf32>
    %40 = vector.shape_cast %39 : vector<8x8x32xf32> to vector<64x32xf32>
    %c1_30 = arith.constant 1 : index
    %c0_31 = arith.constant 0 : index
    %c0_32 = arith.constant 0 : index
    %c0_33 = arith.constant 0 : index
    %41 = vector.load %arg2[%c1_30, %c0_31, %c0_32, %c0_33] : memref<4x4x32x16xf32, #tpu.memory_space<vmem>>, vector<1x1x32x16xf32>
    %42 = vector.shape_cast %41 : vector<1x1x32x16xf32> to vector<32x16xf32>
    %cst_34 = arith.constant dense<0.000000e+00> : vector<64x16xf32>
    %43 = tpu.matmul %40, %42, %cst_34 {dimension_numbers = #tpu.dot_dimension_numbers<[1], [0], [0], [1], [0, 0, 1, 1], [], []>} : vector<64x32xf32>, vector<32x16xf32>, vector<64x16xf32> -> vector<64x16xf32>
    %44 = arith.addf %38, %43 : vector<64x16xf32>
    %45 = vector.extract_strided_slice %3 {offsets = [0, 2, 0], sizes = [8, 8, 32], strides = [1, 1, 1]} : vector<10x10x32xf32> to vector<8x8x32xf32>
    %46 = vector.shape_cast %45 : vector<8x8x32xf32> to vector<64x32xf32>
    %c1_35 = arith.constant 1 : index
    %c1_36 = arith.constant 1 : index
    %c0_37 = arith.constant 0 : index
    %c0_38 = arith.constant 0 : index
    %47 = vector.load %arg2[%c1_35, %c1_36, %c0_37, %c0_38] : memref<4x4x32x16xf32, #tpu.memory_space<vmem>>, vector<1x1x32x16xf32>
    %48 = vector.shape_cast %47 : vector<1x1x32x16xf32> to vector<32x16xf32>
    %cst_39 = arith.constant dense<0.000000e+00> : vector<64x16xf32>
    %49 = tpu.matmul %46, %48, %cst_39 {dimension_numbers = #tpu.dot_dimension_numbers<[1], [0], [0], [1], [0, 0, 1, 1], [], []>} : vector<64x32xf32>, vector<32x16xf32>, vector<64x16xf32> -> vector<64x16xf32>
    %50 = arith.addf %44, %49 : vector<64x16xf32>
    %51 = vector.extract_strided_slice %3 {offsets = [1, 1, 0], sizes = [8, 8, 32], strides = [1, 1, 1]} : vector<10x10x32xf32> to vector<8x8x32xf32>
    %52 = vector.shape_cast %51 : vector<8x8x32xf32> to vector<64x32xf32>
    %c1_40 = arith.constant 1 : index
    %c2_41 = arith.constant 2 : index
    %c0_42 = arith.constant 0 : index
    %c0_43 = arith.constant 0 : index
    %53 = vector.load %arg2[%c1_40, %c2_41, %c0_42, %c0_43] : memref<4x4x32x16xf32, #tpu.memory_space<vmem>>, vector<1x1x32x16xf32>
    %54 = vector.shape_cast %53 : vector<1x1x32x16xf32> to vector<32x16xf32>
    %cst_44 = arith.constant dense<0.000000e+00> : vector<64x16xf32>
    %55 = tpu.matmul %52, %54, %cst_44 {dimension_numbers = #tpu.dot_dimension_numbers<[1], [0], [0], [1], [0, 0, 1, 1], [], []>} : vector<64x32xf32>, vector<32x16xf32>, vector<64x16xf32> -> vector<64x16xf32>
    %56 = arith.addf %50, %55 : vector<64x16xf32>
    %57 = vector.extract_strided_slice %3 {offsets = [1, 2, 0], sizes = [8, 8, 32], strides = [1, 1, 1]} : vector<10x10x32xf32> to vector<8x8x32xf32>
    %58 = vector.shape_cast %57 : vector<8x8x32xf32> to vector<64x32xf32>
    %c1_45 = arith.constant 1 : index
    %c3_46 = arith.constant 3 : index
    %c0_47 = arith.constant 0 : index
    %c0_48 = arith.constant 0 : index
    %59 = vector.load %arg2[%c1_45, %c3_46, %c0_47, %c0_48] : memref<4x4x32x16xf32, #tpu.memory_space<vmem>>, vector<1x1x32x16xf32>
    %60 = vector.shape_cast %59 : vector<1x1x32x16xf32> to vector<32x16xf32>
    %cst_49 = arith.constant dense<0.000000e+00> : vector<64x16xf32>
    %61 = tpu.matmul %58, %60, %cst_49 {dimension_numbers = #tpu.dot_dimension_numbers<[1], [0], [0], [1], [0, 0, 1, 1], [], []>} : vector<64x32xf32>, vector<32x16xf32>, vector<64x16xf32> -> vector<64x16xf32>
    %62 = arith.addf %56, %61 : vector<64x16xf32>
    %c0_50 = arith.constant 0 : index
    %c1_51 = arith.constant 1 : index
    %c0_52 = arith.constant 0 : index
    %c0_53 = arith.constant 0 : index
    %63 = vector.load %arg4[%c0_50, %c1_51, %c0_52, %c0_53] : memref<1x4x64x16xf32, #tpu.memory_space<vmem>>, vector<1x1x64x16xf32>
    %64 = vector.shape_cast %63 : vector<1x1x64x16xf32> to vector<64x16xf32>
    %65 = vector.shape_cast %62 : vector<64x16xf32> to vector<1x1x64x16xf32>
    tpu.vector_store %arg4[%c0_50, %c1_51, %c0_52, %c0_53], %65 {strides = array<i32>} : memref<1x4x64x16xf32, #tpu.memory_space<vmem>>, vector<1x1x64x16xf32>,
    %cst_54 = arith.constant 0.000000e+00 : f32
    %66 = vector.broadcast %cst_54 : f32 to vector<64x16xf32>
    %c0_55 = arith.constant 0 : index
    %c0_56 = arith.constant 0 : index
    %67 = vector.load %arg3[%c0_55, %c0_56] : memref<1x16xf32, #tpu.memory_space<vmem>>, vector<1x16xf32>
    %68 = vector.broadcast %67 : vector<1x16xf32> to vector<64x16xf32>
    %69 = arith.addf %66, %68 : vector<64x16xf32>
    %70 = vector.extract_strided_slice %3 {offsets = [1, 0, 0], sizes = [8, 8, 32], strides = [1, 1, 1]} : vector<10x10x32xf32> to vector<8x8x32xf32>
    %71 = vector.shape_cast %70 : vector<8x8x32xf32> to vector<64x32xf32>
    %c2_57 = arith.constant 2 : index
    %c0_58 = arith.constant 0 : index
    %c0_59 = arith.constant 0 : index
    %c0_60 = arith.constant 0 : index
    %72 = vector.load %arg2[%c2_57, %c0_58, %c0_59, %c0_60] : memref<4x4x32x16xf32, #tpu.memory_space<vmem>>, vector<1x1x32x16xf32>
    %73 = vector.shape_cast %72 : vector<1x1x32x16xf32> to vector<32x16xf32>
    %cst_61 = arith.constant dense<0.000000e+00> : vector<64x16xf32>
    %74 = tpu.matmul %71, %73, %cst_61 {dimension_numbers = #tpu.dot_dimension_numbers<[1], [0], [0], [1], [0, 0, 1, 1], [], []>} : vector<64x32xf32>, vector<32x16xf32>, vector<64x16xf32> -> vector<64x16xf32>
    %75 = arith.addf %69, %74 : vector<64x16xf32>
    %76 = vector.extract_strided_slice %3 {offsets = [1, 1, 0], sizes = [8, 8, 32], strides = [1, 1, 1]} : vector<10x10x32xf32> to vector<8x8x32xf32>
    %77 = vector.shape_cast %76 : vector<8x8x32xf32> to vector<64x32xf32>
    %c2_62 = arith.constant 2 : index
    %c1_63 = arith.constant 1 : index
    %c0_64 = arith.constant 0 : index
    %c0_65 = arith.constant 0 : index
    %78 = vector.load %arg2[%c2_62, %c1_63, %c0_64, %c0_65] : memref<4x4x32x16xf32, #tpu.memory_space<vmem>>, vector<1x1x32x16xf32>
    %79 = vector.shape_cast %78 : vector<1x1x32x16xf32> to vector<32x16xf32>
    %cst_66 = arith.constant dense<0.000000e+00> : vector<64x16xf32>
    %80 = tpu.matmul %77, %79, %cst_66 {dimension_numbers = #tpu.dot_dimension_numbers<[1], [0], [0], [1], [0, 0, 1, 1], [], []>} : vector<64x32xf32>, vector<32x16xf32>, vector<64x16xf32> -> vector<64x16xf32>
    %81 = arith.addf %75, %80 : vector<64x16xf32>
    %82 = vector.extract_strided_slice %3 {offsets = [2, 0, 0], sizes = [8, 8, 32], strides = [1, 1, 1]} : vector<10x10x32xf32> to vector<8x8x32xf32>
    %83 = vector.shape_cast %82 : vector<8x8x32xf32> to vector<64x32xf32>
    %c2_67 = arith.constant 2 : index
    %c2_68 = arith.constant 2 : index
    %c0_69 = arith.constant 0 : index
    %c0_70 = arith.constant 0 : index
    %84 = vector.load %arg2[%c2_67, %c2_68, %c0_69, %c0_70] : memref<4x4x32x16xf32, #tpu.memory_space<vmem>>, vector<1x1x32x16xf32>
    %85 = vector.shape_cast %84 : vector<1x1x32x16xf32> to vector<32x16xf32>
    %cst_71 = arith.constant dense<0.000000e+00> : vector<64x16xf32>
    %86 = tpu.matmul %83, %85, %cst_71 {dimension_numbers = #tpu.dot_dimension_numbers<[1], [0], [0], [1], [0, 0, 1, 1], [], []>} : vector<64x32xf32>, vector<32x16xf32>, vector<64x16xf32> -> vector<64x16xf32>
    %87 = arith.addf %81, %86 : vector<64x16xf32>
    %88 = vector.extract_strided_slice %3 {offsets = [2, 1, 0], sizes = [8, 8, 32], strides = [1, 1, 1]} : vector<10x10x32xf32> to vector<8x8x32xf32>
    %89 = vector.shape_cast %88 : vector<8x8x32xf32> to vector<64x32xf32>
    %c2_72 = arith.constant 2 : index
    %c3_73 = arith.constant 3 : index
    %c0_74 = arith.constant 0 : index
    %c0_75 = arith.constant 0 : index
    %90 = vector.load %arg2[%c2_72, %c3_73, %c0_74, %c0_75] : memref<4x4x32x16xf32, #tpu.memory_space<vmem>>, vector<1x1x32x16xf32>
    %91 = vector.shape_cast %90 : vector<1x1x32x16xf32> to vector<32x16xf32>
    %cst_76 = arith.constant dense<0.000000e+00> : vector<64x16xf32>
    %92 = tpu.matmul %89, %91, %cst_76 {dimension_numbers = #tpu.dot_dimension_numbers<[1], [0], [0], [1], [0, 0, 1, 1], [], []>} : vector<64x32xf32>, vector<32x16xf32>, vector<64x16xf32> -> vector<64x16xf32>
    %93 = arith.addf %87, %92 : vector<64x16xf32>
    %c0_77 = arith.constant 0 : index
    %c2_78 = arith.constant 2 : index
    %c0_79 = arith.constant 0 : index
    %c0_80 = arith.constant 0 : index
    %94 = vector.load %arg4[%c0_77, %c2_78, %c0_79, %c0_80] : memref<1x4x64x16xf32, #tpu.memory_space<vmem>>, vector<1x1x64x16xf32>
    %95 = vector.shape_cast %94 : vector<1x1x64x16xf32> to vector<64x16xf32>
    %96 = vector.shape_cast %93 : vector<64x16xf32> to vector<1x1x64x16xf32>
    tpu.vector_store %arg4[%c0_77, %c2_78, %c0_79, %c0_80], %96 {strides = array<i32>} : memref<1x4x64x16xf32, #tpu.memory_space<vmem>>, vector<1x1x64x16xf32>,
    %cst_81 = arith.constant 0.000000e+00 : f32
    %97 = vector.broadcast %cst_81 : f32 to vector<64x16xf32>
    %c0_82 = arith.constant 0 : index
    %c0_83 = arith.constant 0 : index
    %98 = vector.load %arg3[%c0_82, %c0_83] : memref<1x16xf32, #tpu.memory_space<vmem>>, vector<1x16xf32>
    %99 = vector.broadcast %98 : vector<1x16xf32> to vector<64x16xf32>
    %100 = arith.addf %97, %99 : vector<64x16xf32>
    %101 = vector.extract_strided_slice %3 {offsets = [1, 1, 0], sizes = [8, 8, 32], strides = [1, 1, 1]} : vector<10x10x32xf32> to vector<8x8x32xf32>
    %102 = vector.shape_cast %101 : vector<8x8x32xf32> to vector<64x32xf32>
    %c3_84 = arith.constant 3 : index
    %c0_85 = arith.constant 0 : index
    %c0_86 = arith.constant 0 : index
    %c0_87 = arith.constant 0 : index
    %103 = vector.load %arg2[%c3_84, %c0_85, %c0_86, %c0_87] : memref<4x4x32x16xf32, #tpu.memory_space<vmem>>, vector<1x1x32x16xf32>
    %104 = vector.shape_cast %103 : vector<1x1x32x16xf32> to vector<32x16xf32>
    %cst_88 = arith.constant dense<0.000000e+00> : vector<64x16xf32>
    %105 = tpu.matmul %102, %104, %cst_88 {dimension_numbers = #tpu.dot_dimension_numbers<[1], [0], [0], [1], [0, 0, 1, 1], [], []>} : vector<64x32xf32>, vector<32x16xf32>, vector<64x16xf32> -> vector<64x16xf32>
    %106 = arith.addf %100, %105 : vector<64x16xf32>
    %107 = vector.extract_strided_slice %3 {offsets = [1, 2, 0], sizes = [8, 8, 32], strides = [1, 1, 1]} : vector<10x10x32xf32> to vector<8x8x32xf32>
    %108 = vector.shape_cast %107 : vector<8x8x32xf32> to vector<64x32xf32>
    %c3_89 = arith.constant 3 : index
    %c1_90 = arith.constant 1 : index
    %c0_91 = arith.constant 0 : index
    %c0_92 = arith.constant 0 : index
    %109 = vector.load %arg2[%c3_89, %c1_90, %c0_91, %c0_92] : memref<4x4x32x16xf32, #tpu.memory_space<vmem>>, vector<1x1x32x16xf32>
    %110 = vector.shape_cast %109 : vector<1x1x32x16xf32> to vector<32x16xf32>
    %cst_93 = arith.constant dense<0.000000e+00> : vector<64x16xf32>
    %111 = tpu.matmul %108, %110, %cst_93 {dimension_numbers = #tpu.dot_dimension_numbers<[1], [0], [0], [1], [0, 0, 1, 1], [], []>} : vector<64x32xf32>, vector<32x16xf32>, vector<64x16xf32> -> vector<64x16xf32>
    %112 = arith.addf %106, %111 : vector<64x16xf32>
    %113 = vector.extract_strided_slice %3 {offsets = [2, 1, 0], sizes = [8, 8, 32], strides = [1, 1, 1]} : vector<10x10x32xf32> to vector<8x8x32xf32>
    %114 = vector.shape_cast %113 : vector<8x8x32xf32> to vector<64x32xf32>
    %c3_94 = arith.constant 3 : index
    %c2_95 = arith.constant 2 : index
    %c0_96 = arith.constant 0 : index
    %c0_97 = arith.constant 0 : index
    %115 = vector.load %arg2[%c3_94, %c2_95, %c0_96, %c0_97] : memref<4x4x32x16xf32, #tpu.memory_space<vmem>>, vector<1x1x32x16xf32>
    %116 = vector.shape_cast %115 : vector<1x1x32x16xf32> to vector<32x16xf32>
    %cst_98 = arith.constant dense<0.000000e+00> : vector<64x16xf32>
    %117 = tpu.matmul %114, %116, %cst_98 {dimension_numbers = #tpu.dot_dimension_numbers<[1], [0], [0], [1], [0, 0, 1, 1], [], []>} : vector<64x32xf32>, vector<32x16xf32>, vector<64x16xf32> -> vector<64x16xf32>
    %118 = arith.addf %112, %117 : vector<64x16xf32>
    %119 = vector.extract_strided_slice %3 {offsets = [2, 2, 0], sizes = [8, 8, 32], strides = [1, 1, 1]} : vector<10x10x32xf32> to vector<8x8x32xf32>
    %120 = vector.shape_cast %119 : vector<8x8x32xf32> to vector<64x32xf32>
    %c3_99 = arith.constant 3 : index
    %c3_100 = arith.constant 3 : index
    %c0_101 = arith.constant 0 : index
    %c0_102 = arith.constant 0 : index
    %121 = vector.load %arg2[%c3_99, %c3_100, %c0_101, %c0_102] : memref<4x4x32x16xf32, #tpu.memory_space<vmem>>, vector<1x1x32x16xf32>
    %122 = vector.shape_cast %121 : vector<1x1x32x16xf32> to vector<32x16xf32>
    %cst_103 = arith.constant dense<0.000000e+00> : vector<64x16xf32>
    %123 = tpu.matmul %120, %122, %cst_103 {dimension_numbers = #tpu.dot_dimension_numbers<[1], [0], [0], [1], [0, 0, 1, 1], [], []>} : vector<64x32xf32>, vector<32x16xf32>, vector<64x16xf32> -> vector<64x16xf32>
    %124 = arith.addf %118, %123 : vector<64x16xf32>
    %c0_104 = arith.constant 0 : index
    %c3_105 = arith.constant 3 : index
    %c0_106 = arith.constant 0 : index
    %c0_107 = arith.constant 0 : index
    %125 = vector.load %arg4[%c0_104, %c3_105, %c0_106, %c0_107] : memref<1x4x64x16xf32, #tpu.memory_space<vmem>>, vector<1x1x64x16xf32>
    %126 = vector.shape_cast %125 : vector<1x1x64x16xf32> to vector<64x16xf32>
    %127 = vector.shape_cast %124 : vector<64x16xf32> to vector<1x1x64x16xf32>
    tpu.vector_store %arg4[%c0_104, %c3_105, %c0_106, %c0_107], %127 {strides = array<i32>} : memref<1x4x64x16xf32, #tpu.memory_space<vmem>>, vector<1x1x64x16xf32>,
    return
  }
  func.func @transform_0(%arg0: i32) -> (i32, i32, i32, i32) {
    %c0_i32 = arith.constant 0 : i32
    %c0_i32_0 = arith.constant 0 : i32
    %c0_i32_1 = arith.constant 0 : i32
    %c0_i32_2 = arith.constant 0 : i32
    return %arg0, %c0_i32, %c0_i32_0, %c0_i32_1 : i32, i32, i32, i32
  }
  func.func @transform_1(%arg0: i32) -> (i32, i32, i32, i32) {
    %c0_i32 = arith.constant 0 : i32
    %c0_i32_0 = arith.constant 0 : i32
    %c0_i32_1 = arith.constant 0 : i32
    %c0_i32_2 = arith.constant 0 : i32
    %c0_i32_3 = arith.constant 0 : i32
    return %c0_i32, %c0_i32_0, %c0_i32_1, %c0_i32_2 : i32, i32, i32, i32
  }
  func.func @transform_2(%arg0: i32) -> (i32, i32) {
    %c0_i32 = arith.constant 0 : i32
    %c0_i32_0 = arith.constant 0 : i32
    %c0_i32_1 = arith.constant 0 : i32
    return %c0_i32, %c0_i32_0 : i32, i32
  }
  func.func @transform_3(%arg0: i32) -> (i32, i32, i32, i32) {
    %c0_i32 = arith.constant 0 : i32
    %c0_i32_0 = arith.constant 0 : i32
    %c0_i32_1 = arith.constant 0 : i32
    %c0_i32_2 = arith.constant 0 : i32
    return %arg0, %c0_i32, %c0_i32_0, %c0_i32_1 : i32, i32, i32, i32
  }
}

module attributes {stable_mosaic.version = 11 : i64} {
  func.func @_deconv_subpixel_kernel(%arg0: i32, %arg1: memref<1x18x18x16xf32, #tpu.memory_space<vmem>>, %arg2: memref<4x4x16x3xf32, #tpu.memory_space<vmem>>, %arg3: memref<1x3xf32, #tpu.memory_space<vmem>>, %arg4: memref<1x4x256x3xf32, #tpu.memory_space<vmem>>) attributes {dimension_semantics = [#tpu.dimension_semantics<parallel>], iteration_bounds = array<i64: 2>, scalar_prefetch = 0 : i64, scratch_operands = 0 : i64, tpu.core_type = #tpu.core_type<tc>, window_params = [{transform_indices = @transform_0, window_bounds = array<i64: 1, 18, 18, 16>}, {pipeline_mode = #tpu.pipeline_mode<synchronous>, transform_indices = @transform_1, window_bounds = array<i64: 4, 4, 16, 3>}, {pipeline_mode = #tpu.pipeline_mode<synchronous>, transform_indices = @transform_2, window_bounds = array<i64: 1, 3>}, {transform_indices = @transform_3, window_bounds = array<i64: 1, 4, 256, 3>}]} {
    %c0 = arith.constant 0 : index
    %c0_0 = arith.constant 0 : index
    %c0_1 = arith.constant 0 : index
    %c0_2 = arith.constant 0 : index
    %0 = vector.load %arg1[%c0, %c0_0, %c0_1, %c0_2] : memref<1x18x18x16xf32, #tpu.memory_space<vmem>>, vector<1x18x18x16xf32>
    %1 = vector.shape_cast %0 : vector<1x18x18x16xf32> to vector<18x18x16xf32>
    %cst = arith.constant 0.000000e+00 : f32
    %2 = vector.broadcast %cst : f32 to vector<18x18x16xf32>
    %3 = arith.maximumf %1, %2 : vector<18x18x16xf32>
    %cst_3 = arith.constant 0.000000e+00 : f32
    %4 = vector.broadcast %cst_3 : f32 to vector<256x3xf32>
    %c0_4 = arith.constant 0 : index
    %c0_5 = arith.constant 0 : index
    %5 = vector.load %arg3[%c0_4, %c0_5] : memref<1x3xf32, #tpu.memory_space<vmem>>, vector<1x3xf32>
    %6 = vector.broadcast %5 : vector<1x3xf32> to vector<256x3xf32>
    %7 = arith.addf %4, %6 : vector<256x3xf32>
    %8 = vector.extract_strided_slice %3 {offsets = [0, 0, 0], sizes = [16, 16, 16], strides = [1, 1, 1]} : vector<18x18x16xf32> to vector<16x16x16xf32>
    %9 = vector.shape_cast %8 : vector<16x16x16xf32> to vector<256x16xf32>
    %c0_6 = arith.constant 0 : index
    %c0_7 = arith.constant 0 : index
    %c0_8 = arith.constant 0 : index
    %c0_9 = arith.constant 0 : index
    %10 = vector.load %arg2[%c0_6, %c0_7, %c0_8, %c0_9] : memref<4x4x16x3xf32, #tpu.memory_space<vmem>>, vector<1x1x16x3xf32>
    %11 = vector.shape_cast %10 : vector<1x1x16x3xf32> to vector<16x3xf32>
    %cst_10 = arith.constant dense<0.000000e+00> : vector<256x3xf32>
    %12 = tpu.matmul %9, %11, %cst_10 {dimension_numbers = #tpu.dot_dimension_numbers<[1], [0], [0], [1], [0, 0, 1, 1], [], []>} : vector<256x16xf32>, vector<16x3xf32>, vector<256x3xf32> -> vector<256x3xf32>
    %13 = arith.addf %7, %12 : vector<256x3xf32>
    %14 = vector.extract_strided_slice %3 {offsets = [0, 1, 0], sizes = [16, 16, 16], strides = [1, 1, 1]} : vector<18x18x16xf32> to vector<16x16x16xf32>
    %15 = vector.shape_cast %14 : vector<16x16x16xf32> to vector<256x16xf32>
    %c0_11 = arith.constant 0 : index
    %c1 = arith.constant 1 : index
    %c0_12 = arith.constant 0 : index
    %c0_13 = arith.constant 0 : index
    %16 = vector.load %arg2[%c0_11, %c1, %c0_12, %c0_13] : memref<4x4x16x3xf32, #tpu.memory_space<vmem>>, vector<1x1x16x3xf32>
    %17 = vector.shape_cast %16 : vector<1x1x16x3xf32> to vector<16x3xf32>
    %cst_14 = arith.constant dense<0.000000e+00> : vector<256x3xf32>
    %18 = tpu.matmul %15, %17, %cst_14 {dimension_numbers = #tpu.dot_dimension_numbers<[1], [0], [0], [1], [0, 0, 1, 1], [], []>} : vector<256x16xf32>, vector<16x3xf32>, vector<256x3xf32> -> vector<256x3xf32>
    %19 = arith.addf %13, %18 : vector<256x3xf32>
    %20 = vector.extract_strided_slice %3 {offsets = [1, 0, 0], sizes = [16, 16, 16], strides = [1, 1, 1]} : vector<18x18x16xf32> to vector<16x16x16xf32>
    %21 = vector.shape_cast %20 : vector<16x16x16xf32> to vector<256x16xf32>
    %c0_15 = arith.constant 0 : index
    %c2 = arith.constant 2 : index
    %c0_16 = arith.constant 0 : index
    %c0_17 = arith.constant 0 : index
    %22 = vector.load %arg2[%c0_15, %c2, %c0_16, %c0_17] : memref<4x4x16x3xf32, #tpu.memory_space<vmem>>, vector<1x1x16x3xf32>
    %23 = vector.shape_cast %22 : vector<1x1x16x3xf32> to vector<16x3xf32>
    %cst_18 = arith.constant dense<0.000000e+00> : vector<256x3xf32>
    %24 = tpu.matmul %21, %23, %cst_18 {dimension_numbers = #tpu.dot_dimension_numbers<[1], [0], [0], [1], [0, 0, 1, 1], [], []>} : vector<256x16xf32>, vector<16x3xf32>, vector<256x3xf32> -> vector<256x3xf32>
    %25 = arith.addf %19, %24 : vector<256x3xf32>
    %26 = vector.extract_strided_slice %3 {offsets = [1, 1, 0], sizes = [16, 16, 16], strides = [1, 1, 1]} : vector<18x18x16xf32> to vector<16x16x16xf32>
    %27 = vector.shape_cast %26 : vector<16x16x16xf32> to vector<256x16xf32>
    %c0_19 = arith.constant 0 : index
    %c3 = arith.constant 3 : index
    %c0_20 = arith.constant 0 : index
    %c0_21 = arith.constant 0 : index
    %28 = vector.load %arg2[%c0_19, %c3, %c0_20, %c0_21] : memref<4x4x16x3xf32, #tpu.memory_space<vmem>>, vector<1x1x16x3xf32>
    %29 = vector.shape_cast %28 : vector<1x1x16x3xf32> to vector<16x3xf32>
    %cst_22 = arith.constant dense<0.000000e+00> : vector<256x3xf32>
    %30 = tpu.matmul %27, %29, %cst_22 {dimension_numbers = #tpu.dot_dimension_numbers<[1], [0], [0], [1], [0, 0, 1, 1], [], []>} : vector<256x16xf32>, vector<16x3xf32>, vector<256x3xf32> -> vector<256x3xf32>
    %31 = arith.addf %25, %30 : vector<256x3xf32>
    %c0_23 = arith.constant 0 : index
    %c0_24 = arith.constant 0 : index
    %c0_25 = arith.constant 0 : index
    %c0_26 = arith.constant 0 : index
    %32 = vector.load %arg4[%c0_23, %c0_24, %c0_25, %c0_26] : memref<1x4x256x3xf32, #tpu.memory_space<vmem>>, vector<1x1x256x3xf32>
    %33 = vector.shape_cast %32 : vector<1x1x256x3xf32> to vector<256x3xf32>
    %34 = vector.shape_cast %31 : vector<256x3xf32> to vector<1x1x256x3xf32>
    tpu.vector_store %arg4[%c0_23, %c0_24, %c0_25, %c0_26], %34 {strides = array<i32>} : memref<1x4x256x3xf32, #tpu.memory_space<vmem>>, vector<1x1x256x3xf32>,
    %cst_27 = arith.constant 0.000000e+00 : f32
    %35 = vector.broadcast %cst_27 : f32 to vector<256x3xf32>
    %c0_28 = arith.constant 0 : index
    %c0_29 = arith.constant 0 : index
    %36 = vector.load %arg3[%c0_28, %c0_29] : memref<1x3xf32, #tpu.memory_space<vmem>>, vector<1x3xf32>
    %37 = vector.broadcast %36 : vector<1x3xf32> to vector<256x3xf32>
    %38 = arith.addf %35, %37 : vector<256x3xf32>
    %39 = vector.extract_strided_slice %3 {offsets = [0, 1, 0], sizes = [16, 16, 16], strides = [1, 1, 1]} : vector<18x18x16xf32> to vector<16x16x16xf32>
    %40 = vector.shape_cast %39 : vector<16x16x16xf32> to vector<256x16xf32>
    %c1_30 = arith.constant 1 : index
    %c0_31 = arith.constant 0 : index
    %c0_32 = arith.constant 0 : index
    %c0_33 = arith.constant 0 : index
    %41 = vector.load %arg2[%c1_30, %c0_31, %c0_32, %c0_33] : memref<4x4x16x3xf32, #tpu.memory_space<vmem>>, vector<1x1x16x3xf32>
    %42 = vector.shape_cast %41 : vector<1x1x16x3xf32> to vector<16x3xf32>
    %cst_34 = arith.constant dense<0.000000e+00> : vector<256x3xf32>
    %43 = tpu.matmul %40, %42, %cst_34 {dimension_numbers = #tpu.dot_dimension_numbers<[1], [0], [0], [1], [0, 0, 1, 1], [], []>} : vector<256x16xf32>, vector<16x3xf32>, vector<256x3xf32> -> vector<256x3xf32>
    %44 = arith.addf %38, %43 : vector<256x3xf32>
    %45 = vector.extract_strided_slice %3 {offsets = [0, 2, 0], sizes = [16, 16, 16], strides = [1, 1, 1]} : vector<18x18x16xf32> to vector<16x16x16xf32>
    %46 = vector.shape_cast %45 : vector<16x16x16xf32> to vector<256x16xf32>
    %c1_35 = arith.constant 1 : index
    %c1_36 = arith.constant 1 : index
    %c0_37 = arith.constant 0 : index
    %c0_38 = arith.constant 0 : index
    %47 = vector.load %arg2[%c1_35, %c1_36, %c0_37, %c0_38] : memref<4x4x16x3xf32, #tpu.memory_space<vmem>>, vector<1x1x16x3xf32>
    %48 = vector.shape_cast %47 : vector<1x1x16x3xf32> to vector<16x3xf32>
    %cst_39 = arith.constant dense<0.000000e+00> : vector<256x3xf32>
    %49 = tpu.matmul %46, %48, %cst_39 {dimension_numbers = #tpu.dot_dimension_numbers<[1], [0], [0], [1], [0, 0, 1, 1], [], []>} : vector<256x16xf32>, vector<16x3xf32>, vector<256x3xf32> -> vector<256x3xf32>
    %50 = arith.addf %44, %49 : vector<256x3xf32>
    %51 = vector.extract_strided_slice %3 {offsets = [1, 1, 0], sizes = [16, 16, 16], strides = [1, 1, 1]} : vector<18x18x16xf32> to vector<16x16x16xf32>
    %52 = vector.shape_cast %51 : vector<16x16x16xf32> to vector<256x16xf32>
    %c1_40 = arith.constant 1 : index
    %c2_41 = arith.constant 2 : index
    %c0_42 = arith.constant 0 : index
    %c0_43 = arith.constant 0 : index
    %53 = vector.load %arg2[%c1_40, %c2_41, %c0_42, %c0_43] : memref<4x4x16x3xf32, #tpu.memory_space<vmem>>, vector<1x1x16x3xf32>
    %54 = vector.shape_cast %53 : vector<1x1x16x3xf32> to vector<16x3xf32>
    %cst_44 = arith.constant dense<0.000000e+00> : vector<256x3xf32>
    %55 = tpu.matmul %52, %54, %cst_44 {dimension_numbers = #tpu.dot_dimension_numbers<[1], [0], [0], [1], [0, 0, 1, 1], [], []>} : vector<256x16xf32>, vector<16x3xf32>, vector<256x3xf32> -> vector<256x3xf32>
    %56 = arith.addf %50, %55 : vector<256x3xf32>
    %57 = vector.extract_strided_slice %3 {offsets = [1, 2, 0], sizes = [16, 16, 16], strides = [1, 1, 1]} : vector<18x18x16xf32> to vector<16x16x16xf32>
    %58 = vector.shape_cast %57 : vector<16x16x16xf32> to vector<256x16xf32>
    %c1_45 = arith.constant 1 : index
    %c3_46 = arith.constant 3 : index
    %c0_47 = arith.constant 0 : index
    %c0_48 = arith.constant 0 : index
    %59 = vector.load %arg2[%c1_45, %c3_46, %c0_47, %c0_48] : memref<4x4x16x3xf32, #tpu.memory_space<vmem>>, vector<1x1x16x3xf32>
    %60 = vector.shape_cast %59 : vector<1x1x16x3xf32> to vector<16x3xf32>
    %cst_49 = arith.constant dense<0.000000e+00> : vector<256x3xf32>
    %61 = tpu.matmul %58, %60, %cst_49 {dimension_numbers = #tpu.dot_dimension_numbers<[1], [0], [0], [1], [0, 0, 1, 1], [], []>} : vector<256x16xf32>, vector<16x3xf32>, vector<256x3xf32> -> vector<256x3xf32>
    %62 = arith.addf %56, %61 : vector<256x3xf32>
    %c0_50 = arith.constant 0 : index
    %c1_51 = arith.constant 1 : index
    %c0_52 = arith.constant 0 : index
    %c0_53 = arith.constant 0 : index
    %63 = vector.load %arg4[%c0_50, %c1_51, %c0_52, %c0_53] : memref<1x4x256x3xf32, #tpu.memory_space<vmem>>, vector<1x1x256x3xf32>
    %64 = vector.shape_cast %63 : vector<1x1x256x3xf32> to vector<256x3xf32>
    %65 = vector.shape_cast %62 : vector<256x3xf32> to vector<1x1x256x3xf32>
    tpu.vector_store %arg4[%c0_50, %c1_51, %c0_52, %c0_53], %65 {strides = array<i32>} : memref<1x4x256x3xf32, #tpu.memory_space<vmem>>, vector<1x1x256x3xf32>,
    %cst_54 = arith.constant 0.000000e+00 : f32
    %66 = vector.broadcast %cst_54 : f32 to vector<256x3xf32>
    %c0_55 = arith.constant 0 : index
    %c0_56 = arith.constant 0 : index
    %67 = vector.load %arg3[%c0_55, %c0_56] : memref<1x3xf32, #tpu.memory_space<vmem>>, vector<1x3xf32>
    %68 = vector.broadcast %67 : vector<1x3xf32> to vector<256x3xf32>
    %69 = arith.addf %66, %68 : vector<256x3xf32>
    %70 = vector.extract_strided_slice %3 {offsets = [1, 0, 0], sizes = [16, 16, 16], strides = [1, 1, 1]} : vector<18x18x16xf32> to vector<16x16x16xf32>
    %71 = vector.shape_cast %70 : vector<16x16x16xf32> to vector<256x16xf32>
    %c2_57 = arith.constant 2 : index
    %c0_58 = arith.constant 0 : index
    %c0_59 = arith.constant 0 : index
    %c0_60 = arith.constant 0 : index
    %72 = vector.load %arg2[%c2_57, %c0_58, %c0_59, %c0_60] : memref<4x4x16x3xf32, #tpu.memory_space<vmem>>, vector<1x1x16x3xf32>
    %73 = vector.shape_cast %72 : vector<1x1x16x3xf32> to vector<16x3xf32>
    %cst_61 = arith.constant dense<0.000000e+00> : vector<256x3xf32>
    %74 = tpu.matmul %71, %73, %cst_61 {dimension_numbers = #tpu.dot_dimension_numbers<[1], [0], [0], [1], [0, 0, 1, 1], [], []>} : vector<256x16xf32>, vector<16x3xf32>, vector<256x3xf32> -> vector<256x3xf32>
    %75 = arith.addf %69, %74 : vector<256x3xf32>
    %76 = vector.extract_strided_slice %3 {offsets = [1, 1, 0], sizes = [16, 16, 16], strides = [1, 1, 1]} : vector<18x18x16xf32> to vector<16x16x16xf32>
    %77 = vector.shape_cast %76 : vector<16x16x16xf32> to vector<256x16xf32>
    %c2_62 = arith.constant 2 : index
    %c1_63 = arith.constant 1 : index
    %c0_64 = arith.constant 0 : index
    %c0_65 = arith.constant 0 : index
    %78 = vector.load %arg2[%c2_62, %c1_63, %c0_64, %c0_65] : memref<4x4x16x3xf32, #tpu.memory_space<vmem>>, vector<1x1x16x3xf32>
    %79 = vector.shape_cast %78 : vector<1x1x16x3xf32> to vector<16x3xf32>
    %cst_66 = arith.constant dense<0.000000e+00> : vector<256x3xf32>
    %80 = tpu.matmul %77, %79, %cst_66 {dimension_numbers = #tpu.dot_dimension_numbers<[1], [0], [0], [1], [0, 0, 1, 1], [], []>} : vector<256x16xf32>, vector<16x3xf32>, vector<256x3xf32> -> vector<256x3xf32>
    %81 = arith.addf %75, %80 : vector<256x3xf32>
    %82 = vector.extract_strided_slice %3 {offsets = [2, 0, 0], sizes = [16, 16, 16], strides = [1, 1, 1]} : vector<18x18x16xf32> to vector<16x16x16xf32>
    %83 = vector.shape_cast %82 : vector<16x16x16xf32> to vector<256x16xf32>
    %c2_67 = arith.constant 2 : index
    %c2_68 = arith.constant 2 : index
    %c0_69 = arith.constant 0 : index
    %c0_70 = arith.constant 0 : index
    %84 = vector.load %arg2[%c2_67, %c2_68, %c0_69, %c0_70] : memref<4x4x16x3xf32, #tpu.memory_space<vmem>>, vector<1x1x16x3xf32>
    %85 = vector.shape_cast %84 : vector<1x1x16x3xf32> to vector<16x3xf32>
    %cst_71 = arith.constant dense<0.000000e+00> : vector<256x3xf32>
    %86 = tpu.matmul %83, %85, %cst_71 {dimension_numbers = #tpu.dot_dimension_numbers<[1], [0], [0], [1], [0, 0, 1, 1], [], []>} : vector<256x16xf32>, vector<16x3xf32>, vector<256x3xf32> -> vector<256x3xf32>
    %87 = arith.addf %81, %86 : vector<256x3xf32>
    %88 = vector.extract_strided_slice %3 {offsets = [2, 1, 0], sizes = [16, 16, 16], strides = [1, 1, 1]} : vector<18x18x16xf32> to vector<16x16x16xf32>
    %89 = vector.shape_cast %88 : vector<16x16x16xf32> to vector<256x16xf32>
    %c2_72 = arith.constant 2 : index
    %c3_73 = arith.constant 3 : index
    %c0_74 = arith.constant 0 : index
    %c0_75 = arith.constant 0 : index
    %90 = vector.load %arg2[%c2_72, %c3_73, %c0_74, %c0_75] : memref<4x4x16x3xf32, #tpu.memory_space<vmem>>, vector<1x1x16x3xf32>
    %91 = vector.shape_cast %90 : vector<1x1x16x3xf32> to vector<16x3xf32>
    %cst_76 = arith.constant dense<0.000000e+00> : vector<256x3xf32>
    %92 = tpu.matmul %89, %91, %cst_76 {dimension_numbers = #tpu.dot_dimension_numbers<[1], [0], [0], [1], [0, 0, 1, 1], [], []>} : vector<256x16xf32>, vector<16x3xf32>, vector<256x3xf32> -> vector<256x3xf32>
    %93 = arith.addf %87, %92 : vector<256x3xf32>
    %c0_77 = arith.constant 0 : index
    %c2_78 = arith.constant 2 : index
    %c0_79 = arith.constant 0 : index
    %c0_80 = arith.constant 0 : index
    %94 = vector.load %arg4[%c0_77, %c2_78, %c0_79, %c0_80] : memref<1x4x256x3xf32, #tpu.memory_space<vmem>>, vector<1x1x256x3xf32>
    %95 = vector.shape_cast %94 : vector<1x1x256x3xf32> to vector<256x3xf32>
    %96 = vector.shape_cast %93 : vector<256x3xf32> to vector<1x1x256x3xf32>
    tpu.vector_store %arg4[%c0_77, %c2_78, %c0_79, %c0_80], %96 {strides = array<i32>} : memref<1x4x256x3xf32, #tpu.memory_space<vmem>>, vector<1x1x256x3xf32>,
    %cst_81 = arith.constant 0.000000e+00 : f32
    %97 = vector.broadcast %cst_81 : f32 to vector<256x3xf32>
    %c0_82 = arith.constant 0 : index
    %c0_83 = arith.constant 0 : index
    %98 = vector.load %arg3[%c0_82, %c0_83] : memref<1x3xf32, #tpu.memory_space<vmem>>, vector<1x3xf32>
    %99 = vector.broadcast %98 : vector<1x3xf32> to vector<256x3xf32>
    %100 = arith.addf %97, %99 : vector<256x3xf32>
    %101 = vector.extract_strided_slice %3 {offsets = [1, 1, 0], sizes = [16, 16, 16], strides = [1, 1, 1]} : vector<18x18x16xf32> to vector<16x16x16xf32>
    %102 = vector.shape_cast %101 : vector<16x16x16xf32> to vector<256x16xf32>
    %c3_84 = arith.constant 3 : index
    %c0_85 = arith.constant 0 : index
    %c0_86 = arith.constant 0 : index
    %c0_87 = arith.constant 0 : index
    %103 = vector.load %arg2[%c3_84, %c0_85, %c0_86, %c0_87] : memref<4x4x16x3xf32, #tpu.memory_space<vmem>>, vector<1x1x16x3xf32>
    %104 = vector.shape_cast %103 : vector<1x1x16x3xf32> to vector<16x3xf32>
    %cst_88 = arith.constant dense<0.000000e+00> : vector<256x3xf32>
    %105 = tpu.matmul %102, %104, %cst_88 {dimension_numbers = #tpu.dot_dimension_numbers<[1], [0], [0], [1], [0, 0, 1, 1], [], []>} : vector<256x16xf32>, vector<16x3xf32>, vector<256x3xf32> -> vector<256x3xf32>
    %106 = arith.addf %100, %105 : vector<256x3xf32>
    %107 = vector.extract_strided_slice %3 {offsets = [1, 2, 0], sizes = [16, 16, 16], strides = [1, 1, 1]} : vector<18x18x16xf32> to vector<16x16x16xf32>
    %108 = vector.shape_cast %107 : vector<16x16x16xf32> to vector<256x16xf32>
    %c3_89 = arith.constant 3 : index
    %c1_90 = arith.constant 1 : index
    %c0_91 = arith.constant 0 : index
    %c0_92 = arith.constant 0 : index
    %109 = vector.load %arg2[%c3_89, %c1_90, %c0_91, %c0_92] : memref<4x4x16x3xf32, #tpu.memory_space<vmem>>, vector<1x1x16x3xf32>
    %110 = vector.shape_cast %109 : vector<1x1x16x3xf32> to vector<16x3xf32>
    %cst_93 = arith.constant dense<0.000000e+00> : vector<256x3xf32>
    %111 = tpu.matmul %108, %110, %cst_93 {dimension_numbers = #tpu.dot_dimension_numbers<[1], [0], [0], [1], [0, 0, 1, 1], [], []>} : vector<256x16xf32>, vector<16x3xf32>, vector<256x3xf32> -> vector<256x3xf32>
    %112 = arith.addf %106, %111 : vector<256x3xf32>
    %113 = vector.extract_strided_slice %3 {offsets = [2, 1, 0], sizes = [16, 16, 16], strides = [1, 1, 1]} : vector<18x18x16xf32> to vector<16x16x16xf32>
    %114 = vector.shape_cast %113 : vector<16x16x16xf32> to vector<256x16xf32>
    %c3_94 = arith.constant 3 : index
    %c2_95 = arith.constant 2 : index
    %c0_96 = arith.constant 0 : index
    %c0_97 = arith.constant 0 : index
    %115 = vector.load %arg2[%c3_94, %c2_95, %c0_96, %c0_97] : memref<4x4x16x3xf32, #tpu.memory_space<vmem>>, vector<1x1x16x3xf32>
    %116 = vector.shape_cast %115 : vector<1x1x16x3xf32> to vector<16x3xf32>
    %cst_98 = arith.constant dense<0.000000e+00> : vector<256x3xf32>
    %117 = tpu.matmul %114, %116, %cst_98 {dimension_numbers = #tpu.dot_dimension_numbers<[1], [0], [0], [1], [0, 0, 1, 1], [], []>} : vector<256x16xf32>, vector<16x3xf32>, vector<256x3xf32> -> vector<256x3xf32>
    %118 = arith.addf %112, %117 : vector<256x3xf32>
    %119 = vector.extract_strided_slice %3 {offsets = [2, 2, 0], sizes = [16, 16, 16], strides = [1, 1, 1]} : vector<18x18x16xf32> to vector<16x16x16xf32>
    %120 = vector.shape_cast %119 : vector<16x16x16xf32> to vector<256x16xf32>
    %c3_99 = arith.constant 3 : index
    %c3_100 = arith.constant 3 : index
    %c0_101 = arith.constant 0 : index
    %c0_102 = arith.constant 0 : index
    %121 = vector.load %arg2[%c3_99, %c3_100, %c0_101, %c0_102] : memref<4x4x16x3xf32, #tpu.memory_space<vmem>>, vector<1x1x16x3xf32>
    %122 = vector.shape_cast %121 : vector<1x1x16x3xf32> to vector<16x3xf32>
    %cst_103 = arith.constant dense<0.000000e+00> : vector<256x3xf32>
    %123 = tpu.matmul %120, %122, %cst_103 {dimension_numbers = #tpu.dot_dimension_numbers<[1], [0], [0], [1], [0, 0, 1, 1], [], []>} : vector<256x16xf32>, vector<16x3xf32>, vector<256x3xf32> -> vector<256x3xf32>
    %124 = arith.addf %118, %123 : vector<256x3xf32>
    %c0_104 = arith.constant 0 : index
    %c3_105 = arith.constant 3 : index
    %c0_106 = arith.constant 0 : index
    %c0_107 = arith.constant 0 : index
    %125 = vector.load %arg4[%c0_104, %c3_105, %c0_106, %c0_107] : memref<1x4x256x3xf32, #tpu.memory_space<vmem>>, vector<1x1x256x3xf32>
    %126 = vector.shape_cast %125 : vector<1x1x256x3xf32> to vector<256x3xf32>
    %127 = vector.shape_cast %124 : vector<256x3xf32> to vector<1x1x256x3xf32>
    tpu.vector_store %arg4[%c0_104, %c3_105, %c0_106, %c0_107], %127 {strides = array<i32>} : memref<1x4x256x3xf32, #tpu.memory_space<vmem>>, vector<1x1x256x3xf32>,
    return
  }
  func.func @transform_0(%arg0: i32) -> (i32, i32, i32, i32) {
    %c0_i32 = arith.constant 0 : i32
    %c0_i32_0 = arith.constant 0 : i32
    %c0_i32_1 = arith.constant 0 : i32
    %c0_i32_2 = arith.constant 0 : i32
    return %arg0, %c0_i32, %c0_i32_0, %c0_i32_1 : i32, i32, i32, i32
  }
  func.func @transform_1(%arg0: i32) -> (i32, i32, i32, i32) {
    %c0_i32 = arith.constant 0 : i32
    %c0_i32_0 = arith.constant 0 : i32
    %c0_i32_1 = arith.constant 0 : i32
    %c0_i32_2 = arith.constant 0 : i32
    %c0_i32_3 = arith.constant 0 : i32
    return %c0_i32, %c0_i32_0, %c0_i32_1, %c0_i32_2 : i32, i32, i32, i32
  }
  func.func @transform_2(%arg0: i32) -> (i32, i32) {
    %c0_i32 = arith.constant 0 : i32
    %c0_i32_0 = arith.constant 0 : i32
    %c0_i32_1 = arith.constant 0 : i32
    return %c0_i32, %c0_i32_0 : i32, i32
  }
  func.func @transform_3(%arg0: i32) -> (i32, i32, i32, i32) {
    %c0_i32 = arith.constant 0 : i32
    %c0_i32_0 = arith.constant 0 : i32
    %c0_i32_1 = arith.constant 0 : i32
    %c0_i32_2 = arith.constant 0 : i32
    return %arg0, %c0_i32, %c0_i32_0, %c0_i32_1 : i32, i32, i32, i32
  }
}

</mosaic_0001>

<bundles_post_ra>
// kernel: decoder_forward.5
= control target key start
LH: loop header
LB: loop body
LE: loop exit
PB: predicated region body
PF: predicated region fallthrough
CT: control target
= control target key end

     0   :  { %8 = vsyncpa [#allocation3], 0  ;;  %s2404_s0 = inlined_call_operand.vmem [shape: f32[2,10,10,4], index: 0, kind: input, shape index: {}]   ;;  %s2405_s1 = inlined_call_operand.hbm [shape: f32[9,4,32], index: 1, kind: input, shape index: {}]   ;;  %s2406_s2 = inlined_call_operand.hbm [shape: f32[1,32], index: 2, kind: input, shape index: {}]   ;;  %s2407_s3 = inlined_call_operand.vmem [shape: f32[2,8,8,32], index: 3, kind: output, shape index: {}]  }
   0x1   :  { %9 = vsyncpa [#allocation5], 0  ;;  %s2024_s12 = smov 0  }
   0x2 LB: > { %s2030_s13 = sadd.s32 4294967295, %s1998_s12   ;;  %p1520_p0 = scmp.ge.s32.totalorder %s1998_s12, 1  ;;  %s1998_s12 = sphi %s2024_s12, %s15_s12  }
   0x3   : > { %p114_p1 = scmp.lt.s32.totalorder %s1998_s12, 3  ;;  %s2000_s14 = smov [#allocation2]  }
   0x4   : > { %s126_s15 = sshll.u32 %s2000_s14, 4  ;;  %p2408_p3 = scmp.eq.s32.totalorder %s2030_s13, 0  ;;  %s127_s15 = int_to_ptr.vmem [resolvable:$true] %s126_s15 }
   0x5   : > { %p2034_p2 = pnand %p1520_p0, %p114_p1  ;;  %s2001_s17 = smov [#allocation4]  }
   0x6   : > { %s140_s18 = sshll.u32 %s2001_s17, 4  ;;  %s1928_s22 = scalar_lea.hbm %s2405_s1, 576  ;;  %s2047_s18 = int_to_ptr.vmem [resolvable:$true] %s140_s18 }
   0x7   : > { %s2410_s16 = scalar_select %p2034_p2, 1, 0 }
   0x8   : > { %p1905_p4 = pneg %p2034_p2  ;;  %p1929_p6 = scmp.ne.s32.totalorder %s2405_s1, %s1928_s22 }
   0x9   : > { %p1935_p10 = scmp.lt.u32.totalorder %s1928_s22, %s2405_s1 }
   0xa   : > { %p2043_p5 = pnand %p2408_p3, %p1905_p4 }
   0xc   : > { %p1930_p7 = pneg %p2043_p5 }
   0xe   : > { %p1931_p8 = pnand %p1930_p7, %p1929_p6 }
  0x10   : > { %p1932_p9 = pneg %p1931_p8 }
  0x12   : > { %p1937_p11 = pnand %p1935_p10, %p1932_p9 }
  0x14   : > { %1940 = shalt.err (!%p1937_p11)
}
  0x15   : > { %s1941_s27 = scalar_lea.vmem %s127_s15, 576  ;;  %p1949_p1 = scmp.lt.s32.totalorder %s127_s15, %s127_s15 }
  0x16   : > { %p1942_p12 = scmp.ne.s32.totalorder %s127_s15, %s1941_s27  ;;  %p1950_p4 = scmp.lt.s32.totalorder %s1941_s27, %s1941_s27 }
  0x18   : > { %p1944_p13 = pnand %p1942_p12, %p1930_p7  ;;  %p1951_p3 = por %p1950_p4, %p1949_p1 }
  0x1a   : > { %p1945_p0 = pneg %p1944_p13 }
  0x1c   : > { %p1952_p2 = pnand %p1951_p3, %p1945_p0 }
  0x1e   : > { %1955 = shalt.err (!%p1952_p2)
}
  0x1f   : > { %s2002_s28 = smov 64   ;;  %s2003_s29 = smov 4  }
  0x20   : > { %1908 = dma.hbm_to_vmem [thread:$0]  (!%p2043_p5), %s2405_s1, 576, %s127_s15, [#allocation3], %s2002_s28, %s2002_s28, %s2003_s29  }
  0x21   : > { %s1956_s7 = scalar_lea.hbm %s2406_s2, 16 }
  0x22   : > { %p1957_p6 = scmp.ne.s32.totalorder %s2406_s2, %s1956_s7  ;;  %p1963_p8 = scmp.lt.u32.totalorder %s1956_s7, %s2406_s2 }
  0x24   : > { %p1959_p2 = pnand %p1957_p6, %p1930_p7 }
  0x26   : > { %p1960_p3 = pneg %p1959_p2 }
  0x28   : > { %p1965_p9 = pnand %p1963_p8, %p1960_p3 }
  0x2a   : > { %1968 = shalt.err (!%p1965_p9)
}
  0x2b   : > { %s1969_s14 = scalar_lea.vmem %s2047_s18, 16  ;;  %s1976_s15 = scalar_lea.vmem %s2047_s18, 32 }
  0x2c   : > { %p1970_p10 = scmp.ne.s32.totalorder %s2047_s18, %s1969_s14  ;;  %p1977_p13 = scmp.lt.s32.totalorder %s2047_s18, %s2047_s18 }
  0x2d   : > { %p1978_p0 = scmp.lt.s32.totalorder %s1976_s15, %s1969_s14 }
  0x2e   : > { %p1972_p11 = pnand %p1970_p10, %p1930_p7 }
  0x2f   : > { %p1979_p1 = por %p1978_p0, %p1977_p13 }
  0x30   : > { %p1973_p12 = pneg %p1972_p11 }
  0x32   : > { %p1980_p4 = pnand %p1979_p1, %p1973_p12 }
  0x34   : > { %1983 = shalt.err (!%p1980_p4)
}
  0x35   : > { %1911 = dma.hbm_to_vmem [thread:$0]  (!%p2043_p5), %s2406_s2, 16, %s2047_s18, [#allocation5]  }
  0x36   : > { %p2412_p6 = scmp.ne.s32.totalorder %s2410_s16, 0 }
  0x37   : > { %p2413_p7 = scmp.eq.s32.totalorder (!%p2412_p6), %s2030_s13, 0 }
  0x38   : > { %161 = sbr.rel (%p2412_p6) target bundleno = 363 (0x16b), region = 32 }
  0x3f   : > { %1989 = dma.done.wait (%p2413_p7), [#allocation3], 576   ;;  %p2414_p2 = pmov %p2413_p7 }
  0x41   : > { %1991 = vsyncadd (%p2414_p2), [#allocation3], 4294966720  ;;  %p2415_p3 = pmov %p2414_p2 }
  0x42   : > { %p2416_p8 = pmov %p2414_p2 }
  0x43   : > { %1993 = dma.done.wait (%p2415_p3), [#allocation5], 16  }
  0x44   : > { %1995 = vsyncadd (%p2416_p8), [#allocation5], 4294967280  ;;  %p189_p9 = scmp.lt.s32.totalorder %s2030_s13, 1  ;;  %vm253_vm0 = vcmask 1043456   ;;  %vm228_vm1 = vcmask 31744   ;;  %vm378_vm2 = vcmask 1046528  }
  0x45   : > { %v227_v0 = vld [vmem:[#allocation2] sm:$0xf]  ;;  %v404_v3 = vld [vmem:[#allocation2 + $0x4] sm:$0xf]  ;;  %v2128_v5 = vld [vmem:[#allocation2 + $0x10] sm:$0xf] }
  0x46   : > { %s2418_s13 = smov (!%p189_p9, %s2030_s13), 1  ;;  %1696 = vmatprep.subr.msk.mxu1 %vm253_vm0, %v227_v0  ;;  %1752 = vmatprep.subr.msk.mxu0 %vm253_vm0, %v2128_v5  ;;  %v945_v14 = vld [vmem:[#allocation2 + $0x14] sm:$0xf]  ;;  %vm537_vm3 = vcmask 1045504   ;;  %v1065_v25 = vld [vmem:[#allocation2 + $0x18] sm:$0xf] }
  0x47   : > { %s1896_s16 = smul.u32 160, %s2418_s13  ;;  %1697 = vmatpush3.msk.msra.mxu1 %vm253_vm0, %v227_v0  ;;  %1753 = vmatpush3.msk.msra.mxu0 %vm253_vm0, %v2128_v5  ;;  %v563_v32 = vld [vmem:[#allocation2 + $0x8] sm:$0xf]  ;;  %v1190_v50 = vld [vmem:[#allocation2 + $0x1c] sm:$0xf]  ;;  %s1614_s22 = sshll.u32 %s2418_s13, 6 }
  0x48   : > { %1710 = vmatprep.subr.msk.mxu1 %vm253_vm0, %v404_v3  ;;  %1766 = vmatprep.subr.msk.mxu0 %vm253_vm0, %v945_v14  ;;  %v697_v59 = vld [vmem:[#allocation2 + $0xc] sm:$0xf]  ;;  %s2383_s25 = scalar_lea.vmem %s2407_s3, %s1614_s22  ;;  %vm1432_vm4 = vcmask 261120  }
  0x49   : > { %s2115_s21 = scalar_lea.vmem %s2404_s0, %s1896_s16 }
  0x4a   : > { %v2118_v1 = vld [vmem:[%s2115_s21] sm:$0xff]  ;;  %v2121_v2 = vld [vmem:[%s2115_s21 + $0x10] sm:$0xff]  ;;  %v202_v6 = vld [vmem:[%s2115_s21 + $0x18] sm:$0x3] }
  0x4b   : > { %1698 = vmatprep.mubr.msk.f32.mxu1 %vm228_vm1, %v2118_v1  ;;  %v382_v4 = vrot.slane %v2121_v2, 1  ;;  %v2132_v7 = vld [vmem:[%s2115_s21 + $0x20] sm:$0xff]  ;;  %v383_v8 = vrot.slane %v202_v6, 1  ;;  %v204_v9 = vld [vmem:[%s2115_s21 + $0x28] sm:$0x3]  ;;  %v2140_v11 = vld [vmem:[%s2115_s21 + $0x30] sm:$0xff] }
  0x4c   : > { %1699 = vmatmul.mubr.msk.f32.vlgmr.msra.gmra.mrb[0].mxu1 %vm228_vm1, %v2121_v2  ;;  %v385_v10 = vrot.slane %v2132_v7, 1  ;;  %v541_v12 = vrot.slane %v2121_v2, 2  ;;  %v386_v13 = vrot.slane %v204_v9, 1  ;;  %v206_v15 = vld [vmem:[%s2115_s21 + $0x38] sm:$0x3]  ;;  %v542_v17 = vrot.slane %v202_v6, 2 }
  0x4d   : > { %1711 = vmatpush3.msk.msra.mxu1 %vm253_vm0, %v404_v3  ;;  %v2150_v16 = vsel %vm378_vm2, %v382_v4, %v383_v8  ;;  %1701 = vmatprep.mubr.msk.f32.mxu1 %vm228_vm1, %v2132_v7  ;;  %v388_v18 = vrot.slane %v2140_v11, 1  ;;  %v389_v19 = vrot.slane %v206_v15, 1  ;;  %v2156_v20 = vld [vmem:[%s2115_s21 + $0x40] sm:$0xff]  ;;  %v208_v21 = vld [vmem:[%s2115_s21 + $0x48] sm:$0x3]  ;;  %v545_v28 = vrot.slane %v204_v9, 2 }
  0x4e   : > { %1754 = vmatprep.mubr.msk.f32.mxu0 %vm228_vm1, %v2150_v16  ;;  %v2162_v22 = vsel %vm378_vm2, %v385_v10, %v386_v13  ;;  %v391_v23 = vrot.slane %v2156_v20, 1  ;;  %v392_v24 = vrot.slane %v208_v21, 1  ;;  %v2174_v27 = vld [vmem:[%s2115_s21 + $0x8] sm:$0x3]  ;;  %v2183_v30 = vld [vmem:[%s2115_s21 + $0x50] sm:$0xff]  ;;  %v544_v31 = vrot.slane %v2132_v7, 2  ;;  %1724 = vmatprep.subr.msk.mxu1 %vm253_vm0, %v563_v32 }
  0x4f   : > { %1755 = vmatmul.mubr.msk.f32.vlgmr.msra.gmra.mrb[0].mxu0 %vm228_vm1, %v2162_v22  ;;  %v2171_v26 = vsel %vm378_vm2, %v388_v18, %v389_v19  ;;  %v2189_v33 = vsel %vm537_vm3, %v541_v12, %v542_v17  ;;  %v2193_v34 = vld [vmem:[%s2115_s21 + $0x60] sm:$0xff]  ;;  %v547_v35 = vrot.slane %v2140_v11, 2  ;;  %v548_v36 = vrot.slane %v206_v15, 2  ;;  %v210_v39 = vld [vmem:[%s2115_s21 + $0x58] sm:$0x3]  ;;  %v2212_v41 = vld [vmem:[%s2115_s21 + $0x70] sm:$0xff] }
  0x50   : > { %1702 = vmatmul.mubr.msk.f32.gmra.mrb[2].mxu1 %vm228_vm1, %v2140_v11  ;;  %1767 = vmatpush3.msk.msra.mxu0 %vm253_vm0, %v945_v14  ;;  %v2180_v29 = vsel %vm378_vm2, %v391_v23, %v392_v24  ;;  %v379_v37 = vrot.slane %v2118_v1, 1  ;;  %v380_v38 = vrot.slane %v2174_v27, 1  ;;  %v2207_v40 = vsel %vm537_vm3, %v544_v31, %v545_v28  ;;  %v212_v47 = vld [vmem:[%s2115_s21 + $0x68] sm:$0x3]  ;;  %v214_v49 = vld [vmem:[%s2115_s21 + $0x78] sm:$0x3] }
  0x51   : > { %1757 = vmatprep.mubr.msk.f32.mxu0 %vm228_vm1, %v2171_v26  ;;  %1704 = vmatprep.mubr.msk.f32.mxu1 %vm228_vm1, %v2156_v20  ;;  %v550_v42 = vrot.slane %v2156_v20, 2  ;;  %v551_v43 = vrot.slane %v208_v21, 2  ;;  %v2216_v44 = vsel %vm537_vm3, %v547_v35, %v548_v36  ;;  %v553_v45 = vrot.slane %v2183_v30, 2  ;;  %v2234_v54 = vld [vmem:[%s2115_s21 + $0x80] sm:$0xff]  ;;  %v2242_v58 = vld [vmem:[%s2115_s21 + $0x88] sm:$0x3] }
  0x52   : > { %1780 = vmatprep.subr.msk.mxu0 %vm253_vm0, %v1065_v25  ;;  %v554_v46 = vrot.slane %v210_v39, 2  ;;  %v381_v48 = vsel %vm378_vm2, %v379_v37, %v380_v38  ;;  %v556_v52 = vrot.slane %v2193_v34, 2  ;;  %v557_v53 = vrot.slane %v212_v47, 2  ;;  %v1313_v18 = vld [vmem:[#allocation2 + $0x20] sm:$0xf] }
  0x53   : > { %1758 = vmatmul.mubr.msk.f32.gmra.mrb[2].mxu0 %vm228_vm1, %v2180_v29  ;;  %v2230_v51 = vsel %vm537_vm3, %v550_v42, %v551_v43  ;;  %v559_v56 = vrot.slane %v2212_v41, 2  ;;  %v560_v57 = vrot.slane %v214_v49, 2  ;;  %v941_v60 = vrot.slane %v2234_v54, 2 }
  0x54   : > { %1705 = vmatmul.mubr.msk.f32.gmra.mrb[4].mxu1 %vm228_vm1, %v2183_v30  ;;  %1768 = vmatprep.mubr.msk.f32.mxu0 %vm228_vm1, %v2189_v33  ;;  %v2238_v55 = vsel %vm537_vm3, %v553_v45, %v554_v46  ;;  %v2254_v61 = vsel %vm537_vm3, %v556_v52, %v557_v53  ;;  %v942_v62 = vrot.slane %v2242_v58, 2  ;;  %v394_v63 = vrot.slane %v2183_v30, 1 }
  0x55   : > { %1707 = vmatprep.mubr.msk.f32.mxu1 %vm228_vm1, %v2193_v34  ;;  %v395_v0 = vrot.slane %v210_v39, 1  ;;  %v2261_v3 = vsel %vm537_vm3, %v559_v56, %v560_v57  ;;  %v397_v4 = vrot.slane %v2193_v34, 1  ;;  %v398_v6 = vrot.slane %v212_v47, 1 }
  0x56   : > { %v2272_v8 = vsel %vm537_vm3, %v941_v60, %v942_v62  ;;  %v400_v10 = vrot.slane %v2212_v41, 1  ;;  %v401_v12 = vrot.slane %v214_v49, 1  ;;  %v538_v14 = vrot.slane %v2118_v1, 2  ;;  %v217_v1 = vld [vmem:[%s2115_s21 + $0x90] sm:$0xff] }
  0x57   : > { %1769 = vmatmul.mubr.msk.f32.vlgmr.msra.gmra.mrb[0].mxu0 %vm228_vm1, %v2207_v40  ;;  %v396_v9 = vsel %vm378_vm2, %v394_v63, %v395_v0  ;;  %v399_v13 = vsel %vm378_vm2, %v397_v4, %v398_v6  ;;  %v539_v15 = vrot.slane %v2174_v27, 2  ;;  %v818_v19 = vrot.slane %v2234_v54, 1 }
  0x58   : > { %1708 = vmatmul.mubr.msk.f32.gmra.mrb[6].mxu1 %vm228_vm1, %v2212_v41  ;;  %1781 = vmatpush3.msk.msra.mxu0 %vm253_vm0, %v1065_v25  ;;  %v819_v21 = vrot.slane %v2242_v58, 1  ;;  %v1186_v23 = vrot.slane %v217_v1, 1 }
  0x59   : > { %1771 = vmatprep.mubr.msk.f32.mxu0 %vm228_vm1, %v2216_v44  ;;  %1712 = vmatprep.mubr.msk.f32.mxu1 %vm228_vm1, %v381_v48  ;;  %v540_v17 = vsel %vm537_vm3, %v538_v14, %v539_v15 }
  0x5a   : > { %1794 = vmatprep.subr.msk.mxu0 %vm253_vm0, %v1190_v50 }
  0x5b   : > { %1772 = vmatmul.mubr.msk.f32.gmra.mrb[2].mxu0 %vm228_vm1, %v2230_v51 }
  0x5c   : > { %1713 = vmatmul.mubr.msk.f32.vlgmr.msra.gmra.mrb[0].mxu1 %vm228_vm1, %v2150_v16  ;;  %1774 = vmatprep.mubr.msk.f32.mxu0 %vm228_vm1, %v2238_v55  ;;  %v402_v16 = vsel %vm378_vm2, %v400_v10, %v401_v12 }
  0x5d   : > { %1725 = vmatpush3.msk.msra.mxu1 %vm253_vm0, %v563_v32  ;;  %1715 = vmatprep.mubr.msk.f32.mxu1 %vm228_vm1, %v2162_v22 }
  0x5e   : > { %1738 = vmatprep.subr.msk.mxu1 %vm253_vm0, %v697_v59 }
  0x5f   : > { %1775 = vmatmul.mubr.msk.f32.gmra.mrb[4].mxu0 %vm228_vm1, %v2254_v61 }
  0x60   : > { %1716 = vmatmul.mubr.msk.f32.gmra.mrb[2].mxu1 %vm228_vm1, %v2171_v26  ;;  %1777 = vmatprep.mubr.msk.f32.mxu0 %vm228_vm1, %v2261_v3 }
  0x61   : > { %1718 = vmatprep.mubr.msk.f32.mxu1 %vm228_vm1, %v2180_v29 }
  0x63   : > { %1778 = vmatmul.mubr.msk.f32.gmra.mrb[6].mxu0 %vm228_vm1, %v2272_v8 }
  0x64   : > { %1719 = vmatmul.mubr.msk.f32.gmra.mrb[4].mxu1 %vm228_vm1, %v396_v9  ;;  %1782 = vmatprep.mubr.msk.f32.mxu0 %vm228_vm1, %v2132_v7 }
  0x65   : > { %1721 = vmatprep.mubr.msk.f32.mxu1 %vm228_vm1, %v399_v13 }
  0x67   : > { %1783 = vmatmul.mubr.msk.f32.vlgmr.msra.gmra.mrb[0].mxu0 %vm228_vm1, %v2140_v11 }
  0x68   : > { %1722 = vmatmul.mubr.msk.f32.gmra.mrb[6].mxu1 %vm228_vm1, %v402_v16  ;;  %1795 = vmatpush3.msk.msra.mxu0 %vm253_vm0, %v1190_v50 }
  0x69   : > { %1785 = vmatprep.mubr.msk.f32.mxu0 %vm228_vm1, %v2156_v20  ;;  %1726 = vmatprep.mubr.msk.f32.mxu1 %vm228_vm1, %v540_v17 }
  0x6a   : > { %1808 = vmatprep.subr.msk.mxu0 %vm253_vm0, %v1313_v18 }
  0x6b   : > { %1786 = vmatmul.mubr.msk.f32.gmra.mrb[2].mxu0 %vm228_vm1, %v2183_v30 }
  0x6c   : > { %1727 = vmatmul.mubr.msk.f32.vlgmr.msra.gmra.mrb[0].mxu1 %vm228_vm1, %v2189_v33  ;;  %1788 = vmatprep.mubr.msk.f32.mxu0 %vm228_vm1, %v2193_v34 }
  0x6d   : > { %1739 = vmatpush3.msk.msra.mxu1 %vm253_vm0, %v697_v59  ;;  %1729 = vmatprep.mubr.msk.f32.mxu1 %vm228_vm1, %v2207_v40 }
  0x6e   : > { %1822 = vmatprep.subr.msk.mxu1 %vm253_vm0, %v2128_v5 }
  0x6f   : > { %1789 = vmatmul.mubr.msk.f32.gmra.mrb[4].mxu0 %vm228_vm1, %v2212_v41 }
  0x70   : > { %1730 = vmatmul.mubr.msk.f32.gmra.mrb[2].mxu1 %vm228_vm1, %v2216_v44  ;;  %1791 = vmatprep.mubr.msk.f32.mxu0 %vm228_vm1, %v2234_v54 }
  0x71   : > { %1732 = vmatprep.mubr.msk.f32.mxu1 %vm228_vm1, %v2230_v51 }
  0x73   : > { %1792 = vmatmul.mubr.msk.f32.gmra.mrb[6].mxu0 %vm228_vm1, %v217_v1 }
  0x74   : > { %1733 = vmatmul.mubr.msk.f32.gmra.mrb[4].mxu1 %vm228_vm1, %v2238_v55  ;;  %1796 = vmatprep.mubr.msk.f32.mxu0 %vm228_vm1, %v2162_v22  ;;  %v218_v22 = vld [vmem:[%s2115_s21 + $0x98] sm:$0x3] }
  0x75   : > { %1735 = vmatprep.mubr.msk.f32.mxu1 %vm228_vm1, %v2254_v61  ;;  %v1187_v24 = vrot.slane %v218_v22, 1 }
  0x77   : > { %1797 = vmatmul.mubr.msk.f32.vlgmr.msra.gmra.mrb[0].mxu0 %vm228_vm1, %v2171_v26 }
  0x78   : > { %1736 = vmatmul.mubr.msk.f32.gmra.mrb[6].mxu1 %vm228_vm1, %v2261_v3  ;;  %1809 = vmatpush3.msk.msra.mxu0 %vm253_vm0, %v1313_v18 }
  0x79   : > { %1799 = vmatprep.mubr.msk.f32.mxu0 %vm228_vm1, %v2180_v29  ;;  %1740 = vmatprep.mubr.msk.f32.mxu1 %vm228_vm1, %v2121_v2  ;;  %v820_v2 = vsel %vm378_vm2, %v818_v19, %v819_v21  ;;  %v1530_v29 = vld [vmem:[#allocation4] ss:$0 sm:$0xff] }
  0x7b   : > { %1800 = vmatmul.mubr.msk.f32.gmra.mrb[2].mxu0 %vm228_vm1, %v396_v9 }
  0x7c   : > { %1741 = vmatmul.mubr.msk.f32.vlgmr.msra.gmra.mrb[0].mxu1 %vm228_vm1, %v2132_v7  ;;  %1802 = vmatprep.mubr.msk.f32.mxu0 %vm228_vm1, %v399_v13  ;;  %v1188_v7 = vsel %vm378_vm2, %v1186_v23, %v1187_v24 }
  0x7d   : > { %1823 = vmatpush3.msk.msra.mxu1 %vm253_vm0, %v2128_v5  ;;  %1743 = vmatprep.mubr.msk.f32.mxu1 %vm228_vm1, %v2140_v11  ;;  %v1309_v5 = vrot.slane %v217_v1, 2  ;;  %v1310_v11 = vrot.slane %v218_v22, 2 }
  0x7f   : > { %1803 = vmatmul.mubr.msk.f32.gmra.mrb[4].mxu0 %vm228_vm1, %v402_v16 }
  0x80   : > { %1744 = vmatmul.mubr.msk.f32.gmra.mrb[2].mxu1 %vm228_vm1, %v2156_v20  ;;  %1805 = vmatprep.mubr.msk.f32.mxu0 %vm228_vm1, %v820_v2  ;;  %v1311_v20 = vsel %vm537_vm3, %v1309_v5, %v1310_v11 }
  0x81   : > { %1746 = vmatprep.mubr.msk.f32.mxu1 %vm228_vm1, %v2183_v30 }
  0x83   : > { %1806 = vmatmul.mubr.msk.f32.gmra.mrb[6].mxu0 %vm228_vm1, %v1188_v7 }
  0x84   : > { %1747 = vmatmul.mubr.msk.f32.gmra.mrb[4].mxu1 %vm228_vm1, %v2193_v34  ;;  %1810 = vmatprep.mubr.msk.f32.mxu0 %vm228_vm1, %v2207_v40 }
  0x85   : > { %1749 = vmatprep.mubr.msk.f32.mxu1 %vm228_vm1, %v2212_v41 }
  0x87   : > { %1811 = vmatmul.mubr.msk.f32.vlgmr.msra.gmra.mrb[0].mxu0 %vm228_vm1, %v2216_v44 }
  0x88   : > { %1750 = vmatmul.mubr.msk.f32.gmra.mrb[6].mxu1 %vm228_vm1, %v2234_v54  ;;  %1813 = vmatprep.mubr.msk.f32.mxu0 %vm228_vm1, %v2230_v51 }
  0x89   : > { %1760 = vmatprep.mubr.msk.f32.mxu1 %vm228_vm1, %v396_v9 }
  0x8b   : > { %1814 = vmatmul.mubr.msk.f32.gmra.mrb[2].mxu0 %vm228_vm1, %v2238_v55 }
  0x8c   : > { %1761 = vmatmul.mubr.msk.f32.vlgmr.msra.gmra.mrb[4].mxu1 %vm228_vm1, %v399_v13  ;;  %1816 = vmatprep.mubr.msk.f32.mxu0 %vm228_vm1, %v2254_v61 }
  0x8d   : > { %1763 = vmatprep.mubr.msk.f32.mxu1 %vm228_vm1, %v402_v16 }
  0x8f   : > { %1817 = vmatmul.mubr.msk.f32.gmra.mrb[4].mxu0 %vm228_vm1, %v2261_v3 }
  0x90   : > { %1764 = vmatmul.mubr.msk.f32.gmra.mrb[6].mxu1 %vm228_vm1, %v820_v2  ;;  %1819 = vmatprep.mubr.msk.f32.mxu0 %vm228_vm1, %v2272_v8 }
  0x93   : > { %1820 = vmatmul.mubr.msk.f32.gmra.mrb[6].mxu0 %vm228_vm1, %v1311_v20 }
 0x14f   : > { %v1742_v25 = vpop.f32.mrb[0].mxu1 }
 0x150   : > { %v770_v26 = vpop.f32.mrb[1].mxu1  ;;  %v1824_v30 = vadd.f32 %v1742_v25, %v1530_v29 }
 0x151   : > { %v1826_v31 = vadd.f32 %v1530_v29, %v770_v26 }
 0x153   : > { %v1745_v27 = vpop.f32.mrb[2].mxu1 }
 0x154   : > { %v780_v28 = vpop.f32.mrb[3].mxu1  ;;  %v1828_v36 = vadd.f32 %v1745_v27, %v1530_v29 }
 0x155   : > { %v1830_v37 = vadd.f32 %v1530_v29, %v780_v28 }
 0x15a   : > { %v1812_v32 = vpop.f32.mrb[0].mxu0 }
 0x15b   : > { %v1825_v33 = vadd.f32 %v1824_v30, %v1812_v32  ;;  %v1385_v34 = vpop.f32.mrb[1].mxu0 }
 0x15c   : > { %v1827_v35 = vadd.f32 %v1826_v31, %v1385_v34 }
 0x15d   : > { %1434 = vst.msk [vmem:[%s2383_s25 + $0x8] sm:$0xff] %vm1432_vm4, %v1825_v33 }
 0x15e   : > { %1433 = vst.msk [vmem:[%s2383_s25] sm:$0xff] %vm1432_vm4, %v1827_v35  ;;  %v1815_v38 = vpop.f32.mrb[2].mxu0 }
 0x15f   : > { %v1762_v39 = vpop.f32.mrb[4].mxu1  ;;  %v1829_v40 = vadd.f32 %v1828_v36, %v1815_v38  ;;  %v1395_v41 = vpop.f32.mrb[3].mxu0 }
 0x160   : > { %v1832_v42 = vadd.f32 %v1762_v39, %v1530_v29  ;;  %v914_v43 = vpop.f32.mrb[5].mxu1  ;;  %v1831_v44 = vadd.f32 %v1830_v37, %v1395_v41 }
 0x161   : > { %v1834_v45 = vadd.f32 %v1530_v29, %v914_v43  ;;  %1436 = vst.msk [vmem:[%s2383_s25 + $0x18] sm:$0xff] %vm1432_vm4, %v1829_v40 }
 0x162   : > { %1435 = vst.msk [vmem:[%s2383_s25 + $0x10] sm:$0xff] %vm1432_vm4, %v1831_v44  ;;  %v1818_v46 = vpop.f32.mrb[4].mxu0 }
 0x163   : > { %v1765_v47 = vpop.f32.mrb[6].mxu1  ;;  %v1833_v48 = vadd.f32 %v1832_v42, %v1818_v46  ;;  %v1405_v49 = vpop.f32.mrb[5].mxu0 }
 0x164   : > { %v1836_v50 = vadd.f32 %v1765_v47, %v1530_v29  ;;  %v924_v51 = vpop.f32.mrb[7].mxu1  ;;  %v1835_v52 = vadd.f32 %v1834_v45, %v1405_v49 }
 0x165   : > { %v1838_v53 = vadd.f32 %v1530_v29, %v924_v51  ;;  %1438 = vst.msk [vmem:[%s2383_s25 + $0x28] sm:$0xff] %vm1432_vm4, %v1833_v48 }
 0x166   : > { %1437 = vst.msk [vmem:[%s2383_s25 + $0x20] sm:$0xff] %vm1432_vm4, %v1835_v52  ;;  %v1821_v54 = vpop.f32.mrb[6].mxu0 }
 0x167   : > { %v1837_v55 = vadd.f32 %v1836_v50, %v1821_v54  ;;  %v1415_v56 = vpop.f32.mrb[7].mxu0 }
 0x168   : > { %v1839_v57 = vadd.f32 %v1838_v53, %v1415_v56 }
 0x169   : > { %1440 = vst.msk [vmem:[%s2383_s25 + $0x38] sm:$0xff] %vm1432_vm4, %v1837_v55 }
 0x16a   : > { %1439 = vst.msk [vmem:[%s2383_s25 + $0x30] sm:$0xff] %vm1432_vm4, %v1839_v57 }
 0x16b PF: > { %s15_s12 = sadd.s32 1, %s1998_s12  }
 0x16c   : > { %p12_p5 = scmp.ge.s32.totalorder %s15_s12, 4  }
 0x16e   :  { %14 = sbr.rel (!%p12_p5) target bundleno = 2 (0x2), region = 79 }
 0x175   :  { %1462 = vsyncpa [#allocation3], 1 }
 0x176   :  { %1464 = vsyncpa [#allocation3 + $0x1], 1 }
 0x177   :  { %1465 = vsyncpa [#allocation5], 1 }

// kernel: decoder_forward.6
= control target key start
LH: loop header
LB: loop body
LE: loop exit
PB: predicated region body
PF: predicated region fallthrough
CT: control target
= control target key end

     0   :  { %s2369_s18 = smov 0   ;;  %s2905_s0 = inlined_call_operand.vmem [shape: f32[2,10,10,32], index: 0, kind: input, shape index: {}]   ;;  %s2906_s1 = inlined_call_operand.vmem [shape: f32[9,32,8], index: 1, kind: input, shape index: {}]   ;;  %s2907_s2 = inlined_call_operand.vmem [shape: f32[1,8], index: 2, kind: input, shape index: {}]   ;;  %s2908_s3 = inlined_call_operand.vmem [shape: f32[8,32], index: 3, kind: input, shape index: {}]   ;;  %s2909_s4 = inlined_call_operand.vmem [shape: f32[1,32], index: 4, kind: input, shape index: {}]   ;;  %s2910_s5 = inlined_call_operand.vmem [shape: f32[2,8,8,32], index: 5, kind: output, shape index: {}]  }
   0x1 LB: > { %s1742_s19 = sadd.s32 4294967295, %s2337_s18   ;;  %p1746_p0 = scmp.ge.s32.totalorder %s2337_s18, 1  ;;  %s2337_s18 = sphi %s2369_s18, %s15_s18  }
   0x2   : > { %p187_p1 = scmp.lt.s32.totalorder %s2337_s18, 3 }
   0x4   : > { %p188_p2 = pnand %p1746_p0, %p187_p1 }
   0x5   : > { %v273_v0 = vld [vmem:[%s2906_s1] sm:$0xff] (!%p188_p2)  ;;  %v274_v1 = vld [vmem:[%s2906_s1 + $0x8] sm:$0xff] (!%p188_p2)  ;;  %p215_p3 = scmp.lt.s32.totalorder (!%p188_p2), %s1742_s19, 1  ;;  %v275_v5 = vld [vmem:[%s2906_s1 + $0x10] sm:$0xff] (!%p188_p2)  ;;  %vm277_vm0 = vcmask (!%p188_p2), 261120   ;;  %vm423_vm1 = vcmask (!%p188_p2), 1046528  }
   0x6   : > { %191 = sbr.rel (%p188_p2) target bundleno = 536 (0x218), region = 40  ;;  %v1795_v2 = vld [vmem:[%s2906_s1 + $0x80] sm:$0xff] (!%p188_p2)  ;;  %v2178_v3 = vpack.c.bf16 (!%p188_p2), %v274_v1, %v273_v0  ;;  %v1796_v4 = vld [vmem:[%s2906_s1 + $0x88] sm:$0xff] (!%p188_p2)  ;;  %v276_v6 = vld [vmem:[%s2906_s1 + $0x18] sm:$0xff] (!%p188_p2)  ;;  %vm582_vm2 = vcmask (!%p188_p2), 1045504   ;;  %vm1493_vm3 = vcmask (!%p188_p2), 64512  }
   0x7   : > { %v2210_v7 = vpack.c.bf16 (!%p188_p2), %v1796_v4, %v1795_v2  ;;  %v2182_v8 = vpack.c.bf16 (!%p188_p2), %v276_v6, %v275_v5  ;;  %v1797_v9 = vld [vmem:[%s2906_s1 + $0x90] sm:$0xff] (!%p188_p2)  ;;  %v1798_v10 = vld [vmem:[%s2906_s1 + $0x98] sm:$0xff] (!%p188_p2)  ;;  %v1807_v11 = vld [vmem:[%s2906_s1 + $0xa0] sm:$0xff] (!%p188_p2) }
   0x8   : > { %2179 = vmatprep.subr.bf16.mxu1 (!%p188_p2), %v2178_v3  ;;  %v2214_v12 = vpack.c.bf16 (!%p188_p2), %v1798_v10, %v1797_v9  ;;  %v1808_v13 = vld [vmem:[%s2906_s1 + $0xa8] sm:$0xff] (!%p188_p2)  ;;  %v1759_v14 = vld [vmem:[%s2906_s1 + $0x20] sm:$0xff] (!%p188_p2)  ;;  %v1809_v16 = vld [vmem:[%s2906_s1 + $0xb0] sm:$0xff] (!%p188_p2) }
   0x9   : > { %v1760_v15 = vld [vmem:[%s2906_s1 + $0x28] sm:$0xff] (!%p188_p2)  ;;  %2181 = vmatpush3.bf16.msra.mxu1 (!%p188_p2), %v2178_v3  ;;  %2211 = vmatprep.subr.bf16.mxu0 (!%p188_p2), %v2210_v7  ;;  %v1810_v17 = vld [vmem:[%s2906_s1 + $0xb8] sm:$0xff] (!%p188_p2)  ;;  %v1761_v19 = vld [vmem:[%s2906_s1 + $0x30] sm:$0xff] (!%p188_p2)  ;;  %v2218_v22 = vpack.c.bf16 (!%p188_p2), %v1808_v13, %v1807_v11 }
   0xa   : > { %2213 = vmatpush3.bf16.msra.mxu0 (!%p188_p2), %v2210_v7  ;;  %2183 = vmatprep.subr.bf16.mxu1 (!%p188_p2), %v2182_v8  ;;  %v2186_v18 = vpack.c.bf16 (!%p188_p2), %v1760_v15, %v1759_v14  ;;  %v1762_v20 = vld [vmem:[%s2906_s1 + $0x38] sm:$0xff] (!%p188_p2)  ;;  %v1819_v21 = vld [vmem:[%s2906_s1 + $0xc0] sm:$0xff] (!%p188_p2)  ;;  %v1820_v23 = vld [vmem:[%s2906_s1 + $0xc8] sm:$0xff] (!%p188_p2)  ;;  %v2464_v34 = vpack.c.bf16 (!%p188_p2), %v1810_v17, %v1809_v16 }
   0xb   : > { %2215 = vmatprep.subr.bf16.mxu0 (!%p188_p2), %v2214_v12  ;;  %v1771_v24 = vld [vmem:[%s2906_s1 + $0x40] sm:$0xff] (!%p188_p2)  ;;  %v1772_v25 = vld [vmem:[%s2906_s1 + $0x48] sm:$0xff] (!%p188_p2)  ;;  %v2190_v40 = vpack.c.bf16 (!%p188_p2), %v1762_v20, %v1761_v19  ;;  %v2479_v41 = vpack.c.bf16 (!%p188_p2), %v1820_v23, %v1819_v21 }
   0xc   : > { %v2507_v52 = vpack.c.bf16 (!%p188_p2), %v1772_v25, %v1771_v24 }
   0xd   : > { %s2912_s19 = smov (!%p215_p3, %s1742_s19), 1  ;;  %2185 = vmatpush3.bf16.msra.mxu1 %v2182_v8 }
   0xe   : > { %s2322_s21 = smul.u32 160, %s2912_s19  ;;  %2217 = vmatpush3.bf16.msra.mxu0 %v2214_v12  ;;  %2187 = vmatprep.subr.bf16.mxu1 %v2186_v18  ;;  %s1866_s8 = sshll.u32 %s2912_s19, 6 }
   0xf   : > { %2219 = vmatprep.subr.bf16.mxu0 %v2218_v22  ;;  %s2870_s12 = scalar_lea.vmem %s2910_s5, %s1866_s8 }
  0x10   : > { %s2434_s9 = scalar_lea.vmem %s2905_s0, %s2322_s21 }
  0x11   : > { %v225_v26 = vld [vmem:[%s2434_s9] sm:$0xff]  ;;  %v2447_v27 = vld [vmem:[%s2434_s9 + $0x10] sm:$0xff]  ;;  %v2450_v28 = vld [vmem:[%s2434_s9 + $0x18] sm:$0x3] }
  0x12   : > { %v2452_v29 = vmax.f32 %v225_v26, 0.0  ;;  %v2455_v30 = vmax.f32 %v2447_v27, 0.0  ;;  %v248_v31 = vmax.f32 %v2450_v28, 0.0  ;;  %v2459_v32 = vld [vmem:[%s2434_s9 + $0x20] sm:$0xff]  ;;  %v2462_v33 = vld [vmem:[%s2434_s9 + $0x28] sm:$0x3] }
  0x13   : > { %v2467_v35 = vmax.f32 %v2459_v32, 0.0  ;;  %v250_v36 = vmax.f32 %v2462_v33, 0.0  ;;  %v2471_v37 = vld [vmem:[%s2434_s9 + $0x30] sm:$0xff]  ;;  %v2474_v38 = vld [vmem:[%s2434_s9 + $0x38] sm:$0x3]  ;;  %v2477_v39 = vld [vmem:[%s2434_s9 + $0x40] sm:$0xff] }
  0x14   : > { %1992 = vmatprep.mubr.msk.f32.mxu1 %vm277_vm0, %v2452_v29  ;;  %v427_v42 = vrot.slane %v2455_v30, 1  ;;  %v428_v43 = vrot.slane %v248_v31, 1  ;;  %v2487_v44 = vmax.f32 %v2471_v37, 0.0  ;;  %v252_v45 = vmax.f32 %v2474_v38, 0.0  ;;  %v2491_v46 = vld [vmem:[%s2434_s9 + $0x48] sm:$0x3] }
  0x15   : > { %1993 = vmatmul.mubr.msk.f32.vlgmr.msra.gmra.mrb[0].mxu1 %vm277_vm0, %v2455_v30  ;;  %v430_v47 = vrot.slane %v2467_v35, 1  ;;  %v431_v48 = vrot.slane %v250_v36, 1  ;;  %v2499_v49 = vmax.f32 %v2477_v39, 0.0  ;;  %v2502_v50 = vld [vmem:[%s2434_s9 + $0x50] sm:$0xff]  ;;  %v2505_v51 = vld [vmem:[%s2434_s9 + $0x60] sm:$0xff]  ;;  %v254_v56 = vmax.f32 %v2491_v46, 0.0 }
  0x16   : > { %v2510_v53 = vsel %vm423_vm1, %v427_v42, %v428_v43  ;;  %1995 = vmatprep.mubr.msk.f32.mxu1 %vm277_vm0, %v2467_v35  ;;  %v433_v54 = vrot.slane %v2487_v44, 1  ;;  %v434_v55 = vrot.slane %v252_v45, 1  ;;  %2189 = vmatpush3.bf16.msra.mxu1 %v2186_v18  ;;  %v2519_v57 = vld [vmem:[%s2434_s9 + $0x58] sm:$0x3]  ;;  %v2522_v58 = vld [vmem:[%s2434_s9 + $0x70] sm:$0xff]  ;;  %v2531_v61 = vmax.f32 %v2502_v50, 0.0 }
  0x17   : > { %2072 = vmatprep.mubr.msk.f32.mxu0 %vm277_vm0, %v2510_v53  ;;  %v2527_v59 = vsel %vm423_vm1, %v430_v47, %v431_v48  ;;  %v436_v60 = vrot.slane %v2499_v49, 1  ;;  %v256_v62 = vmax.f32 %v2519_v57, 0.0  ;;  %v2535_v63 = vld [vmem:[%s2434_s9 + $0x68] sm:$0x3]  ;;  %2191 = vmatprep.subr.bf16.mxu1 %v2190_v40  ;;  %v437_v1 = vrot.slane %v254_v56, 1  ;;  %v2552_v5 = vld [vmem:[%s2434_s9 + $0x80] sm:$0xff] }
  0x18   : > { %2073 = vmatmul.mubr.msk.f32.vlgmr.msra.gmra.mrb[0].mxu0 %vm277_vm0, %v2527_v59  ;;  %v2540_v0 = vsel %vm423_vm1, %v433_v54, %v434_v55  ;;  %v2545_v2 = vmax.f32 %v2505_v51, 0.0  ;;  %v258_v3 = vmax.f32 %v2535_v63, 0.0  ;;  %v2549_v4 = vld [vmem:[%s2434_s9 + $0x78] sm:$0x3]  ;;  %v439_v6 = vrot.slane %v2531_v61, 1 }
  0x19   : > { %2221 = vmatpush3.bf16.msra.mxu0 %v2218_v22  ;;  %1996 = vmatmul.mubr.msk.f32.gmra.mrb[2].mxu1 %vm277_vm0, %v2487_v44  ;;  %v440_v7 = vrot.slane %v256_v62, 1  ;;  %v2560_v8 = vmax.f32 %v2522_v58, 0.0  ;;  %v260_v9 = vmax.f32 %v2549_v4, 0.0  ;;  %v2564_v10 = vld [vmem:[%s2434_s9 + $0x8] sm:$0x3]  ;;  %v2571_v11 = vsel %vm423_vm1, %v436_v60, %v437_v1  ;;  %v1774_v47 = vld [vmem:[%s2906_s1 + $0x58] sm:$0xff] }
  0x1a   : > { %2075 = vmatprep.mubr.msk.f32.mxu0 %vm277_vm0, %v2540_v0  ;;  %1998 = vmatprep.mubr.msk.f32.mxu1 %vm277_vm0, %v2499_v49  ;;  %v442_v12 = vrot.slane %v2545_v2, 1  ;;  %v443_v13 = vrot.slane %v258_v3, 1  ;;  %v246_v14 = vmax.f32 %v2564_v10, 0.0  ;;  %v2578_v15 = vld [vmem:[%s2434_s9 + $0x88] sm:$0x3]  ;;  %v424_v19 = vrot.slane %v2452_v29, 1 }
  0x1b   : > { %v2581_v16 = vsel %vm423_vm1, %v439_v6, %v440_v7  ;;  %2223 = vmatprep.subr.bf16.mxu0 %v2464_v34  ;;  %2193 = vmatpush3.bf16.msra.mxu1 %v2190_v40  ;;  %v445_v17 = vrot.slane %v2560_v8, 1  ;;  %v446_v18 = vrot.slane %v260_v9, 1  ;;  %v2593_v21 = vmax.f32 %v2552_v5, 0.0  ;;  %v1821_v6 = vld [vmem:[%s2906_s1 + $0xd0] sm:$0xff]  ;;  %v1822_v7 = vld [vmem:[%s2906_s1 + $0xd8] sm:$0xff] }
  0x1c   : > { %2076 = vmatmul.mubr.msk.f32.gmra.mrb[2].mxu0 %vm277_vm0, %v2571_v11  ;;  %v425_v20 = vrot.slane %v246_v14, 1  ;;  %v262_v22 = vmax.f32 %v2578_v15, 0.0  ;;  %2195 = vmatprep.subr.bf16.mxu1 %v2507_v52  ;;  %v2602_v23 = vsel %vm423_vm1, %v442_v12, %v443_v13  ;;  %v586_v40 = vrot.slane %v2455_v30, 2 }
  0x1d   : > { %1999 = vmatmul.mubr.msk.f32.gmra.mrb[4].mxu1 %vm277_vm0, %v2531_v61  ;;  %2078 = vmatprep.mubr.msk.f32.mxu0 %vm277_vm0, %v2581_v16  ;;  %v2605_v24 = vsel %vm423_vm1, %v445_v17, %v446_v18  ;;  %v863_v25 = vrot.slane %v2593_v21, 1  ;;  %v587_v42 = vrot.slane %v248_v31, 2  ;;  %v590_v48 = vrot.slane %v250_v36, 2  ;;  %v1783_v17 = vld [vmem:[%s2906_s1 + $0x60] sm:$0xff]  ;;  %v1784_v18 = vld [vmem:[%s2906_s1 + $0x68] sm:$0xff] }
  0x1e   : > { %2001 = vmatprep.mubr.msk.f32.mxu1 %vm277_vm0, %v2545_v2  ;;  %2225 = vmatpush3.bf16.msra.mxu0 %v2464_v34  ;;  %v864_v26 = vrot.slane %v262_v22, 1  ;;  %v426_v43 = vsel %vm423_vm1, %v424_v19, %v425_v20  ;;  %v1773_v34 = vld [vmem:[%s2906_s1 + $0x50] sm:$0xff]  ;;  %v589_v54 = vrot.slane %v2467_v35, 2  ;;  %v592_v60 = vrot.slane %v2487_v44, 2 }
  0x1f   : > { %2227 = vmatprep.subr.bf16.mxu0 %v2479_v41  ;;  %v2638_v55 = vsel %vm582_vm2, %v586_v40, %v587_v42  ;;  %v593_v36 = vrot.slane %v252_v45, 2  ;;  %v2198_v1 = vpack.c.bf16 %v1774_v47, %v1773_v34  ;;  %v595_v12 = vrot.slane %v2499_v49, 2 }
  0x20   : > { %2079 = vmatmul.mubr.msk.f32.gmra.mrb[4].mxu0 %vm277_vm0, %v2602_v23  ;;  %v2633_v31 = vsel %vm423_vm1, %v863_v25, %v864_v26  ;;  %v2656_v45 = vsel %vm582_vm2, %v589_v54, %v590_v48  ;;  %v596_v13 = vrot.slane %v254_v56, 2  ;;  %v599_v19 = vrot.slane %v256_v62, 2  ;;  %v1831_v25 = vld [vmem:[%s2906_s1 + $0xe0] sm:$0xff] }
  0x21   : > { %2002 = vmatmul.mubr.msk.f32.gmra.mrb[6].mxu1 %vm277_vm0, %v2560_v8  ;;  %2081 = vmatprep.mubr.msk.f32.mxu0 %vm277_vm0, %v2605_v24  ;;  %v2674_v56 = vsel %vm582_vm2, %v592_v60, %v593_v36  ;;  %v2230_v20 = vpack.c.bf16 %v1822_v7, %v1821_v6  ;;  %v2202_v26 = vpack.c.bf16 %v1784_v18, %v1783_v17  ;;  %v601_v40 = vrot.slane %v2545_v2, 2  ;;  %v1785_v60 = vld [vmem:[%s2906_s1 + $0x70] sm:$0xff]  ;;  %v1834_v7 = vld [vmem:[%s2906_s1 + $0xf8] sm:$0xff] }
  0x22   : > { %2012 = vmatprep.mubr.msk.f32.mxu1 %vm277_vm0, %v426_v43  ;;  %v2688_v62 = vsel %vm582_vm2, %v595_v12, %v596_v13  ;;  %v602_v42 = vrot.slane %v258_v3, 2  ;;  %v605_v34 = vrot.slane %v260_v9, 2  ;;  %v583_v47 = vrot.slane %v2452_v29, 2  ;;  %v1833_v6 = vld [vmem:[%s2906_s1 + $0xf0] sm:$0xff]  ;;  %v1843_v13 = vld [vmem:[%s2906_s1 + $0x100] sm:$0xff] }
  0x23   : > { %v584_v3 = vrot.slane %v246_v14, 2  ;;  %v986_v54 = vrot.slane %v2593_v21, 2  ;;  %v987_v29 = vrot.slane %v262_v22, 2  ;;  %v1786_v22 = vld [vmem:[%s2906_s1 + $0x78] sm:$0xff]  ;;  %v2238_v12 = vpack.c.bf16 %v1834_v7, %v1833_v6  ;;  %v243_v18 = vld [vmem:[%s2434_s9 + $0x90] sm:$0xff] }
  0x24   : > { %2082 = vmatmul.mubr.msk.f32.gmra.mrb[6].mxu0 %vm277_vm0, %v2633_v31  ;;  %v2713_v9 = vsel %vm582_vm2, %v601_v40, %v602_v42 }
  0x25   : > { %2013 = vmatmul.mubr.msk.f32.vlgmr.msra.gmra.mrb[0].mxu1 %vm277_vm0, %v2510_v53  ;;  %2092 = vmatprep.mubr.msk.f32.mxu0 %vm277_vm0, %v2638_v55  ;;  %v598_v53 = vrot.slane %v2531_v61, 2  ;;  %v585_v14 = vsel %vm582_vm2, %v583_v47, %v584_v3  ;;  %v2737_v36 = vsel %vm582_vm2, %v986_v54, %v987_v29 }
  0x26   : > { %2015 = vmatprep.mubr.msk.f32.mxu1 %vm277_vm0, %v2527_v59  ;;  %2197 = vmatpush3.bf16.msra.mxu1 %v2507_v52  ;;  %v1832_v52 = vld [vmem:[%s2906_s1 + $0xe8] sm:$0xff] }
  0x27   : > { %2199 = vmatprep.subr.bf16.mxu1 %v2198_v1  ;;  %v2698_v43 = vsel %vm582_vm2, %v598_v53, %v599_v19  ;;  %v2234_v48 = vpack.c.bf16 %v1832_v52, %v1831_v25  ;;  %v263_v53 = vmax.f32 %v243_v18, 0.0  ;;  %v1845_v19 = vld [vmem:[%s2906_s1 + $0x110] sm:$0xff] }
  0x28   : > { %2093 = vmatmul.mubr.msk.f32.vlgmr.msra.gmra.mrb[0].mxu0 %vm277_vm0, %v2656_v45 }
  0x29   : > { %2229 = vmatpush3.bf16.msra.mxu0 %v2479_v41  ;;  %2016 = vmatmul.mubr.msk.f32.gmra.mrb[2].mxu1 %vm277_vm0, %v2540_v0  ;;  %v604_v41 = vrot.slane %v2560_v8, 2 }
  0x2a   : > { %2095 = vmatprep.mubr.msk.f32.mxu0 %vm277_vm0, %v2674_v56  ;;  %2018 = vmatprep.mubr.msk.f32.mxu1 %vm277_vm0, %v2571_v11 }
  0x2b   : > { %2231 = vmatprep.subr.bf16.mxu0 %v2230_v20  ;;  %2201 = vmatpush3.bf16.msra.mxu1 %v2198_v1  ;;  %v2721_v10 = vsel %vm582_vm2, %v604_v41, %v605_v34  ;;  %v2206_v1 = vpack.c.bf16 %v1786_v22, %v1785_v60 }
  0x2c   : > { %2096 = vmatmul.mubr.msk.f32.gmra.mrb[2].mxu0 %vm277_vm0, %v2688_v62  ;;  %2203 = vmatprep.subr.bf16.mxu1 %v2202_v26 }
  0x2d   : > { %2019 = vmatmul.mubr.msk.f32.gmra.mrb[4].mxu1 %vm277_vm0, %v2581_v16  ;;  %2098 = vmatprep.mubr.msk.f32.mxu0 %vm277_vm0, %v2698_v43 }
  0x2e   : > { %2021 = vmatprep.mubr.msk.f32.mxu1 %vm277_vm0, %v2602_v23  ;;  %2233 = vmatpush3.bf16.msra.mxu0 %v2230_v20  ;;  %v1846_v20 = vld [vmem:[%s2906_s1 + $0x118] sm:$0xff] }
  0x2f   : > { %2235 = vmatprep.subr.bf16.mxu0 %v2234_v48  ;;  %v2246_v25 = vpack.c.bf16 %v1846_v20, %v1845_v19 }
  0x30   : > { %2099 = vmatmul.mubr.msk.f32.gmra.mrb[4].mxu0 %vm277_vm0, %v2713_v9 }
  0x31   : > { %2022 = vmatmul.mubr.msk.f32.gmra.mrb[6].mxu1 %vm277_vm0, %v2605_v24  ;;  %2101 = vmatprep.mubr.msk.f32.mxu0 %vm277_vm0, %v2721_v10 }
  0x32   : > { %2032 = vmatprep.mubr.msk.f32.mxu1 %vm277_vm0, %v585_v14 }
  0x34   : > { %2102 = vmatmul.mubr.msk.f32.gmra.mrb[6].mxu0 %vm277_vm0, %v2737_v36 }
  0x35   : > { %2033 = vmatmul.mubr.msk.f32.vlgmr.msra.gmra.mrb[0].mxu1 %vm277_vm0, %v2638_v55  ;;  %2112 = vmatprep.mubr.msk.f32.mxu0 %vm277_vm0, %v2467_v35  ;;  %v1844_v55 = vld [vmem:[%s2906_s1 + $0x108] sm:$0xff] }
  0x36   : > { %2035 = vmatprep.mubr.msk.f32.mxu1 %vm277_vm0, %v2656_v45  ;;  %2205 = vmatpush3.bf16.msra.mxu1 %v2202_v26  ;;  %v2242_v17 = vpack.c.bf16 %v1844_v55, %v1843_v13 }
  0x37   : > { %2207 = vmatprep.subr.bf16.mxu1 %v2206_v1 }
  0x38   : > { %2113 = vmatmul.mubr.msk.f32.vlgmr.msra.gmra.mrb[0].mxu0 %vm277_vm0, %v2487_v44 }
  0x39   : > { %2237 = vmatpush3.bf16.msra.mxu0 %v2234_v48  ;;  %2036 = vmatmul.mubr.msk.f32.gmra.mrb[2].mxu1 %vm277_vm0, %v2674_v56 }
  0x3a   : > { %2115 = vmatprep.mubr.msk.f32.mxu0 %vm277_vm0, %v2499_v49  ;;  %2038 = vmatprep.mubr.msk.f32.mxu1 %vm277_vm0, %v2688_v62 }
  0x3b   : > { %2239 = vmatprep.subr.bf16.mxu0 %v2238_v12  ;;  %2209 = vmatpush3.bf16.msra.mxu1 %v2206_v1 }
  0x3c   : > { %2116 = vmatmul.mubr.msk.f32.gmra.mrb[2].mxu0 %vm277_vm0, %v2531_v61 }
  0x3d   : > { %2039 = vmatmul.mubr.msk.f32.gmra.mrb[4].mxu1 %vm277_vm0, %v2698_v43  ;;  %2118 = vmatprep.mubr.msk.f32.mxu0 %vm277_vm0, %v2545_v2 }
  0x3e   : > { %2041 = vmatprep.mubr.msk.f32.mxu1 %vm277_vm0, %v2713_v9  ;;  %2241 = vmatpush3.bf16.msra.mxu0 %v2238_v12 }
  0x3f   : > { %2243 = vmatprep.subr.bf16.mxu0 %v2242_v17 }
  0x40   : > { %2119 = vmatmul.mubr.msk.f32.gmra.mrb[4].mxu0 %vm277_vm0, %v2560_v8 }
  0x41   : > { %2042 = vmatmul.mubr.msk.f32.gmra.mrb[6].mxu1 %vm277_vm0, %v2721_v10  ;;  %2121 = vmatprep.mubr.msk.f32.mxu0 %vm277_vm0, %v2593_v21 }
  0x42   : > { %2052 = vmatprep.mubr.msk.f32.mxu1 %vm277_vm0, %v2455_v30  ;;  %v244_v30 = vld [vmem:[%s2434_s9 + $0x98] sm:$0x3] }
  0x43   : > { %v264_v52 = vmax.f32 %v244_v30, 0.0 }
  0x44   : > { %2122 = vmatmul.mubr.msk.f32.gmra.mrb[6].mxu0 %vm277_vm0, %v263_v53 }
  0x45   : > { %2053 = vmatmul.mubr.msk.f32.vlgmr.msra.gmra.mrb[0].mxu1 %vm277_vm0, %v2467_v35  ;;  %2132 = vmatprep.mubr.msk.f32.mxu0 %vm277_vm0, %v2527_v59  ;;  %v1231_v35 = vrot.slane %v263_v53, 1  ;;  %v1354_v59 = vrot.slane %v263_v53, 2 }
  0x46   : > { %2055 = vmatprep.mubr.msk.f32.mxu1 %vm277_vm0, %v2487_v44  ;;  %v1232_v44 = vrot.slane %v264_v52, 1 }
  0x48   : > { %2133 = vmatmul.mubr.msk.f32.vlgmr.msra.gmra.mrb[0].mxu0 %vm277_vm0, %v2540_v0 }
  0x49   : > { %2245 = vmatpush3.bf16.msra.mxu0 %v2242_v17  ;;  %2056 = vmatmul.mubr.msk.f32.gmra.mrb[2].mxu1 %vm277_vm0, %v2499_v49  ;;  %v1233_v49 = vsel %vm423_vm1, %v1231_v35, %v1232_v44  ;;  %v1642_v35 = vrot.slane %v2459_v32, 1  ;;  %v1643_v44 = vrot.slane %v2462_v33, 1 }
  0x4a   : > { %2135 = vmatprep.mubr.msk.f32.mxu0 %vm277_vm0, %v2571_v11  ;;  %2058 = vmatprep.mubr.msk.f32.mxu1 %vm277_vm0, %v2531_v61  ;;  %v1355_v61 = vrot.slane %v264_v52, 2 }
  0x4b   : > { %2247 = vmatprep.subr.bf16.mxu0 %v2246_v25 }
  0x4c   : > { %2136 = vmatmul.mubr.msk.f32.gmra.mrb[2].mxu0 %vm277_vm0, %v2581_v16  ;;  %v1356_v0 = vsel %vm582_vm2, %v1354_v59, %v1355_v61  ;;  %v1640_v59 = vrot.slane %v2450_v28, 1  ;;  %v1855_v61 = vld [vmem:[%s2909_s4] ss:$0 sm:$0xff]  ;;  %v1646_v28 = vrot.slane %v2474_v38, 1 }
  0x4d   : > { %2059 = vmatmul.mubr.msk.f32.gmra.mrb[4].mxu1 %vm277_vm0, %v2545_v2  ;;  %2138 = vmatprep.mubr.msk.f32.mxu0 %vm277_vm0, %v2602_v23  ;;  %v1485_v2 = vld [vmem:[%s2908_s3] sm:$0xff] }
  0x4e   : > { %2061 = vmatprep.mubr.msk.f32.mxu1 %vm277_vm0, %v2560_v8  ;;  %2249 = vmatpush3.bf16.msra.mxu0 %v2246_v25 }
  0x4f   : > { %2164 = vmatprep.subr.mxu1 %v1485_v2 }
  0x50   : > { %2139 = vmatmul.mubr.msk.f32.gmra.mrb[4].mxu0 %vm277_vm0, %v2605_v24  ;;  %2165 = vmatpush3.msra.mxu1 %v1485_v2  ;;  %v1644_v2 = vsel %vm423_vm1, %v1642_v35, %v1643_v44 }
  0x51   : > { %2062 = vmatmul.mubr.msk.f32.gmra.mrb[6].mxu1 %vm277_vm0, %v2593_v21  ;;  %2141 = vmatprep.mubr.msk.f32.mxu0 %vm277_vm0, %v2633_v31 }
  0x54   : > { %2142 = vmatmul.mubr.msk.f32.gmra.mrb[6].mxu0 %vm277_vm0, %v1233_v49  ;;  %v1639_v49 = vrot.slane %v2447_v27, 1  ;;  %v1645_v27 = vrot.slane %v2471_v37, 1  ;;  %v1655_v37 = vrot.slane %v2535_v63, 1 }
  0x55   : > { %2152 = vmatprep.mubr.msk.f32.mxu0 %vm277_vm0, %v2656_v45 }
  0x56   : > { %v1641_v33 = vsel %vm423_vm1, %v1639_v49, %v1640_v59 }
  0x58   : > { %2153 = vmatmul.mubr.msk.f32.vlgmr.msra.gmra.mrb[0].mxu0 %vm277_vm0, %v2674_v56  ;;  %v1750_v56 = vld [vmem:[%s2907_s2] ss:$0 sm:$0xff] }
  0x59   : > { %2155 = vmatprep.mubr.msk.f32.mxu0 %vm277_vm0, %v2688_v62 }
  0x5c   : > { %2156 = vmatmul.mubr.msk.f32.gmra.mrb[2].mxu0 %vm277_vm0, %v2698_v43 }
  0x5d   : > { %2158 = vmatprep.mubr.msk.f32.mxu0 %vm277_vm0, %v2713_v9 }
  0x60   : > { %2159 = vmatmul.mubr.msk.f32.gmra.mrb[4].mxu0 %vm277_vm0, %v2721_v10 }
  0x61   : > { %2161 = vmatprep.mubr.msk.f32.mxu0 %vm277_vm0, %v2737_v36 }
  0x64   : > { %2162 = vmatmul.mubr.msk.f32.gmra.mrb[6].mxu0 %vm277_vm0, %v1356_v0 }
 0x118   : > { %v2054_v8 = vpop.f32.mrb[0].mxu1 }
 0x119   : > { %v815_v11 = vpop.f32.mrb[1].mxu1  ;;  %v2250_v26 = vadd.f32 %v2054_v8, %v1750_v56  ;;  %v1648_v8 = vrot.slane %v2477_v39, 1 }
 0x11a   : > { %v2252_v62 = vadd.f32 %v1750_v56, %v815_v11  ;;  %v1649_v11 = vrot.slane %v2491_v46, 1 }
 0x11c   : > { %v2057_v16 = vpop.f32.mrb[2].mxu1  ;;  %v1650_v46 = vsel %vm423_vm1, %v1648_v8, %v1649_v11 }
 0x11d   : > { %v825_v21 = vpop.f32.mrb[3].mxu1  ;;  %v2254_v34 = vadd.f32 %v2057_v16, %v1750_v56 }
 0x11e   : > { %v2256_v47 = vadd.f32 %v1750_v56, %v825_v21 }
 0x120   : > { %v2060_v23 = vpop.f32.mrb[4].mxu1 }
 0x121   : > { %v835_v24 = vpop.f32.mrb[5].mxu1  ;;  %v2258_v14 = vadd.f32 %v2060_v23, %v1750_v56 }
 0x122   : > { %v2260_v60 = vadd.f32 %v1750_v56, %v835_v24 }
 0x124   : > { %v2063_v31 = vpop.f32.mrb[6].mxu1 }
 0x125   : > { %v845_v45 = vpop.f32.mrb[7].mxu1  ;;  %v2262_v13 = vadd.f32 %v2063_v31, %v1750_v56  ;;  %v1654_v31 = vrot.slane %v2505_v51, 1 }
 0x126   : > { %v2264_v55 = vadd.f32 %v1750_v56, %v845_v45  ;;  %v1647_v56 = vsel %vm423_vm1, %v1645_v27, %v1646_v28 }
 0x127   : > { %v1656_v63 = vsel %vm423_vm1, %v1654_v31, %v1655_v37 }
 0x12b   : > { %v2154_v40 = vpop.f32.mrb[0].mxu0 }
 0x12c   : > { %v2251_v42 = vadd.f32 %v2250_v26, %v2154_v40  ;;  %v1430_v43 = vpop.f32.mrb[1].mxu0  ;;  %v1651_v26 = vrot.slane %v2502_v50, 1 }
 0x12d   : > { %v2253_v41 = vadd.f32 %v2252_v62, %v1430_v43  ;;  %v1652_v62 = vrot.slane %v2519_v57, 1 }
 0x12e   : > { %v1478_v9 = vmax.f32 %v2251_v42, 0.0 }
 0x12f   : > { %v1477_v3 = vmax.f32 %v2253_v41, 0.0  ;;  %v2157_v48 = vpop.f32.mrb[2].mxu0  ;;  %v1660_v41 = vrot.slane %v2552_v5, 1  ;;  %v1653_v57 = vsel %vm423_vm1, %v1651_v26, %v1652_v62 }
 0x130   : > { %v2255_v54 = vadd.f32 %v2254_v34, %v2157_v48  ;;  %v1440_v29 = vpop.f32.mrb[3].mxu0  ;;  %v1661_v34 = vrot.slane %v2578_v15, 1  ;;  %v1658_v48 = vrot.slane %v2549_v4, 1 }
 0x131   : > { %v2257_v10 = vadd.f32 %v2256_v47, %v1440_v29  ;;  %2166 = vmatprep.mubr.msk.f32.mxu1 %vm1493_vm3, %v1477_v3  ;;  %v1657_v3 = vrot.slane %v2522_v58, 1 }
 0x132   : > { %2167 = vmatmul.mubr.msk.f32.vlgmr.msra.gmra.mrb[8].mxu1 %vm1493_vm3, %v1478_v9  ;;  %v1480_v1 = vmax.f32 %v2255_v54, 0.0  ;;  %v1662_v15 = vsel %vm423_vm1, %v1660_v41, %v1661_v34 }
 0x133   : > { %v1479_v22 = vmax.f32 %v2257_v10, 0.0  ;;  %v2160_v36 = vpop.f32.mrb[4].mxu0 }
 0x134   : > { %v2259_v6 = vadd.f32 %v2258_v14, %v2160_v36  ;;  %v1450_v7 = vpop.f32.mrb[5].mxu0 }
 0x135   : > { %v2261_v12 = vadd.f32 %v2260_v60, %v1450_v7  ;;  %2169 = vmatprep.mubr.msk.f32.mxu1 %vm1493_vm3, %v1479_v22  ;;  %v1659_v60 = vsel %vm423_vm1, %v1657_v3, %v1658_v48 }
 0x136   : > { %2170 = vmatmul.mubr.msk.f32.gmra.mrb[10].mxu1 %vm1493_vm3, %v1480_v1  ;;  %v1482_v53 = vmax.f32 %v2259_v6, 0.0 }
 0x137   : > { %v1481_v17 = vmax.f32 %v2261_v12, 0.0  ;;  %v2163_v18 = vpop.f32.mrb[6].mxu0 }
 0x138   : > { %v2263_v19 = vadd.f32 %v2262_v13, %v2163_v18  ;;  %v1460_v20 = vpop.f32.mrb[7].mxu0 }
 0x139   : > { %v2265_v30 = vadd.f32 %v2264_v55, %v1460_v20  ;;  %2172 = vmatprep.mubr.msk.f32.mxu1 %vm1493_vm3, %v1481_v17 }
 0x13a   : > { %2173 = vmatmul.mubr.msk.f32.gmra.mrb[12].mxu1 %vm1493_vm3, %v1482_v53  ;;  %v1484_v52 = vmax.f32 %v2263_v19, 0.0 }
 0x13b   : > { %v1483_v25 = vmax.f32 %v2265_v30, 0.0 }
 0x13d   : > { %2175 = vmatprep.mubr.msk.f32.mxu1 %vm1493_vm3, %v1483_v25 }
 0x13e   : > { %2176 = vmatmul.mubr.msk.f32.gmra.mrb[14].mxu1 %vm1493_vm3, %v1484_v52 }
 0x205   : > { %v2168_v0 = vpop.f32.mrb[8].mxu1 }
 0x206   : > { %v1590_v16 = vadd.f32 %v2168_v0, %v1855_v61  ;;  %v1584_v32 = vpop.f32.mrb[9].mxu1 }
 0x207   : > { %v1585_v21 = vadd.f32 %v1855_v61, %v1584_v32 }
 0x208   : > { %v1672_v23 = vadd.f32 %v1644_v2, %v1590_v16 }
 0x209   : > { %v1671_v39 = vadd.f32 %v1641_v33, %v1585_v21  ;;  %v2171_v24 = vpop.f32.mrb[10].mxu1 }
 0x20a   : > { %1680 = vst.msk [vmem:[%s2870_s12 + $0x8] sm:$0xff] %vm277_vm0, %v1672_v23  ;;  %v1600_v38 = vadd.f32 %v2171_v24, %v1855_v61  ;;  %v1594_v45 = vpop.f32.mrb[11].mxu1 }
 0x20b   : > { %1679 = vst.msk [vmem:[%s2870_s12] sm:$0xff] %vm277_vm0, %v1671_v39  ;;  %v1595_v40 = vadd.f32 %v1855_v61, %v1594_v45 }
 0x20c   : > { %v1674_v42 = vadd.f32 %v1650_v46, %v1600_v38 }
 0x20d   : > { %v1673_v43 = vadd.f32 %v1647_v56, %v1595_v40  ;;  %v2174_v51 = vpop.f32.mrb[12].mxu1 }
 0x20e   : > { %1682 = vst.msk [vmem:[%s2870_s12 + $0x18] sm:$0xff] %vm277_vm0, %v1674_v42  ;;  %v1610_v50 = vadd.f32 %v2174_v51, %v1855_v61  ;;  %v1604_v47 = vpop.f32.mrb[13].mxu1 }
 0x20f   : > { %1681 = vst.msk [vmem:[%s2870_s12 + $0x10] sm:$0xff] %vm277_vm0, %v1673_v43  ;;  %v1605_v9 = vadd.f32 %v1855_v61, %v1604_v47 }
 0x210   : > { %v1676_v54 = vadd.f32 %v1656_v63, %v1610_v50 }
 0x211   : > { %v1675_v5 = vadd.f32 %v1653_v57, %v1605_v9  ;;  %v2177_v29 = vpop.f32.mrb[14].mxu1 }
 0x212   : > { %1684 = vst.msk [vmem:[%s2870_s12 + $0x28] sm:$0xff] %vm277_vm0, %v1676_v54  ;;  %v1620_v10 = vadd.f32 %v2177_v29, %v1855_v61  ;;  %v1614_v14 = vpop.f32.mrb[15].mxu1 }
 0x213   : > { %1683 = vst.msk [vmem:[%s2870_s12 + $0x20] sm:$0xff] %vm277_vm0, %v1675_v5  ;;  %v1615_v58 = vadd.f32 %v1855_v61, %v1614_v14 }
 0x214   : > { %v1678_v22 = vadd.f32 %v1662_v15, %v1620_v10 }
 0x215   : > { %v1677_v4 = vadd.f32 %v1659_v60, %v1615_v58 }
 0x216   : > { %1686 = vst.msk [vmem:[%s2870_s12 + $0x38] sm:$0xff] %vm277_vm0, %v1678_v22 }
 0x217   : > { %1685 = vst.msk [vmem:[%s2870_s12 + $0x30] sm:$0xff] %vm277_vm0, %v1677_v4 }
 0x218 PF: > { %s15_s18 = sadd.s32 1, %s2337_s18  }
 0x219   : > { %p12_p4 = scmp.ge.s32.totalorder %s15_s18, 4  }
 0x21b   :  { %14 = sbr.rel (!%p12_p4) target bundleno = 1 (0x1), region = 78 }

// kernel: decoder_forward.8
= control target key start
LH: loop header
LB: loop body
LE: loop exit
PB: predicated region body
PF: predicated region fallthrough
CT: control target
= control target key end

     0   :  { %s3396_s12 = smov 0   ;;  %s4151_s0 = inlined_call_operand.vmem [shape: f32[2,10,10,32], index: 0, kind: input, shape index: {}]   ;;  %s4152_s1 = inlined_call_operand.vmem [shape: f32[4,4,32,16], index: 1, kind: input, shape index: {}]   ;;  %s4153_s2 = inlined_call_operand.vmem [shape: f32[1,16], index: 2, kind: input, shape index: {}]   ;;  %s4154_s3 = inlined_call_operand.vmem [shape: f32[2,4,64,16], index: 3, kind: output, shape index: {}]  }
   0x1 LB: > { %s2364_s13 = sadd.s32 4294967295, %s3374_s12   ;;  %p2368_p0 = scmp.ge.s32.totalorder %s3374_s12, 1  ;;  %s3374_s12 = sphi %s3396_s12, %s13_s12  }
   0x2   : > { %p137_p1 = scmp.lt.s32.totalorder %s3374_s12, 3 }
   0x4   : > { %p138_p2 = pnand %p2368_p0, %p137_p1 }
   0x5   : > { %v219_v0 = vld [vmem:[%s4152_s1] sm:$0xff] (!%p138_p2)  ;;  %v220_v1 = vld [vmem:[%s4152_s1 + $0x8] sm:$0xff] (!%p138_p2)  ;;  %p161_p3 = scmp.lt.s32.totalorder (!%p138_p2), %s2364_s13, 1  ;;  %v221_v5 = vld [vmem:[%s4152_s1 + $0x10] sm:$0xff] (!%p138_p2)  ;;  %vm223_vm0 = vcmask (!%p138_p2), 261120   ;;  %vm369_vm1 = vcmask (!%p138_p2), 1046528  }
   0x6   : > { %141 = sbr.rel (%p138_p2) target bundleno = 364 (0x16c), region = 32  ;;  %v2418_v2 = vld [vmem:[%s4152_s1 + $0x80] sm:$0xff] (!%p138_p2)  ;;  %v3103_v3 = vpack.c.bf16 (!%p138_p2), %v220_v1, %v219_v0  ;;  %v2419_v4 = vld [vmem:[%s4152_s1 + $0x88] sm:$0xff] (!%p138_p2)  ;;  %v222_v6 = vld [vmem:[%s4152_s1 + $0x18] sm:$0xff] (!%p138_p2)  ;;  %vm908_vm2 = vcmask (!%p138_p2), 1045504   ;;  %vm773_vm3 = vcmask (!%p138_p2), 130048  }
   0x7   : > { %v3135_v7 = vpack.c.bf16 (!%p138_p2), %v2419_v4, %v2418_v2  ;;  %v3107_v8 = vpack.c.bf16 (!%p138_p2), %v222_v6, %v221_v5  ;;  %v2420_v9 = vld [vmem:[%s4152_s1 + $0x90] sm:$0xff] (!%p138_p2)  ;;  %v2421_v10 = vld [vmem:[%s4152_s1 + $0x98] sm:$0xff] (!%p138_p2)  ;;  %v2381_v11 = vld [vmem:[%s4152_s1 + $0x20] sm:$0xff] (!%p138_p2) }
   0x8   : > { %3104 = vmatprep.subr.bf16.mxu0 (!%p138_p2), %v3103_v3  ;;  %v3139_v12 = vpack.c.bf16 (!%p138_p2), %v2421_v10, %v2420_v9  ;;  %v2382_v13 = vld [vmem:[%s4152_s1 + $0x28] sm:$0xff] (!%p138_p2)  ;;  %v2430_v14 = vld [vmem:[%s4152_s1 + $0xa0] sm:$0xff] (!%p138_p2)  ;;  %v2383_v17 = vld [vmem:[%s4152_s1 + $0x30] sm:$0xff] (!%p138_p2) }
   0x9   : > { %v2431_v15 = vld [vmem:[%s4152_s1 + $0xa8] sm:$0xff] (!%p138_p2)  ;;  %3106 = vmatpush3.bf16.msra.mxu0 (!%p138_p2), %v3103_v3  ;;  %3136 = vmatprep.subr.bf16.mxu1 (!%p138_p2), %v3135_v7  ;;  %v3111_v16 = vpack.c.bf16 (!%p138_p2), %v2382_v13, %v2381_v11  ;;  %v2384_v18 = vld [vmem:[%s4152_s1 + $0x38] sm:$0xff] (!%p138_p2)  ;;  %v2432_v19 = vld [vmem:[%s4152_s1 + $0xb0] sm:$0xff] (!%p138_p2) }
   0xa   : > { %3138 = vmatpush3.bf16.msra.mxu1 (!%p138_p2), %v3135_v7  ;;  %3108 = vmatprep.subr.bf16.mxu0 (!%p138_p2), %v3107_v8  ;;  %v3143_v20 = vpack.c.bf16 (!%p138_p2), %v2431_v15, %v2430_v14  ;;  %v2433_v21 = vld [vmem:[%s4152_s1 + $0xb8] sm:$0xff] (!%p138_p2)  ;;  %v2393_v22 = vld [vmem:[%s4152_s1 + $0x40] sm:$0xff] (!%p138_p2)  ;;  %v2394_v23 = vld [vmem:[%s4152_s1 + $0x48] sm:$0xff] (!%p138_p2)  ;;  %v3115_v32 = vpack.c.bf16 (!%p138_p2), %v2384_v18, %v2383_v17 }
   0xb   : > { %3140 = vmatprep.subr.bf16.mxu1 (!%p138_p2), %v3139_v12  ;;  %v3488_v38 = vpack.c.bf16 (!%p138_p2), %v2433_v21, %v2432_v19  ;;  %v3490_v39 = vpack.c.bf16 (!%p138_p2), %v2394_v23, %v2393_v22  ;;  %v2442_v57 = vld [vmem:[%s4152_s1 + $0xc0] sm:$0xff] (!%p138_p2)  ;;  %v2443_v63 = vld [vmem:[%s4152_s1 + $0xc8] sm:$0xff] (!%p138_p2)  ;;  %v2395_v23 = vld [vmem:[%s4152_s1 + $0x50] sm:$0xff] (!%p138_p2) }
   0xd   : > { %s4156_s13 = smov (!%p161_p3, %s2364_s13), 1  ;;  %3110 = vmatpush3.bf16.msra.mxu0 %v3107_v8 }
   0xe   : > { %s3359_s11 = smul.u32 160, %s4156_s13  ;;  %3142 = vmatpush3.bf16.msra.mxu1 %v3139_v12  ;;  %3112 = vmatprep.subr.bf16.mxu0 %v3111_v16  ;;  %s2590_s21 = sshll.u32 %s4156_s13, 8 }
   0xf   : > { %3144 = vmatprep.subr.bf16.mxu1 %v3143_v20  ;;  %s4050_s27 = scalar_lea.vmem %s4154_s3, %s2590_s21 }
  0x10   : > { %s3455_s22 = scalar_lea.vmem %s4151_s0, %s3359_s11 }
  0x11   : > { %v171_v24 = vld [vmem:[%s3455_s22] sm:$0xff]  ;;  %v173_v25 = vld [vmem:[%s3455_s22 + $0x10] sm:$0xff]  ;;  %v3469_v26 = vld [vmem:[%s3455_s22 + $0x8] sm:$0x3] }
  0x12   : > { %v3471_v27 = vmax.f32 %v171_v24, 0.0  ;;  %v3473_v28 = vmax.f32 %v173_v25, 0.0  ;;  %v192_v29 = vmax.f32 %v3469_v26, 0.0  ;;  %v175_v30 = vld [vmem:[%s3455_s22 + $0x20] sm:$0xff]  ;;  %v3478_v31 = vld [vmem:[%s3455_s22 + $0x18] sm:$0x3] }
  0x13   : > { %v3480_v33 = vmax.f32 %v175_v30, 0.0  ;;  %v194_v34 = vmax.f32 %v3478_v31, 0.0  ;;  %v177_v35 = vld [vmem:[%s3455_s22 + $0x30] sm:$0xff]  ;;  %v3485_v36 = vld [vmem:[%s3455_s22 + $0x28] sm:$0x3]  ;;  %v179_v37 = vld [vmem:[%s3455_s22 + $0x40] sm:$0xff] }
  0x14   : > { %2791 = vmatprep.mubr.msk.f32.mxu0 %vm223_vm0, %v3471_v27  ;;  %v370_v40 = vrot.slane %v3471_v27, 1  ;;  %v371_v41 = vrot.slane %v192_v29, 1  ;;  %v373_v42 = vrot.slane %v3473_v28, 1  ;;  %v3498_v43 = vmax.f32 %v177_v35, 0.0  ;;  %v3501_v44 = vld [vmem:[%s3455_s22 + $0x38] sm:$0x3] }
  0x15   : > { %2792 = vmatmul.mubr.msk.f32.vlgmr.msra.gmra.mrb[0].mxu0 %vm223_vm0, %v3473_v28  ;;  %v374_v45 = vrot.slane %v194_v34, 1  ;;  %v196_v46 = vmax.f32 %v3485_v36, 0.0  ;;  %v376_v47 = vrot.slane %v3480_v33, 1  ;;  %v3509_v48 = vmax.f32 %v179_v37, 0.0  ;;  %v181_v49 = vld [vmem:[%s3455_s22 + $0x50] sm:$0xff]  ;;  %v183_v50 = vld [vmem:[%s3455_s22 + $0x60] sm:$0xff] }
  0x16   : > { %v3514_v51 = vsel %vm369_vm1, %v370_v40, %v371_v41  ;;  %2794 = vmatprep.mubr.msk.f32.mxu0 %vm223_vm0, %v3480_v33  ;;  %3114 = vmatpush3.bf16.msra.mxu0 %v3111_v16  ;;  %v198_v52 = vmax.f32 %v3501_v44, 0.0  ;;  %v379_v53 = vrot.slane %v3498_v43, 1  ;;  %v3520_v54 = vmax.f32 %v181_v49, 0.0  ;;  %v3523_v55 = vld [vmem:[%s3455_s22 + $0x48] sm:$0x3]  ;;  %v185_v56 = vld [vmem:[%s3455_s22 + $0x70] sm:$0xff] }
  0x17   : > { %2871 = vmatprep.mubr.msk.f32.mxu1 %vm223_vm0, %v3514_v51  ;;  %v3532_v58 = vsel %vm369_vm1, %v373_v42, %v374_v45  ;;  %v377_v59 = vrot.slane %v196_v46, 1  ;;  %3116 = vmatprep.subr.bf16.mxu0 %v3115_v32  ;;  %v200_v60 = vmax.f32 %v3523_v55, 0.0  ;;  %v382_v61 = vrot.slane %v3509_v48, 1  ;;  %v3539_v62 = vld [vmem:[%s3455_s22 + $0x58] sm:$0x3]  ;;  %v2444_v37 = vld [vmem:[%s4152_s1 + $0xd0] sm:$0xff] }
  0x18   : > { %2872 = vmatmul.mubr.msk.f32.vlgmr.msra.gmra.mrb[0].mxu1 %vm223_vm0, %v3532_v58  ;;  %v380_v0 = vrot.slane %v198_v52, 1  ;;  %v3548_v1 = vmax.f32 %v183_v50, 0.0  ;;  %v202_v2 = vmax.f32 %v3539_v62, 0.0  ;;  %v385_v3 = vrot.slane %v3520_v54, 1  ;;  %v3553_v4 = vld [vmem:[%s3455_s22 + $0x68] sm:$0x3] }
  0x19   : > { %3146 = vmatpush3.bf16.msra.mxu1 %v3143_v20  ;;  %2795 = vmatmul.mubr.msk.f32.gmra.mrb[2].mxu0 %vm223_vm0, %v3498_v43  ;;  %v3558_v5 = vsel %vm369_vm1, %v376_v47, %v377_v59  ;;  %v383_v6 = vrot.slane %v200_v60, 1  ;;  %v3562_v7 = vmax.f32 %v185_v56, 0.0  ;;  %v204_v8 = vmax.f32 %v3553_v4, 0.0  ;;  %v3566_v9 = vld [vmem:[%s3455_s22 + $0x78] sm:$0x3]  ;;  %v2405_v40 = vld [vmem:[%s4152_s1 + $0x60] sm:$0xff] }
  0x1a   : > { %2874 = vmatprep.mubr.msk.f32.mxu1 %vm223_vm0, %v3558_v5  ;;  %2797 = vmatprep.mubr.msk.f32.mxu0 %vm223_vm0, %v3509_v48  ;;  %v3573_v10 = vsel %vm369_vm1, %v379_v53, %v380_v0  ;;  %v386_v11 = vrot.slane %v202_v2, 1  ;;  %v388_v12 = vrot.slane %v3548_v1, 1  ;;  %v206_v13 = vmax.f32 %v3566_v9, 0.0  ;;  %v2396_v24 = vld [vmem:[%s4152_s1 + $0x58] sm:$0xff]  ;;  %v2406_v41 = vld [vmem:[%s4152_s1 + $0x68] sm:$0xff]  ;;  %v2454_v49 = vld [vmem:[%s4152_s1 + $0xe0] sm:$0xff] }
  0x1b   : > { %v3580_v14 = vsel %vm369_vm1, %v382_v61, %v383_v6  ;;  %3148 = vmatprep.subr.bf16.mxu1 %v3488_v38  ;;  %3118 = vmatpush3.bf16.msra.mxu0 %v3115_v32  ;;  %v389_v15 = vrot.slane %v204_v8, 1  ;;  %v3151_v16 = vpack.c.bf16 %v2443_v63, %v2442_v57  ;;  %v391_v18 = vrot.slane %v3562_v7, 1  ;;  %v2445_v31 = vld [vmem:[%s4152_s1 + $0xd8] sm:$0xff]  ;;  %v189_v53 = vld [vmem:[%s3455_s22 + $0x90] sm:$0xff] }
  0x1c   : > { %2875 = vmatmul.mubr.msk.f32.gmra.mrb[2].mxu1 %vm223_vm0, %v3573_v10  ;;  %3120 = vmatprep.subr.bf16.mxu0 %v3490_v39  ;;  %v3593_v17 = vsel %vm369_vm1, %v385_v3, %v386_v11  ;;  %v392_v19 = vrot.slane %v206_v13, 1  ;;  %v909_v21 = vrot.slane %v3471_v27, 2  ;;  %v910_v22 = vrot.slane %v192_v29, 2  ;;  %v190_v55 = vld [vmem:[%s3455_s22 + $0x98] sm:$0x3]  ;;  %v2407_v9 = vld [vmem:[%s4152_s1 + $0x70] sm:$0xff] }
  0x1d   : > { %2798 = vmatmul.mubr.msk.f32.gmra.mrb[4].mxu0 %vm223_vm0, %v3520_v54  ;;  %2877 = vmatprep.mubr.msk.f32.mxu1 %vm223_vm0, %v3580_v14  ;;  %v3602_v20 = vsel %vm369_vm1, %v388_v12, %v389_v15  ;;  %v912_v26 = vrot.slane %v3473_v28, 2  ;;  %v913_v27 = vrot.slane %v194_v34, 2  ;;  %v915_v30 = vrot.slane %v3480_v33, 2 }
  0x1e   : > { %2800 = vmatprep.mubr.msk.f32.mxu0 %vm223_vm0, %v3548_v1  ;;  %3150 = vmatpush3.bf16.msra.mxu1 %v3488_v38  ;;  %v3620_v25 = vsel %vm369_vm1, %v391_v18, %v392_v19  ;;  %v911_v29 = vsel %vm908_vm2, %v909_v21, %v910_v22  ;;  %v916_v32 = vrot.slane %v196_v46, 2  ;;  %v3123_v35 = vpack.c.bf16 %v2396_v24, %v2395_v23  ;;  %v2456_v19 = vld [vmem:[%s4152_s1 + $0xf0] sm:$0xff]  ;;  %v2457_v21 = vld [vmem:[%s4152_s1 + $0xf8] sm:$0xff]  ;;  %v2475_v22 = vld [vmem:[%s4152_s1 + $0x100] sm:$0xff] }
  0x1f   : > { %3152 = vmatprep.subr.bf16.mxu1 %v3151_v16  ;;  %v3643_v34 = vsel %vm908_vm2, %v912_v26, %v913_v27  ;;  %v918_v36 = vrot.slane %v3498_v43, 2  ;;  %v919_v38 = vrot.slane %v198_v52, 2  ;;  %v921_v42 = vrot.slane %v3509_v48, 2  ;;  %v2476_v23 = vld [vmem:[%s4152_s1 + $0x108] sm:$0xff]  ;;  %v187_v24 = vld [vmem:[%s3455_s22 + $0x80] sm:$0xff] }
  0x20   : > { %2878 = vmatmul.mubr.msk.f32.gmra.mrb[4].mxu1 %vm223_vm0, %v3593_v17  ;;  %v922_v44 = vrot.slane %v200_v60, 2  ;;  %v3661_v45 = vsel %vm908_vm2, %v915_v30, %v916_v32  ;;  %v3155_v46 = vpack.c.bf16 %v2445_v31, %v2444_v37  ;;  %v3127_v47 = vpack.c.bf16 %v2406_v41, %v2405_v40  ;;  %v188_v26 = vld [vmem:[%s3455_s22 + $0x88] sm:$0x3]  ;;  %v2532_v30 = vld [vmem:[%s4152_s1 + $0x180] sm:$0xff]  ;;  %v2477_v40 = vld [vmem:[%s4152_s1 + $0x110] sm:$0xff] }
  0x21   : > { %2801 = vmatmul.mubr.msk.f32.gmra.mrb[6].mxu0 %vm223_vm0, %v3562_v7  ;;  %2880 = vmatprep.mubr.msk.f32.mxu1 %vm223_vm0, %v3602_v20  ;;  %v3674_v50 = vsel %vm908_vm2, %v918_v36, %v919_v38  ;;  %v925_v52 = vrot.slane %v202_v2, 2  ;;  %v927_v57 = vrot.slane %v3548_v1, 2  ;;  %v928_v59 = vrot.slane %v204_v8, 2  ;;  %v2533_v32 = vld [vmem:[%s4152_s1 + $0x188] sm:$0xff]  ;;  %v2478_v41 = vld [vmem:[%s4152_s1 + $0x118] sm:$0xff] }
  0x22   : > { %2811 = vmatprep.mubr.msk.f32.mxu0 %vm223_vm0, %v3514_v51  ;;  %v924_v51 = vrot.slane %v3520_v54, 2  ;;  %v3686_v56 = vsel %vm908_vm2, %v921_v42, %v922_v44  ;;  %v3691_v60 = vmax.f32 %v189_v53, 0.0  ;;  %v210_v62 = vmax.f32 %v190_v55, 0.0  ;;  %v2544_v53 = vld [vmem:[%s4152_s1 + $0x1a0] sm:$0xff]  ;;  %v2545_v55 = vld [vmem:[%s4152_s1 + $0x1a8] sm:$0xff] }
  0x23   : > { %v930_v63 = vrot.slane %v3562_v7, 2  ;;  %v931_v4 = vrot.slane %v206_v13, 2  ;;  %v3710_v11 = vsel %vm908_vm2, %v927_v57, %v928_v59  ;;  %v2408_v13 = vld [vmem:[%s4152_s1 + $0x78] sm:$0xff]  ;;  %v3163_v27 = vpack.c.bf16 %v2457_v21, %v2456_v19  ;;  %v2557_v19 = vld [vmem:[%s4152_s1 + $0x1c8] sm:$0xff] }
  0x24   : > { %2881 = vmatmul.mubr.msk.f32.gmra.mrb[6].mxu1 %vm223_vm0, %v3620_v25  ;;  %v1683_v0 = vrot.slane %v3691_v60, 1  ;;  %v2177_v2 = vrot.slane %v3691_v60, 2  ;;  %v3703_v3 = vsel %vm908_vm2, %v924_v51, %v925_v52  ;;  %v1684_v6 = vrot.slane %v210_v62, 1 }
  0x25   : > { %2812 = vmatmul.mubr.msk.f32.vlgmr.msra.gmra.mrb[0].mxu0 %vm223_vm0, %v3532_v58  ;;  %2891 = vmatprep.mubr.msk.f32.mxu1 %vm223_vm0, %v911_v29  ;;  %v2178_v8 = vrot.slane %v210_v62, 2  ;;  %v3131_v18 = vpack.c.bf16 %v2408_v13, %v2407_v9  ;;  %v3167_v29 = vpack.c.bf16 %v2476_v23, %v2475_v22  ;;  %v208_v37 = vmax.f32 %v188_v26, 0.0  ;;  %v2489_v62 = vld [vmem:[%s4152_s1 + $0x130] sm:$0xff]  ;;  %v2502_v23 = vld [vmem:[%s4152_s1 + $0x158] sm:$0xff] }
  0x26   : > { %2814 = vmatprep.mubr.msk.f32.mxu0 %vm223_vm0, %v3558_v5  ;;  %3122 = vmatpush3.bf16.msra.mxu0 %v3490_v39  ;;  %v2455_v39 = vld [vmem:[%s4152_s1 + $0xe8] sm:$0xff]  ;;  %v3713_v12 = vsel %vm369_vm1, %v1683_v0, %v1684_v6  ;;  %v3199_v31 = vpack.c.bf16 %v2533_v32, %v2532_v30  ;;  %v3171_v44 = vpack.c.bf16 %v2478_v41, %v2477_v40  ;;  %v2547_v6 = vld [vmem:[%s4152_s1 + $0x1b8] sm:$0xff]  ;;  %v2501_v22 = vld [vmem:[%s4152_s1 + $0x150] sm:$0xff] }
  0x27   : > { %3124 = vmatprep.subr.bf16.mxu0 %v3123_v35  ;;  %v3159_v61 = vpack.c.bf16 %v2455_v39, %v2454_v49  ;;  %v3716_v15 = vsel %vm908_vm2, %v2177_v2, %v2178_v8  ;;  %v651_v38 = vrot.slane %v208_v37, 1  ;;  %v2487_v49 = vld [vmem:[%s4152_s1 + $0x120] sm:$0xff]  ;;  %v2488_v39 = vld [vmem:[%s4152_s1 + $0x128] sm:$0xff]  ;;  %v3207_v57 = vpack.c.bf16 %v2545_v55, %v2544_v53  ;;  %v2558_v26 = vld [vmem:[%s4152_s1 + $0x1d0] sm:$0xff] }
  0x28   : > { %2892 = vmatmul.mubr.msk.f32.vlgmr.msra.gmra.mrb[0].mxu1 %vm223_vm0, %v3643_v34  ;;  %v3175_v52 = vpack.c.bf16 %v2488_v39, %v2487_v49  ;;  %v2500_v8 = vld [vmem:[%s4152_s1 + $0x148] sm:$0xff]  ;;  %v2570_v41 = vld [vmem:[%s4152_s1 + $0x1f0] sm:$0xff] }
  0x29   : > { %3154 = vmatpush3.bf16.msra.mxu1 %v3151_v16  ;;  %2815 = vmatmul.mubr.msk.f32.gmra.mrb[2].mxu0 %vm223_vm0, %v3573_v10  ;;  %v3731_v16 = vsel %vm908_vm2, %v930_v63, %v931_v4  ;;  %v2490_v63 = vld [vmem:[%s4152_s1 + $0x138] sm:$0xff]  ;;  %v2546_v4 = vld [vmem:[%s4152_s1 + $0x1b0] sm:$0xff] }
  0x2a   : > { %2894 = vmatprep.mubr.msk.f32.mxu1 %vm223_vm0, %v3661_v45  ;;  %2817 = vmatprep.mubr.msk.f32.mxu0 %vm223_vm0, %v3580_v14  ;;  %v3179_v2 = vpack.c.bf16 %v2490_v63, %v2489_v62  ;;  %v3211_v9 = vpack.c.bf16 %v2547_v6, %v2546_v4 }
  0x2b   : > { %3156 = vmatprep.subr.bf16.mxu1 %v3155_v46  ;;  %3126 = vmatpush3.bf16.msra.mxu0 %v3123_v35  ;;  %v3767_v35 = vmax.f32 %v187_v24, 0.0  ;;  %v3187_v24 = vpack.c.bf16 %v2502_v23, %v2501_v22 }
  0x2c   : > { %2895 = vmatmul.mubr.msk.f32.gmra.mrb[2].mxu1 %vm223_vm0, %v3674_v50  ;;  %3128 = vmatprep.subr.bf16.mxu0 %v3127_v47 }
  0x2d   : > { %2818 = vmatmul.mubr.msk.f32.gmra.mrb[4].mxu0 %vm223_vm0, %v3593_v17  ;;  %2897 = vmatprep.mubr.msk.f32.mxu1 %vm223_vm0, %v3686_v56  ;;  %v650_v36 = vrot.slane %v3767_v35, 1  ;;  %v1185_v59 = vrot.slane %v3767_v35, 2 }
  0x2e   : > { %2820 = vmatprep.mubr.msk.f32.mxu0 %vm223_vm0, %v3602_v20  ;;  %3158 = vmatpush3.bf16.msra.mxu1 %v3155_v46  ;;  %v2534_v46 = vld [vmem:[%s4152_s1 + $0x190] sm:$0xff] }
  0x2f   : > { %3160 = vmatprep.subr.bf16.mxu1 %v3159_v61  ;;  %v3795_v42 = vsel %vm369_vm1, %v650_v36, %v651_v38  ;;  %v2513_v36 = vld [vmem:[%s4152_s1 + $0x170] sm:$0xff]  ;;  %v2514_v38 = vld [vmem:[%s4152_s1 + $0x178] sm:$0xff] }
  0x30   : > { %2898 = vmatmul.mubr.msk.f32.gmra.mrb[4].mxu1 %vm223_vm0, %v3703_v3  ;;  %v3195_v40 = vpack.c.bf16 %v2514_v38, %v2513_v36 }
  0x31   : > { %2821 = vmatmul.mubr.msk.f32.gmra.mrb[6].mxu0 %vm223_vm0, %v3620_v25  ;;  %2900 = vmatprep.mubr.msk.f32.mxu1 %vm223_vm0, %v3710_v11 }
  0x32   : > { %2831 = vmatprep.mubr.msk.f32.mxu0 %vm223_vm0, %v3473_v28 }
  0x34   : > { %2901 = vmatmul.mubr.msk.f32.gmra.mrb[6].mxu1 %vm223_vm0, %v3731_v16 }
  0x35   : > { %2832 = vmatmul.mubr.msk.f32.vlgmr.msra.gmra.mrb[0].mxu0 %vm223_vm0, %v3480_v33  ;;  %2911 = vmatprep.mubr.msk.f32.mxu1 %vm223_vm0, %v3532_v58 }
  0x36   : > { %2834 = vmatprep.mubr.msk.f32.mxu0 %vm223_vm0, %v3498_v43  ;;  %3130 = vmatpush3.bf16.msra.mxu0 %v3127_v47  ;;  %v2535_v47 = vld [vmem:[%s4152_s1 + $0x198] sm:$0xff] }
  0x37   : > { %3132 = vmatprep.subr.bf16.mxu0 %v3131_v18  ;;  %v3203_v51 = vpack.c.bf16 %v2535_v47, %v2534_v46 }
  0x38   : > { %2912 = vmatmul.mubr.msk.f32.vlgmr.msra.gmra.mrb[0].mxu1 %vm223_vm0, %v3558_v5 }
  0x39   : > { %3162 = vmatpush3.bf16.msra.mxu1 %v3159_v61  ;;  %2835 = vmatmul.mubr.msk.f32.gmra.mrb[2].mxu0 %vm223_vm0, %v3509_v48  ;;  %v1186_v61 = vrot.slane %v208_v37, 2  ;;  %v2569_v37 = vld [vmem:[%s4152_s1 + $0x1e8] sm:$0xff] }
  0x3a   : > { %2914 = vmatprep.mubr.msk.f32.mxu1 %vm223_vm0, %v3573_v10  ;;  %2837 = vmatprep.mubr.msk.f32.mxu0 %vm223_vm0, %v3520_v54 }
  0x3b   : > { %3164 = vmatprep.subr.bf16.mxu1 %v3163_v27  ;;  %3134 = vmatpush3.bf16.msra.mxu0 %v3131_v18  ;;  %v3855_v0 = vsel %vm908_vm2, %v1185_v59, %v1186_v61  ;;  %v2556_v18 = vld [vmem:[%s4152_s1 + $0x1c0] sm:$0xff] }
  0x3c   : > { %2915 = vmatmul.mubr.msk.f32.gmra.mrb[2].mxu1 %vm223_vm0, %v3580_v14  ;;  %3168 = vmatprep.subr.bf16.mxu0 %v3167_v29  ;;  %v3215_v21 = vpack.c.bf16 %v2557_v19, %v2556_v18 }
  0x3d   : > { %2838 = vmatmul.mubr.msk.f32.gmra.mrb[4].mxu0 %vm223_vm0, %v3548_v1  ;;  %2917 = vmatprep.mubr.msk.f32.mxu1 %vm223_vm0, %v3593_v17 }
  0x3e   : > { %2840 = vmatprep.mubr.msk.f32.mxu0 %vm223_vm0, %v3562_v7  ;;  %3166 = vmatpush3.bf16.msra.mxu1 %v3163_v27  ;;  %v2559_v27 = vld [vmem:[%s4152_s1 + $0x1d8] sm:$0xff] }
  0x3f   : > { %3200 = vmatprep.subr.bf16.mxu1 %v3199_v31  ;;  %v3219_v30 = vpack.c.bf16 %v2559_v27, %v2558_v26 }
  0x40   : > { %2918 = vmatmul.mubr.msk.f32.gmra.mrb[4].mxu1 %vm223_vm0, %v3602_v20 }
  0x41   : > { %2841 = vmatmul.mubr.msk.f32.gmra.mrb[6].mxu0 %vm223_vm0, %v3767_v35  ;;  %2920 = vmatprep.mubr.msk.f32.mxu1 %vm223_vm0, %v3620_v25 }
  0x42   : > { %2851 = vmatprep.mubr.msk.f32.mxu0 %vm223_vm0, %v3532_v58 }
  0x44   : > { %2921 = vmatmul.mubr.msk.f32.gmra.mrb[6].mxu1 %vm223_vm0, %v3795_v42 }
  0x45   : > { %2852 = vmatmul.mubr.msk.f32.vlgmr.msra.gmra.mrb[0].mxu0 %vm223_vm0, %v3558_v5  ;;  %2931 = vmatprep.mubr.msk.f32.mxu1 %vm223_vm0, %v3643_v34 }
  0x46   : > { %2854 = vmatprep.mubr.msk.f32.mxu0 %vm223_vm0, %v3573_v10  ;;  %3170 = vmatpush3.bf16.msra.mxu0 %v3167_v29  ;;  %v2512_v29 = vld [vmem:[%s4152_s1 + $0x168] sm:$0xff] }
  0x47   : > { %3172 = vmatprep.subr.bf16.mxu0 %v3171_v44 }
  0x48   : > { %2932 = vmatmul.mubr.msk.f32.vlgmr.msra.gmra.mrb[0].mxu1 %vm223_vm0, %v3661_v45 }
  0x49   : > { %3202 = vmatpush3.bf16.msra.mxu1 %v3199_v31  ;;  %2855 = vmatmul.mubr.msk.f32.gmra.mrb[2].mxu0 %vm223_vm0, %v3580_v14 }
  0x4a   : > { %2934 = vmatprep.mubr.msk.f32.mxu1 %vm223_vm0, %v3674_v50  ;;  %2857 = vmatprep.mubr.msk.f32.mxu0 %vm223_vm0, %v3593_v17 }
  0x4b   : > { %3204 = vmatprep.subr.bf16.mxu1 %v3203_v51  ;;  %3174 = vmatpush3.bf16.msra.mxu0 %v3171_v44  ;;  %v2571_v44 = vld [vmem:[%s4152_s1 + $0x1f8] sm:$0xff] }
  0x4c   : > { %2935 = vmatmul.mubr.msk.f32.gmra.mrb[2].mxu1 %vm223_vm0, %v3686_v56  ;;  %3176 = vmatprep.subr.bf16.mxu0 %v3175_v52 }
  0x4d   : > { %2858 = vmatmul.mubr.msk.f32.gmra.mrb[4].mxu0 %vm223_vm0, %v3602_v20  ;;  %2937 = vmatprep.mubr.msk.f32.mxu1 %vm223_vm0, %v3703_v3 }
  0x4e   : > { %2860 = vmatprep.mubr.msk.f32.mxu0 %vm223_vm0, %v3620_v25  ;;  %3206 = vmatpush3.bf16.msra.mxu1 %v3203_v51 }
  0x4f   : > { %3208 = vmatprep.subr.bf16.mxu1 %v3207_v57 }
  0x50   : > { %2938 = vmatmul.mubr.msk.f32.gmra.mrb[4].mxu1 %vm223_vm0, %v3710_v11 }
  0x51   : > { %2861 = vmatmul.mubr.msk.f32.gmra.mrb[6].mxu0 %vm223_vm0, %v3795_v42  ;;  %2940 = vmatprep.mubr.msk.f32.mxu1 %vm223_vm0, %v3731_v16 }
  0x52   : > { %2951 = vmatprep.mubr.msk.f32.mxu0 %vm223_vm0, %v3473_v28  ;;  %v2499_v28 = vld [vmem:[%s4152_s1 + $0x140] sm:$0xff] }
  0x53   : > { %v3183_v13 = vpack.c.bf16 %v2500_v8, %v2499_v28 }
  0x54   : > { %2941 = vmatmul.mubr.msk.f32.gmra.mrb[6].mxu1 %vm223_vm0, %v3855_v0 }
  0x55   : > { %2952 = vmatmul.mubr.msk.f32.vlgmr.msra.gmra.mrb[8].mxu0 %vm223_vm0, %v3480_v33  ;;  %3031 = vmatprep.mubr.msk.f32.mxu1 %vm223_vm0, %v3532_v58 }
  0x56   : > { %2954 = vmatprep.mubr.msk.f32.mxu0 %vm223_vm0, %v3498_v43  ;;  %3178 = vmatpush3.bf16.msra.mxu0 %v3175_v52 }
  0x57   : > { %3180 = vmatprep.subr.bf16.mxu0 %v3179_v2 }
  0x58   : > { %3032 = vmatmul.mubr.msk.f32.vlgmr.msra.gmra.mrb[8].mxu1 %vm223_vm0, %v3558_v5 }
  0x59   : > { %3210 = vmatpush3.bf16.msra.mxu1 %v3207_v57  ;;  %2955 = vmatmul.mubr.msk.f32.gmra.mrb[10].mxu0 %vm223_vm0, %v3509_v48 }
  0x5a   : > { %3034 = vmatprep.mubr.msk.f32.mxu1 %vm223_vm0, %v3573_v10  ;;  %2957 = vmatprep.mubr.msk.f32.mxu0 %vm223_vm0, %v3520_v54 }
  0x5b   : > { %3212 = vmatprep.subr.bf16.mxu1 %v3211_v9  ;;  %3182 = vmatpush3.bf16.msra.mxu0 %v3179_v2 }
  0x5c   : > { %3035 = vmatmul.mubr.msk.f32.gmra.mrb[10].mxu1 %vm223_vm0, %v3580_v14  ;;  %3184 = vmatprep.subr.bf16.mxu0 %v3183_v13 }
  0x5d   : > { %2958 = vmatmul.mubr.msk.f32.gmra.mrb[12].mxu0 %vm223_vm0, %v3548_v1  ;;  %3037 = vmatprep.mubr.msk.f32.mxu1 %vm223_vm0, %v3593_v17 }
  0x5e   : > { %2960 = vmatprep.mubr.msk.f32.mxu0 %vm223_vm0, %v3562_v7  ;;  %3214 = vmatpush3.bf16.msra.mxu1 %v3211_v9 }
  0x5f   : > { %3216 = vmatprep.subr.bf16.mxu1 %v3215_v21 }
  0x60   : > { %3038 = vmatmul.mubr.msk.f32.gmra.mrb[12].mxu1 %vm223_vm0, %v3602_v20 }
  0x61   : > { %2961 = vmatmul.mubr.msk.f32.gmra.mrb[14].mxu0 %vm223_vm0, %v3767_v35  ;;  %3040 = vmatprep.mubr.msk.f32.mxu1 %vm223_vm0, %v3620_v25 }
  0x62   : > { %2971 = vmatprep.mubr.msk.f32.mxu0 %vm223_vm0, %v3532_v58  ;;  %v2511_v58 = vld [vmem:[%s4152_s1 + $0x160] sm:$0xff] }
  0x63   : > { %v3191_v32 = vpack.c.bf16 %v2512_v29, %v2511_v58 }
  0x64   : > { %3041 = vmatmul.mubr.msk.f32.gmra.mrb[14].mxu1 %vm223_vm0, %v3795_v42 }
  0x65   : > { %2972 = vmatmul.mubr.msk.f32.vlgmr.msra.gmra.mrb[8].mxu0 %vm223_vm0, %v3558_v5  ;;  %3051 = vmatprep.mubr.msk.f32.mxu1 %vm223_vm0, %v3643_v34  ;;  %v2568_v34 = vld [vmem:[%s4152_s1 + $0x1e0] sm:$0xff] }
  0x66   : > { %2974 = vmatprep.mubr.msk.f32.mxu0 %vm223_vm0, %v3573_v10  ;;  %3186 = vmatpush3.bf16.msra.mxu0 %v3183_v13  ;;  %v3223_v31 = vpack.c.bf16 %v2569_v37, %v2568_v34 }
  0x67   : > { %3188 = vmatprep.subr.bf16.mxu0 %v3187_v24 }
  0x68   : > { %3052 = vmatmul.mubr.msk.f32.vlgmr.msra.gmra.mrb[8].mxu1 %vm223_vm0, %v3661_v45 }
  0x69   : > { %3218 = vmatpush3.bf16.msra.mxu1 %v3215_v21  ;;  %2975 = vmatmul.mubr.msk.f32.gmra.mrb[10].mxu0 %vm223_vm0, %v3580_v14 }
  0x6a   : > { %3054 = vmatprep.mubr.msk.f32.mxu1 %vm223_vm0, %v3674_v50  ;;  %2977 = vmatprep.mubr.msk.f32.mxu0 %vm223_vm0, %v3593_v17 }
  0x6b   : > { %3220 = vmatprep.subr.bf16.mxu1 %v3219_v30  ;;  %3190 = vmatpush3.bf16.msra.mxu0 %v3187_v24 }
  0x6c   : > { %3055 = vmatmul.mubr.msk.f32.gmra.mrb[10].mxu1 %vm223_vm0, %v3686_v56  ;;  %3192 = vmatprep.subr.bf16.mxu0 %v3191_v32 }
  0x6d   : > { %2978 = vmatmul.mubr.msk.f32.gmra.mrb[12].mxu0 %vm223_vm0, %v3602_v20  ;;  %3057 = vmatprep.mubr.msk.f32.mxu1 %vm223_vm0, %v3703_v3 }
  0x6e   : > { %2980 = vmatprep.mubr.msk.f32.mxu0 %vm223_vm0, %v3620_v25  ;;  %3222 = vmatpush3.bf16.msra.mxu1 %v3219_v30 }
  0x6f   : > { %3224 = vmatprep.subr.bf16.mxu1 %v3223_v31 }
  0x70   : > { %3058 = vmatmul.mubr.msk.f32.gmra.mrb[12].mxu1 %vm223_vm0, %v3710_v11 }
  0x71   : > { %2981 = vmatmul.mubr.msk.f32.gmra.mrb[14].mxu0 %vm223_vm0, %v3795_v42  ;;  %3060 = vmatprep.mubr.msk.f32.mxu1 %vm223_vm0, %v3731_v16 }
  0x72   : > { %2991 = vmatprep.mubr.msk.f32.mxu0 %vm223_vm0, %v3480_v33  ;;  %v3227_v33 = vpack.c.bf16 %v2571_v44, %v2570_v41 }
  0x74   : > { %3061 = vmatmul.mubr.msk.f32.gmra.mrb[14].mxu1 %vm223_vm0, %v3855_v0 }
  0x75   : > { %2992 = vmatmul.mubr.msk.f32.vlgmr.msra.gmra.mrb[8].mxu0 %vm223_vm0, %v3498_v43  ;;  %3071 = vmatprep.mubr.msk.f32.mxu1 %vm223_vm0, %v3558_v5  ;;  %v4045_v43 = vld [vmem:[%s4153_s2] ss:$0 sm:$0xff] }
  0x76   : > { %2994 = vmatprep.mubr.msk.f32.mxu0 %vm223_vm0, %v3509_v48  ;;  %3194 = vmatpush3.bf16.msra.mxu0 %v3191_v32 }
  0x77   : > { %3196 = vmatprep.subr.bf16.mxu0 %v3195_v40 }
  0x78   : > { %3072 = vmatmul.mubr.msk.f32.vlgmr.msra.gmra.mrb[8].mxu1 %vm223_vm0, %v3573_v10 }
  0x79   : > { %3226 = vmatpush3.bf16.msra.mxu1 %v3223_v31  ;;  %2995 = vmatmul.mubr.msk.f32.gmra.mrb[10].mxu0 %vm223_vm0, %v3520_v54 }
  0x7a   : > { %3074 = vmatprep.mubr.msk.f32.mxu1 %vm223_vm0, %v3580_v14  ;;  %2997 = vmatprep.mubr.msk.f32.mxu0 %vm223_vm0, %v3548_v1 }
  0x7b   : > { %3228 = vmatprep.subr.bf16.mxu1 %v3227_v33  ;;  %3198 = vmatpush3.bf16.msra.mxu0 %v3195_v40 }
  0x7c   : > { %3075 = vmatmul.mubr.msk.f32.gmra.mrb[10].mxu1 %vm223_vm0, %v3593_v17 }
  0x7d   : > { %2998 = vmatmul.mubr.msk.f32.gmra.mrb[12].mxu0 %vm223_vm0, %v3562_v7  ;;  %3077 = vmatprep.mubr.msk.f32.mxu1 %vm223_vm0, %v3602_v20 }
  0x7e   : > { %3000 = vmatprep.mubr.msk.f32.mxu0 %vm223_vm0, %v3767_v35  ;;  %3230 = vmatpush3.bf16.msra.mxu1 %v3227_v33 }
  0x80   : > { %3078 = vmatmul.mubr.msk.f32.gmra.mrb[12].mxu1 %vm223_vm0, %v3620_v25 }
  0x81   : > { %3001 = vmatmul.mubr.msk.f32.gmra.mrb[14].mxu0 %vm223_vm0, %v3691_v60  ;;  %3080 = vmatprep.mubr.msk.f32.mxu1 %vm223_vm0, %v3795_v42 }
  0x82   : > { %3011 = vmatprep.mubr.msk.f32.mxu0 %vm223_vm0, %v3558_v5 }
  0x84   : > { %3081 = vmatmul.mubr.msk.f32.gmra.mrb[14].mxu1 %vm223_vm0, %v3713_v12 }
  0x85   : > { %3012 = vmatmul.mubr.msk.f32.vlgmr.msra.gmra.mrb[8].mxu0 %vm223_vm0, %v3573_v10  ;;  %3091 = vmatprep.mubr.msk.f32.mxu1 %vm223_vm0, %v3661_v45 }
  0x86   : > { %3014 = vmatprep.mubr.msk.f32.mxu0 %vm223_vm0, %v3580_v14 }
  0x88   : > { %3092 = vmatmul.mubr.msk.f32.vlgmr.msra.gmra.mrb[8].mxu1 %vm223_vm0, %v3674_v50 }
  0x89   : > { %3015 = vmatmul.mubr.msk.f32.gmra.mrb[10].mxu0 %vm223_vm0, %v3593_v17  ;;  %3094 = vmatprep.mubr.msk.f32.mxu1 %vm223_vm0, %v3686_v56 }
  0x8a   : > { %3017 = vmatprep.mubr.msk.f32.mxu0 %vm223_vm0, %v3602_v20 }
  0x8c   : > { %3095 = vmatmul.mubr.msk.f32.gmra.mrb[10].mxu1 %vm223_vm0, %v3703_v3 }
  0x8d   : > { %3018 = vmatmul.mubr.msk.f32.gmra.mrb[12].mxu0 %vm223_vm0, %v3620_v25  ;;  %3097 = vmatprep.mubr.msk.f32.mxu1 %vm223_vm0, %v3710_v11 }
  0x8e   : > { %3020 = vmatprep.mubr.msk.f32.mxu0 %vm223_vm0, %v3795_v42 }
  0x90   : > { %3098 = vmatmul.mubr.msk.f32.gmra.mrb[12].mxu1 %vm223_vm0, %v3731_v16 }
  0x91   : > { %3021 = vmatmul.mubr.msk.f32.gmra.mrb[14].mxu0 %vm223_vm0, %v3713_v12  ;;  %3100 = vmatprep.mubr.msk.f32.mxu1 %vm223_vm0, %v3855_v0 }
  0x94   : > { %3101 = vmatmul.mubr.msk.f32.gmra.mrb[14].mxu1 %vm223_vm0, %v3716_v15 }
 0x118   : > { %v2853_v48 = vpop.f32.mrb[0].mxu0 }
 0x119   : > { %v3231_v54 = vadd.f32 %v2853_v48, %v4045_v43  ;;  %v726_v1 = vpop.f32.mrb[1].mxu0 }
 0x11a   : > { %v3232_v5 = vadd.f32 %v4045_v43, %v726_v1 }
 0x11b   : > { %775 = vst.msk [vmem:[%s4050_s27 + $0x8] sm:$0xff] %vm773_vm3, %v3231_v54  ;;  %v2933_v7 = vpop.f32.mrb[0].mxu1 }
 0x11c   : > { %774 = vst.msk [vmem:[%s4050_s27] sm:$0xff] %vm773_vm3, %v3232_v5  ;;  %v3239_v10 = vadd.f32 %v2933_v7, %v4045_v43  ;;  %v2856_v14 = vpop.f32.mrb[2].mxu0  ;;  %v1261_v17 = vpop.f32.mrb[1].mxu1 }
 0x11d   : > { %v3233_v20 = vadd.f32 %v2856_v14, %v4045_v43  ;;  %v3240_v25 = vadd.f32 %v4045_v43, %v1261_v17  ;;  %v736_v45 = vpop.f32.mrb[3].mxu0 }
 0x11e   : > { %2467 = vst.msk [vmem:[%s4050_s27 + $0x48] sm:$0xff] %vm773_vm3, %v3239_v10  ;;  %v3234_v50 = vadd.f32 %v4045_v43, %v736_v45 }
 0x11f   : > { %777 = vst.msk [vmem:[%s4050_s27 + $0x18] sm:$0xff] %vm773_vm3, %v3233_v20  ;;  %2466 = vst.msk [vmem:[%s4050_s27 + $0x40] sm:$0xff] %vm773_vm3, %v3240_v25  ;;  %v2936_v56 = vpop.f32.mrb[2].mxu1 }
 0x120   : > { %776 = vst.msk [vmem:[%s4050_s27 + $0x10] sm:$0xff] %vm773_vm3, %v3234_v50  ;;  %v3241_v60 = vadd.f32 %v2936_v56, %v4045_v43  ;;  %v2859_v3 = vpop.f32.mrb[4].mxu0  ;;  %v1271_v11 = vpop.f32.mrb[3].mxu1 }
 0x121   : > { %v3235_v12 = vadd.f32 %v2859_v3, %v4045_v43  ;;  %v3242_v15 = vadd.f32 %v4045_v43, %v1271_v11  ;;  %v746_v16 = vpop.f32.mrb[5].mxu0 }
 0x122   : > { %2469 = vst.msk [vmem:[%s4050_s27 + $0x58] sm:$0xff] %vm773_vm3, %v3241_v60  ;;  %v3236_v35 = vadd.f32 %v4045_v43, %v746_v16 }
 0x123   : > { %779 = vst.msk [vmem:[%s4050_s27 + $0x28] sm:$0xff] %vm773_vm3, %v3235_v12  ;;  %2468 = vst.msk [vmem:[%s4050_s27 + $0x50] sm:$0xff] %vm773_vm3, %v3242_v15  ;;  %v2939_v42 = vpop.f32.mrb[4].mxu1 }
 0x124   : > { %778 = vst.msk [vmem:[%s4050_s27 + $0x20] sm:$0xff] %vm773_vm3, %v3236_v35  ;;  %v3243_v46 = vadd.f32 %v2939_v42, %v4045_v43  ;;  %v2862_v47 = vpop.f32.mrb[6].mxu0  ;;  %v1281_v49 = vpop.f32.mrb[5].mxu1 }
 0x125   : > { %v3237_v39 = vadd.f32 %v2862_v47, %v4045_v43  ;;  %v3244_v51 = vadd.f32 %v4045_v43, %v1281_v49  ;;  %v756_v52 = vpop.f32.mrb[7].mxu0 }
 0x126   : > { %2471 = vst.msk [vmem:[%s4050_s27 + $0x68] sm:$0xff] %vm773_vm3, %v3243_v46  ;;  %v3238_v53 = vadd.f32 %v4045_v43, %v756_v52 }
 0x127   : > { %781 = vst.msk [vmem:[%s4050_s27 + $0x38] sm:$0xff] %vm773_vm3, %v3237_v39  ;;  %2470 = vst.msk [vmem:[%s4050_s27 + $0x60] sm:$0xff] %vm773_vm3, %v3244_v51  ;;  %v2942_v55 = vpop.f32.mrb[6].mxu1 }
 0x128   : > { %780 = vst.msk [vmem:[%s4050_s27 + $0x30] sm:$0xff] %vm773_vm3, %v3238_v53  ;;  %v3245_v57 = vadd.f32 %v2942_v55, %v4045_v43  ;;  %v1291_v59 = vpop.f32.mrb[7].mxu1 }
 0x129   : > { %v3246_v61 = vadd.f32 %v4045_v43, %v1291_v59 }
 0x12a   : > { %2473 = vst.msk [vmem:[%s4050_s27 + $0x78] sm:$0xff] %vm773_vm3, %v3245_v57 }
 0x12b   : > { %2472 = vst.msk [vmem:[%s4050_s27 + $0x70] sm:$0xff] %vm773_vm3, %v3246_v61 }
 0x158   : > { %v3013_v62 = vpop.f32.mrb[8].mxu0 }
 0x159   : > { %v3247_v63 = vadd.f32 %v3013_v62, %v4045_v43  ;;  %v1759_v0 = vpop.f32.mrb[9].mxu0 }
 0x15a   : > { %v3248_v2 = vadd.f32 %v4045_v43, %v1759_v0 }
 0x15b   : > { %2524 = vst.msk [vmem:[%s4050_s27 + $0x88] sm:$0xff] %vm773_vm3, %v3247_v63  ;;  %v3093_v4 = vpop.f32.mrb[8].mxu1 }
 0x15c   : > { %2523 = vst.msk [vmem:[%s4050_s27 + $0x80] sm:$0xff] %vm773_vm3, %v3248_v2  ;;  %v3255_v6 = vadd.f32 %v3093_v4, %v4045_v43  ;;  %v3016_v28 = vpop.f32.mrb[10].mxu0  ;;  %v2253_v8 = vpop.f32.mrb[9].mxu1 }
 0x15d   : > { %v3249_v9 = vadd.f32 %v3016_v28, %v4045_v43  ;;  %v3256_v13 = vadd.f32 %v4045_v43, %v2253_v8  ;;  %v1769_v18 = vpop.f32.mrb[11].mxu0 }
 0x15e   : > { %2581 = vst.msk [vmem:[%s4050_s27 + $0xc8] sm:$0xff] %vm773_vm3, %v3255_v6  ;;  %v3250_v19 = vadd.f32 %v4045_v43, %v1769_v18 }
 0x15f   : > { %2526 = vst.msk [vmem:[%s4050_s27 + $0x98] sm:$0xff] %vm773_vm3, %v3249_v9  ;;  %2580 = vst.msk [vmem:[%s4050_s27 + $0xc0] sm:$0xff] %vm773_vm3, %v3256_v13  ;;  %v3096_v21 = vpop.f32.mrb[10].mxu1 }
 0x160   : > { %2525 = vst.msk [vmem:[%s4050_s27 + $0x90] sm:$0xff] %vm773_vm3, %v3250_v19  ;;  %v3257_v22 = vadd.f32 %v3096_v21, %v4045_v43  ;;  %v3019_v23 = vpop.f32.mrb[12].mxu0  ;;  %v2263_v24 = vpop.f32.mrb[11].mxu1 }
 0x161   : > { %v3251_v26 = vadd.f32 %v3019_v23, %v4045_v43  ;;  %v3258_v27 = vadd.f32 %v4045_v43, %v2263_v24  ;;  %v1779_v58 = vpop.f32.mrb[13].mxu0 }
 0x162   : > { %2583 = vst.msk [vmem:[%s4050_s27 + $0xd8] sm:$0xff] %vm773_vm3, %v3257_v22  ;;  %v3252_v29 = vadd.f32 %v4045_v43, %v1779_v58 }
 0x163   : > { %2528 = vst.msk [vmem:[%s4050_s27 + $0xa8] sm:$0xff] %vm773_vm3, %v3251_v26  ;;  %2582 = vst.msk [vmem:[%s4050_s27 + $0xd0] sm:$0xff] %vm773_vm3, %v3258_v27  ;;  %v3099_v30 = vpop.f32.mrb[12].mxu1 }
 0x164   : > { %2527 = vst.msk [vmem:[%s4050_s27 + $0xa0] sm:$0xff] %vm773_vm3, %v3252_v29  ;;  %v3259_v32 = vadd.f32 %v3099_v30, %v4045_v43  ;;  %v3022_v34 = vpop.f32.mrb[14].mxu0  ;;  %v2273_v37 = vpop.f32.mrb[13].mxu1 }
 0x165   : > { %v3253_v31 = vadd.f32 %v3022_v34, %v4045_v43  ;;  %v3260_v36 = vadd.f32 %v4045_v43, %v2273_v37  ;;  %v1789_v38 = vpop.f32.mrb[15].mxu0 }
 0x166   : > { %2585 = vst.msk [vmem:[%s4050_s27 + $0xe8] sm:$0xff] %vm773_vm3, %v3259_v32  ;;  %v3254_v40 = vadd.f32 %v4045_v43, %v1789_v38 }
 0x167   : > { %2530 = vst.msk [vmem:[%s4050_s27 + $0xb8] sm:$0xff] %vm773_vm3, %v3253_v31  ;;  %2584 = vst.msk [vmem:[%s4050_s27 + $0xe0] sm:$0xff] %vm773_vm3, %v3260_v36  ;;  %v3102_v41 = vpop.f32.mrb[14].mxu1 }
 0x168   : > { %2529 = vst.msk [vmem:[%s4050_s27 + $0xb0] sm:$0xff] %vm773_vm3, %v3254_v40  ;;  %v3261_v44 = vadd.f32 %v3102_v41, %v4045_v43  ;;  %v2283_v33 = vpop.f32.mrb[15].mxu1 }
 0x169   : > { %v3262_v48 = vadd.f32 %v4045_v43, %v2283_v33 }
 0x16a   : > { %2587 = vst.msk [vmem:[%s4050_s27 + $0xf8] sm:$0xff] %vm773_vm3, %v3261_v44 }
 0x16b   : > { %2586 = vst.msk [vmem:[%s4050_s27 + $0xf0] sm:$0xff] %vm773_vm3, %v3262_v48 }
 0x16c PF: > { %s13_s12 = sadd.s32 1, %s3374_s12  }
 0x16d   : > { %p10_p4 = scmp.ge.s32.totalorder %s13_s12, 4  }
 0x16f   :  { %12 = sbr.rel (!%p10_p4) target bundleno = 1 (0x1), region = 80 }

// kernel: decoder_forward.9
= control target key start
LH: loop header
LB: loop body
LE: loop exit
PB: predicated region body
PF: predicated region fallthrough
CT: control target
= control target key end

     0   :  { %s7752_s12 = smov 0   ;;  %s9868_s0 = inlined_call_operand.vmem [shape: f32[2,18,18,16], index: 0, kind: input, shape index: {}]   ;;  %s9869_s1 = inlined_call_operand.vmem [shape: f32[4,4,16,3], index: 1, kind: input, shape index: {}]   ;;  %s9870_s2 = inlined_call_operand.vmem [shape: f32[1,3], index: 2, kind: input, shape index: {}]   ;;  %s9871_s3 = inlined_call_operand.vmem [shape: f32[2,4,256,3], index: 3, kind: output, shape index: {}]  }
   0x1 LB: > { %s5110_s13 = sadd.s32 4294967295, %s7730_s12   ;;  %p5114_p0 = scmp.ge.s32.totalorder %s7730_s12, 1  ;;  %s7730_s12 = sphi %s7752_s12, %s13_s12  }
   0x2   : > { %p137_p1 = scmp.lt.s32.totalorder %s7730_s12, 3 }
   0x4   : > { %p138_p2 = pnand %p5114_p0, %p137_p1 }
   0x6   : > { %141 = sbr.rel (%p138_p2) target bundleno = 750 (0x2ee), region = 32 }
   0xd   : > { %v287_v0 = vld [vmem:[%s9869_s1] sm:$0xff]  ;;  %v288_v1 = vld [vmem:[%s9869_s1 + $0x8] sm:$0xff]  ;;  %p161_p3 = scmp.lt.s32.totalorder %s5110_s13, 1  ;;  %v5151_v5 = vld [vmem:[%s9869_s1 + $0x10] sm:$0xff]  ;;  %vm289_vm0 = vcmask 130048   ;;  %vm659_vm1 = vcmask 1046528  }
   0xe   : > { %v5254_v2 = vld [vmem:[%s9869_s1 + $0x40] sm:$0xff]  ;;  %v7139_v3 = vpack.c.bf16 %v288_v1, %v287_v0  ;;  %v5255_v4 = vld [vmem:[%s9869_s1 + $0x48] sm:$0xff]  ;;  %v5152_v6 = vld [vmem:[%s9869_s1 + $0x18] sm:$0xff]  ;;  %vm1901_vm2 = vcmask 1045504   ;;  %vm1600_vm3 = vcmask 23552  }
   0xf   : > { %v7155_v7 = vpack.c.bf16 %v5255_v4, %v5254_v2  ;;  %s10237_s13 = smov (!%p161_p3, %s5110_s13), 1  ;;  %v7143_v8 = vpack.c.bf16 %v5152_v6, %v5151_v5  ;;  %v5288_v9 = vld [vmem:[%s9869_s1 + $0x50] sm:$0xff]  ;;  %v5289_v10 = vld [vmem:[%s9869_s1 + $0x58] sm:$0xff]  ;;  %v5185_v12 = vld [vmem:[%s9869_s1 + $0x20] sm:$0xff] }
  0x10   : > { %7140 = vmatprep.subr.bf16.mxu0 %v7139_v3  ;;  %v7159_v11 = vpack.c.bf16 %v5289_v10, %v5288_v9  ;;  %s7715_s30 = smul.u32 432, %s10237_s13  ;;  %v5186_v13 = vld [vmem:[%s9869_s1 + $0x28] sm:$0xff]  ;;  %v5322_v14 = vld [vmem:[%s9869_s1 + $0x60] sm:$0xff] }
  0x11   : > { %7142 = vmatpush3.bf16.msra.mxu0 %v7139_v3  ;;  %7156 = vmatprep.subr.bf16.mxu1 %v7155_v7  ;;  %v5323_v15 = vld [vmem:[%s9869_s1 + $0x68] sm:$0xff]  ;;  %v7825_v29 = vpack.c.bf16 %v5186_v13, %v5185_v12 }
  0x12   : > { %7158 = vmatpush3.bf16.msra.mxu1 %v7155_v7  ;;  %7144 = vmatprep.subr.bf16.mxu0 %v7143_v8  ;;  %s7793_s8 = scalar_lea.vmem %s9868_s0, %s7715_s30  ;;  %v7845_v40 = vpack.c.bf16 %v5323_v15, %v5322_v14 }
  0x13   : > { %7160 = vmatprep.subr.bf16.mxu1 %v7159_v11  ;;  %v171_v16 = vld [vmem:[%s7793_s8] sm:$0xff]  ;;  %v172_v17 = vld [vmem:[%s7793_s8 + $0x8] sm:$0xff]  ;;  %v174_v18 = vld [vmem:[%s7793_s8 + $0x18] sm:$0xff] }
  0x14   : > { %v7807_v19 = vmax.f32 %v171_v16, 0.0  ;;  %v7809_v20 = vmax.f32 %v172_v17, 0.0  ;;  %v7811_v21 = vmax.f32 %v174_v18, 0.0  ;;  %v7814_v22 = vld [vmem:[%s7793_s8 + $0x10] sm:$0x3]  ;;  %v175_v23 = vld [vmem:[%s7793_s8 + $0x20] sm:$0xff] }
  0x15   : > { %v9880_v24 = vmax.f32 %v7814_v22, 0.0  ;;  %v7818_v25 = vmax.f32 %v175_v23, 0.0  ;;  %v177_v26 = vld [vmem:[%s7793_s8 + $0x30] sm:$0xff]  ;;  %v7822_v27 = vld [vmem:[%s7793_s8 + $0x28] sm:$0x3]  ;;  %v178_v28 = vld [vmem:[%s7793_s8 + $0x38] sm:$0xff] }
  0x16   : > { %6311 = vmatprep.mubr.msk.f32.mxu0 %vm289_vm0, %v7807_v19  ;;  %v660_v30 = vrot.slane %v7807_v19, 1  ;;  %v661_v31 = vrot.slane %v7809_v20, 1  ;;  %v665_v32 = vrot.slane %v7811_v21, 1  ;;  %v7832_v33 = vmax.f32 %v177_v26, 0.0  ;;  %v180_v34 = vld [vmem:[%s7793_s8 + $0x48] sm:$0xff]  ;;  %v181_v39 = vld [vmem:[%s7793_s8 + $0x50] sm:$0xff] }
  0x17   : > { %10012 = vst [vmem:[#allocation2_spill] sm:$0xff] %v7818_v25  ;;  %6312 = vmatmul.mubr.msk.f32.vlgmr.msra.gmra.mrb[0].mxu0 %vm289_vm0, %v7809_v20  ;;  %v663_v35 = vrot.slane %v9880_v24, 1  ;;  %v666_v36 = vrot.slane %v7818_v25, 1  ;;  %v9879_v37 = vmax.f32 %v7822_v27, 0.0  ;;  %v7842_v38 = vld [vmem:[%s7793_s8 + $0x40] sm:$0x3] }
  0x18   : > { %v7848_v41 = vsel %vm659_vm1, %v660_v30, %v661_v31  ;;  %6314 = vmatprep.mubr.msk.f32.mxu0 %vm289_vm0, %v7811_v21  ;;  %7146 = vmatpush3.bf16.msra.mxu0 %v7143_v8  ;;  %v7852_v42 = vmax.f32 %v178_v28, 0.0  ;;  %v670_v43 = vrot.slane %v7832_v33, 1  ;;  %v7855_v44 = vmax.f32 %v180_v34, 0.0  ;;  %v183_v45 = vld [vmem:[%s7793_s8 + $0x60] sm:$0xff]  ;;  %v7859_v46 = vld [vmem:[%s7793_s8 + $0x58] sm:$0x3] }
  0x19   : > { %6519 = vmatprep.mubr.msk.f32.mxu1 %vm289_vm0, %v7848_v41  ;;  %v7864_v47 = vsel %vm659_vm1, %v661_v31, %v663_v35  ;;  %v7867_v48 = vsel %vm659_vm1, %v665_v32, %v666_v36  ;;  %v668_v49 = vrot.slane %v9879_v37, 1  ;;  %v9877_v50 = vmax.f32 %v7842_v38, 0.0  ;;  %v184_v51 = vld [vmem:[%s7793_s8 + $0x68] sm:$0xff]  ;;  %7148 = vmatprep.subr.bf16.mxu0 %v7825_v29  ;;  %v7901_v62 = vld [vmem:[%s7793_s8 + $0x70] sm:$0x3]  ;;  %v186_v63 = vld [vmem:[%s7793_s8 + $0x78] sm:$0xff] }
  0x1a   : > { %6520 = vmatmul.mubr.msk.f32.vlgmr.msra.gmra.mrb[0].mxu1 %vm289_vm0, %v7864_v47  ;;  %v671_v52 = vrot.slane %v7852_v42, 1  ;;  %v7877_v53 = vmax.f32 %v181_v39, 0.0  ;;  %v7886_v56 = vmax.f32 %v183_v45, 0.0  ;;  %v9876_v57 = vmax.f32 %v7859_v46, 0.0  ;;  %v187_v0 = vld [vmem:[%s7793_s8 + $0x80] sm:$0xff]  ;;  %v189_v9 = vld [vmem:[%s7793_s8 + $0x90] sm:$0xff] }
  0x1b   : > { %7162 = vmatpush3.bf16.msra.mxu1 %v7159_v11  ;;  %6315 = vmatmul.mubr.msk.f32.gmra.mrb[2].mxu0 %vm289_vm0, %v7818_v25  ;;  %v7882_v54 = vsel %vm659_vm1, %v666_v36, %v668_v49  ;;  %v673_v55 = vrot.slane %v9877_v50, 1  ;;  %v675_v59 = vrot.slane %v7855_v44, 1  ;;  %v7898_v61 = vmax.f32 %v184_v51, 0.0  ;;  %v7931_v10 = vld [vmem:[%s7793_s8 + $0x88] sm:$0x3]  ;;  %v190_v11 = vld [vmem:[%s7793_s8 + $0x98] sm:$0xff] }
  0x1c   : > { %6522 = vmatprep.mubr.msk.f32.mxu1 %vm289_vm0, %v7867_v48  ;;  %6317 = vmatprep.mubr.msk.f32.mxu0 %vm289_vm0, %v7832_v33  ;;  %v7894_v58 = vsel %vm659_vm1, %v670_v43, %v671_v52  ;;  %v676_v60 = vrot.slane %v7877_v53, 1  ;;  %v678_v2 = vrot.slane %v9876_v57, 1  ;;  %v680_v3 = vrot.slane %v7886_v56, 1  ;;  %v7958_v26 = vld [vmem:[%s7793_s8 + $0xa0] sm:$0x3]  ;;  %v192_v28 = vld [vmem:[%s7793_s8 + $0xa8] sm:$0xff] }
  0x1d   : > { %7164 = vmatprep.subr.bf16.mxu1 %v7845_v40  ;;  %v7913_v1 = vsel %vm659_vm1, %v671_v52, %v673_v55  ;;  %v9875_v4 = vmax.f32 %v7901_v62, 0.0  ;;  %v681_v6 = vrot.slane %v7898_v61, 1  ;;  %v7925_v7 = vmax.f32 %v186_v63, 0.0  ;;  %v193_v30 = vld [vmem:[%s7793_s8 + $0xb0] sm:$0xff]  ;;  %v195_v49 = vld [vmem:[%s7793_s8 + $0xc0] sm:$0xff]  ;;  %v196_v52 = vld [vmem:[%s7793_s8 + $0xc8] sm:$0xff] }
  0x1e   : > { %6523 = vmatmul.mubr.msk.f32.gmra.mrb[2].mxu1 %vm289_vm0, %v7882_v54  ;;  %v7922_v5 = vsel %vm659_vm1, %v675_v59, %v676_v60  ;;  %v7927_v8 = vmax.f32 %v187_v0, 0.0  ;;  %v7941_v12 = vsel %vm659_vm1, %v676_v60, %v678_v2  ;;  %v7945_v14 = vmax.f32 %v189_v9, 0.0  ;;  %v7987_v51 = vld [vmem:[%s7793_s8 + $0xb8] sm:$0x3]  ;;  %v8014_v9 = vld [vmem:[%s7793_s8 + $0xd0] sm:$0x3] }
  0x1f   : > { %6318 = vmatmul.mubr.msk.f32.gmra.mrb[4].mxu0 %vm289_vm0, %v7852_v42  ;;  %6525 = vmatprep.mubr.msk.f32.mxu1 %vm289_vm0, %v7894_v58  ;;  %v683_v13 = vrot.slane %v9875_v4, 1  ;;  %v9874_v15 = vmax.f32 %v7931_v10, 0.0  ;;  %v7951_v16 = vsel %vm659_vm1, %v680_v3, %v681_v6  ;;  %v685_v17 = vrot.slane %v7925_v7, 1  ;;  %10013 = vst [vmem:[#allocation3_spill] sm:$0xff] %v8014_v9 }
  0x20   : > { %6320 = vmatprep.mubr.msk.f32.mxu0 %vm289_vm0, %v7855_v44  ;;  %v686_v18 = vrot.slane %v7927_v8, 1  ;;  %v7955_v23 = vmax.f32 %v190_v11, 0.0  ;;  %v690_v34 = vrot.slane %v7945_v14, 1  ;;  %v9873_v35 = vmax.f32 %v7958_v26, 0.0  ;;  %v198_v11 = vld [vmem:[%s7793_s8 + $0xd8] sm:$0xff] }
  0x21   : > { %v7969_v31 = vsel %vm659_vm1, %v681_v6, %v683_v13  ;;  %v688_v32 = vrot.slane %v9874_v15, 1  ;;  %v7981_v43 = vmax.f32 %v192_v28, 0.0  ;;  %v7983_v45 = vmax.f32 %v193_v30, 0.0  ;;  %v199_v13 = vld [vmem:[%s7793_s8 + $0xe0] sm:$0xff] }
  0x22   : > { %6526 = vmatmul.mubr.msk.f32.gmra.mrb[4].mxu1 %vm289_vm0, %v7913_v1  ;;  %v7978_v36 = vsel %vm659_vm1, %v685_v17, %v686_v18  ;;  %v691_v39 = vrot.slane %v7955_v23, 1  ;;  %v693_v59 = vrot.slane %v9873_v35, 1  ;;  %v8001_v60 = vmax.f32 %v195_v49, 0.0 }
  0x23   : > { %6321 = vmatmul.mubr.msk.f32.gmra.mrb[6].mxu0 %vm289_vm0, %v7877_v53  ;;  %6528 = vmatprep.mubr.msk.f32.mxu1 %vm289_vm0, %v7922_v5  ;;  %v7997_v55 = vsel %vm659_vm1, %v686_v18, %v688_v32  ;;  %v9872_v63 = vmax.f32 %v7987_v51, 0.0  ;;  %v695_v2 = vrot.slane %v7981_v43, 1  ;;  %v696_v3 = vrot.slane %v7983_v45, 1 }
  0x24   : > { %6323 = vmatprep.mubr.msk.f32.mxu0 %vm289_vm0, %v7886_v56  ;;  %v8007_v0 = vsel %vm659_vm1, %v690_v34, %v691_v39  ;;  %v8011_v6 = vmax.f32 %v196_v52, 0.0  ;;  %v8025_v17 = vsel %vm659_vm1, %v691_v39, %v693_v59  ;;  %v700_v28 = vrot.slane %v8001_v60, 1  ;;  %v201_v39 = vld [vmem:[%s7793_s8 + $0xf0] sm:$0xff]  ;;  %v8043_v59 = vld [vmem:[%s7793_s8 + $0xe8] sm:$0x3] }
  0x25   : > { %v698_v18 = vrot.slane %v9872_v63, 1  ;;  %v9878_v30 = vmax.f32 %v8014_v9, 0.0  ;;  %v8034_v32 = vsel %vm659_vm1, %v695_v2, %v696_v3  ;;  %v8037_v49 = vmax.f32 %v198_v11, 0.0  ;;  %10016 = vst [vmem:[#allocation6_spill] sm:$0xff] %v8043_v59  ;;  %v202_v63 = vld [vmem:[%s7793_s8 + $0xf8] sm:$0xff] }
  0x26   : > { %6529 = vmatmul.mubr.msk.f32.gmra.mrb[6].mxu1 %vm289_vm0, %v7941_v12  ;;  %v701_v34 = vrot.slane %v8011_v6, 1  ;;  %v8039_v52 = vmax.f32 %v199_v13, 0.0  ;;  %v8057_v13 = vmax.f32 %v201_v39, 0.0  ;;  %v9886_v35 = vmax.f32 %v8043_v59, 0.0  ;;  %v205_v39 = vld [vmem:[%s7793_s8 + $0x110] sm:$0xff] }
  0x27   : > { %6324 = vmatmul.mubr.msk.f32.gmra.mrb[8].mxu0 %vm289_vm0, %v7898_v61  ;;  %6531 = vmatprep.mubr.msk.f32.mxu1 %vm289_vm0, %v7951_v16  ;;  %10014 = vst [vmem:[#allocation4_spill] sm:$0xff] %v8037_v49  ;;  %v8053_v2 = vsel %vm659_vm1, %v696_v3, %v698_v18  ;;  %v703_v11 = vrot.slane %v9878_v30, 1  ;;  %v705_v4 = vrot.slane %v8037_v49, 1  ;;  %v8067_v50 = vmax.f32 %v202_v63, 0.0  ;;  %v8070_v3 = vld [vmem:[%s7793_s8 + $0x100] sm:$0x3] }
  0x28   : > { %6326 = vmatprep.mubr.msk.f32.mxu0 %vm289_vm0, %v7925_v7  ;;  %10015 = vst [vmem:[#allocation5_spill] sm:$0xff] %v8039_v52  ;;  %10017 = vst [vmem:[#allocation7_spill] sm:$0xff] %v8053_v2  ;;  %v8063_v15 = vsel %vm659_vm1, %v700_v28, %v701_v34  ;;  %v706_v57 = vrot.slane %v8039_v52, 1  ;;  %v204_v18 = vld [vmem:[%s7793_s8 + $0x108] sm:$0xff]  ;;  %v708_v63 = vrot.slane %v9886_v35, 1  ;;  %v710_v30 = vrot.slane %v8057_v13, 1 }
  0x29   : > { %10018 = vst [vmem:[#allocation8_spill] sm:$0xff] %v8057_v13  ;;  %10019 = vst [vmem:[#allocation9_spill] sm:$0xff] %v8063_v15  ;;  %v8081_v28 = vsel %vm659_vm1, %v701_v34, %v703_v11  ;;  %v9896_v37 = vmax.f32 %v8070_v3, 0.0  ;;  %v711_v9 = vrot.slane %v8067_v50, 1  ;;  %v207_v34 = vld [vmem:[%s7793_s8 + $0x120] sm:$0xff]  ;;  %v208_v35 = vld [vmem:[%s7793_s8 + $0x128] sm:$0xff] }
  0x2a   : > { %6532 = vmatmul.mubr.msk.f32.gmra.mrb[8].mxu1 %vm289_vm0, %v7969_v31  ;;  %10020 = vst [vmem:[#allocation10_spill] sm:$0xff] %v8067_v50  ;;  %10021 = vst [vmem:[#allocation11_spill] sm:$0xff] %v8070_v3  ;;  %v8090_v24 = vsel %vm659_vm1, %v705_v4, %v706_v57  ;;  %v8099_v11 = vld [vmem:[%s7793_s8 + $0x118] sm:$0x3]  ;;  %v8109_v4 = vsel %vm659_vm1, %v706_v57, %v708_v63  ;;  %v8126_v57 = vld [vmem:[%s7793_s8 + $0x130] sm:$0x3] }
  0x2b   : > { %6327 = vmatmul.mubr.msk.f32.gmra.mrb[10].mxu0 %vm289_vm0, %v7927_v8  ;;  %6534 = vmatprep.mubr.msk.f32.mxu1 %vm289_vm0, %v7978_v36  ;;  %10022 = vst [vmem:[#allocation12_spill] sm:$0xff] %v8081_v28  ;;  %10023 = vst [vmem:[#allocation13_spill] sm:$0xff] %v8090_v24  ;;  %v9906_v59 = vmax.f32 %v8099_v11, 0.0  ;;  %v210_v63 = vld [vmem:[%s7793_s8 + $0x138] sm:$0xff]  ;;  %v9916_v3 = vmax.f32 %v8126_v57, 0.0 }
  0x2c   : > { %6329 = vmatprep.mubr.msk.f32.mxu0 %vm289_vm0, %v7945_v14  ;;  %10026 = vst [vmem:[#allocation16_spill] sm:$0xff] %v8099_v11  ;;  %10027 = vst [vmem:[#allocation17_spill] sm:$0xff] %v8109_v4 }
  0x2d   : > { %10031 = vst [vmem:[#allocation21_spill] sm:$0xff] %v8126_v57 }
  0x2e   : > { %6535 = vmatmul.mubr.msk.f32.gmra.mrb[10].mxu1 %vm289_vm0, %v7997_v55 }
  0x2f   : > { %6330 = vmatmul.mubr.msk.f32.gmra.mrb[12].mxu0 %vm289_vm0, %v7955_v23  ;;  %6537 = vmatprep.mubr.msk.f32.mxu1 %vm289_vm0, %v8007_v0 }
  0x30   : > { %6332 = vmatprep.mubr.msk.f32.mxu0 %vm289_vm0, %v7981_v43 }
  0x32   : > { %6538 = vmatmul.mubr.msk.f32.gmra.mrb[12].mxu1 %vm289_vm0, %v8025_v17 }
  0x33   : > { %6333 = vmatmul.mubr.msk.f32.gmra.mrb[14].mxu0 %vm289_vm0, %v7983_v45  ;;  %6540 = vmatprep.mubr.msk.f32.mxu1 %vm289_vm0, %v8034_v32 }
  0x34   : > { %6335 = vmatprep.mubr.msk.f32.mxu0 %vm289_vm0, %v8001_v60 }
  0x36   : > { %6541 = vmatmul.mubr.msk.f32.gmra.mrb[14].mxu1 %vm289_vm0, %v8053_v2  ;;  %v8093_v2 = vmax.f32 %v204_v18, 0.0  ;;  %v713_v18 = vrot.slane %v9896_v37, 1 }
  0x37   : > { %6336 = vmatmul.mubr.msk.f32.gmra.mrb[16].mxu0 %vm289_vm0, %v8011_v6  ;;  %6543 = vmatprep.mubr.msk.f32.mxu1 %vm289_vm0, %v8063_v15  ;;  %v8095_v15 = vmax.f32 %v205_v39, 0.0  ;;  %v8113_v39 = vmax.f32 %v207_v34, 0.0  ;;  %v211_v34 = vld [vmem:[%s7793_s8 + $0x140] sm:$0xff] }
  0x38   : > { %6338 = vmatprep.mubr.msk.f32.mxu0 %vm289_vm0, %v8037_v49  ;;  %10024 = vst [vmem:[#allocation14_spill] sm:$0xff] %v8093_v2  ;;  %v8123_v49 = vmax.f32 %v208_v35, 0.0  ;;  %v718_v35 = vrot.slane %v9906_v59, 1  ;;  %v214_v59 = vld [vmem:[%s7793_s8 + $0x158] sm:$0xff] }
  0x39   : > { %10025 = vst [vmem:[#allocation15_spill] sm:$0xff] %v8095_v15  ;;  %10028 = vst [vmem:[#allocation18_spill] sm:$0xff] %v8113_v39  ;;  %v720_v37 = vrot.slane %v8113_v39, 1 }
  0x3a   : > { %6544 = vmatmul.mubr.msk.f32.gmra.mrb[16].mxu1 %vm289_vm0, %v8081_v28  ;;  %v8119_v28 = vsel %vm659_vm1, %v710_v30, %v711_v9  ;;  %10030 = vst [vmem:[#allocation20_spill] sm:$0xff] %v8123_v49  ;;  %v8137_v30 = vsel %vm659_vm1, %v711_v9, %v713_v18  ;;  %v213_v9 = vld [vmem:[%s7793_s8 + $0x150] sm:$0xff]  ;;  %v8155_v18 = vld [vmem:[%s7793_s8 + $0x148] sm:$0x3] }
  0x3b   : > { %6339 = vmatmul.mubr.msk.f32.gmra.mrb[18].mxu0 %vm289_vm0, %v8039_v52  ;;  %6546 = vmatprep.mubr.msk.f32.mxu1 %vm289_vm0, %v8090_v24  ;;  %10029 = vst [vmem:[#allocation19_spill] sm:$0xff] %v8119_v28  ;;  %v715_v52 = vrot.slane %v8093_v2, 1  ;;  %v716_v24 = vrot.slane %v8095_v15, 1  ;;  %10032 = vst [vmem:[#allocation22_spill] sm:$0xff] %v8137_v30  ;;  %v9926_v11 = vmax.f32 %v8155_v18, 0.0 }
  0x3c   : > { %6341 = vmatprep.mubr.msk.f32.mxu0 %vm289_vm0, %v8057_v13  ;;  %v8149_v13 = vmax.f32 %v210_v63, 0.0  ;;  %10036 = vst [vmem:[#allocation26_spill] sm:$0xff] %v8155_v18  ;;  %v723_v63 = vrot.slane %v9916_v3, 1 }
  0x3e   : > { %6547 = vmatmul.mubr.msk.f32.gmra.mrb[18].mxu1 %vm289_vm0, %v8109_v4  ;;  %v8146_v4 = vsel %vm659_vm1, %v715_v52, %v716_v24  ;;  %10034 = vst [vmem:[#allocation24_spill] sm:$0xff] %v8149_v13  ;;  %v8165_v52 = vsel %vm659_vm1, %v716_v24, %v718_v35  ;;  %v8182_v24 = vld [vmem:[%s7793_s8 + $0x160] sm:$0x3]  ;;  %v216_v35 = vld [vmem:[%s7793_s8 + $0x168] sm:$0xff] }
  0x3f   : > { %6342 = vmatmul.mubr.msk.f32.gmra.mrb[20].mxu0 %vm289_vm0, %v8067_v50  ;;  %6549 = vmatprep.mubr.msk.f32.mxu1 %vm289_vm0, %v8119_v28  ;;  %10033 = vst [vmem:[#allocation23_spill] sm:$0xff] %v8146_v4  ;;  %v721_v50 = vrot.slane %v8123_v49, 1  ;;  %v8151_v28 = vmax.f32 %v211_v34, 0.0  ;;  %10037 = vst [vmem:[#allocation27_spill] sm:$0xff] %v8165_v52  ;;  %v8169_v34 = vmax.f32 %v213_v9, 0.0  ;;  %v217_v9 = vld [vmem:[%s7793_s8 + $0x170] sm:$0xff] }
  0x40   : > { %6344 = vmatprep.mubr.msk.f32.mxu0 %vm289_vm0, %v8093_v2  ;;  %v8179_v2 = vmax.f32 %v214_v59, 0.0  ;;  %10041 = vst [vmem:[#allocation31_spill] sm:$0xff] %v8182_v24  ;;  %v728_v59 = vrot.slane %v9926_v11, 1  ;;  %v9928_v57 = vmax.f32 %v8182_v24, 0.0  ;;  %v1903_v24 = vrot.slane %v7809_v20, 2 }
  0x41   : > { %10035 = vst [vmem:[#allocation25_spill] sm:$0xff] %v8151_v28  ;;  %10038 = vst [vmem:[#allocation28_spill] sm:$0xff] %v8169_v34  ;;  %v730_v3 = vrot.slane %v8169_v34, 1 }
  0x42   : > { %6550 = vmatmul.mubr.msk.f32.gmra.mrb[20].mxu1 %vm289_vm0, %v8137_v30  ;;  %v8175_v30 = vsel %vm659_vm1, %v720_v37, %v721_v50  ;;  %10040 = vst [vmem:[#allocation30_spill] sm:$0xff] %v8179_v2  ;;  %v8193_v37 = vsel %vm659_vm1, %v721_v50, %v723_v63  ;;  %v8210_v50 = vld [vmem:[%s7793_s8 + $0x178] sm:$0x3]  ;;  %v733_v63 = vrot.slane %v9928_v57, 1  ;;  %v1902_v57 = vrot.slane %v7807_v19, 2 }
  0x43   : > { %6345 = vmatmul.mubr.msk.f32.gmra.mrb[22].mxu0 %vm289_vm0, %v8095_v15  ;;  %6552 = vmatprep.mubr.msk.f32.mxu1 %vm289_vm0, %v8146_v4  ;;  %10039 = vst [vmem:[#allocation29_spill] sm:$0xff] %v8175_v30  ;;  %v725_v15 = vrot.slane %v8149_v13, 1  ;;  %v726_v4 = vrot.slane %v8151_v28, 1  ;;  %10044 = vst [vmem:[#allocation34_spill] sm:$0xff] %v8210_v50 }
  0x44   : > { %6347 = vmatprep.mubr.msk.f32.mxu0 %vm289_vm0, %v8113_v39  ;;  %v8205_v39 = vmax.f32 %v216_v35, 0.0  ;;  %v9930_v35 = vmax.f32 %v8210_v50, 0.0  ;;  %v1904_v20 = vsel %vm1901_vm2, %v1902_v57, %v1903_v24  ;;  %v1907_v50 = vrot.slane %v7811_v21, 2 }
  0x45   : > { %v10047_v57 = vmax.f32 %v7822_v27, 0.0 }
  0x46   : > { %6553 = vmatmul.mubr.msk.f32.gmra.mrb[22].mxu1 %vm289_vm0, %v8165_v52  ;;  %v8202_v52 = vsel %vm659_vm1, %v725_v15, %v726_v4  ;;  %10042 = vst [vmem:[#allocation32_spill] sm:$0xff] %v8205_v39  ;;  %v8219_v15 = vsel %vm659_vm1, %v726_v4, %v728_v59  ;;  %v735_v11 = vrot.slane %v8205_v39, 1 }
  0x47   : > { %6348 = vmatmul.mubr.msk.f32.gmra.mrb[24].mxu0 %vm289_vm0, %v8123_v49  ;;  %6555 = vmatprep.mubr.msk.f32.mxu1 %vm289_vm0, %v8175_v30  ;;  %v731_v49 = vrot.slane %v8179_v2, 1  ;;  %v8207_v30 = vmax.f32 %v217_v9, 0.0 }
  0x48   : > { %6350 = vmatprep.mubr.msk.f32.mxu0 %vm289_vm0, %v8149_v13 }
  0x49   : > { %10043 = vst [vmem:[#allocation33_spill] sm:$0xff] %v8207_v30  ;;  %v8227_v9 = vsel %vm659_vm1, %v730_v3, %v731_v49  ;;  %v736_v18 = vrot.slane %v8207_v30, 1  ;;  %v8238_v4 = vsel %vm659_vm1, %v731_v49, %v733_v63  ;;  %v738_v3 = vrot.slane %v9930_v35, 1  ;;  %v5219_v49 = vld [vmem:[%s9869_s1 + $0x30] sm:$0xff]  ;;  %v5220_v63 = vld [vmem:[%s9869_s1 + $0x38] sm:$0xff] }
  0x4a   : > { %6556 = vmatmul.mubr.msk.f32.gmra.mrb[24].mxu1 %vm289_vm0, %v8193_v37  ;;  %10045 = vst [vmem:[#allocation35_spill] sm:$0xff] %v8238_v4  ;;  %v10046_v35 = vmax.f32 %v7814_v22, 0.0  ;;  %v8271_v22 = vpack.c.bf16 %v5220_v63, %v5219_v49  ;;  %v1912_v49 = vrot.slane %v7832_v33, 2  ;;  %v1913_v63 = vrot.slane %v7852_v42, 2 }
  0x4b   : > { %6351 = vmatmul.mubr.msk.f32.gmra.mrb[26].mxu0 %vm289_vm0, %v8151_v28  ;;  %6558 = vmatprep.mubr.msk.f32.mxu1 %vm289_vm0, %v8202_v52  ;;  %v8245_v59 = vsel %vm659_vm1, %v735_v11, %v736_v18  ;;  %v8264_v19 = vsel %vm659_vm1, %v736_v18, %v738_v3  ;;  %v5357_v18 = vld [vmem:[%s9869_s1 + $0x78] sm:$0xff]  ;;  %v1910_v3 = vrot.slane %v10047_v57, 2  ;;  %v10056_v57 = vmax.f32 %v7901_v62, 0.0 }
  0x4c   : > { %6353 = vmatprep.mubr.msk.f32.mxu0 %vm289_vm0, %v8169_v34  ;;  %v1905_v11 = vrot.slane %v10046_v35, 2  ;;  %v5356_v35 = vld [vmem:[%s9869_s1 + $0x70] sm:$0xff] }
  0x4e   : > { %6559 = vmatmul.mubr.msk.f32.gmra.mrb[26].mxu1 %vm289_vm0, %v8219_v15 }
  0x4f   : > { %6354 = vmatmul.mubr.msk.f32.gmra.mrb[28].mxu0 %vm289_vm0, %v8179_v2  ;;  %6561 = vmatprep.mubr.msk.f32.mxu1 %vm289_vm0, %v8227_v9 }
  0x50   : > { %6356 = vmatprep.mubr.msk.f32.mxu0 %vm289_vm0, %v8205_v39 }
  0x52   : > { %6562 = vmatmul.mubr.msk.f32.gmra.mrb[28].mxu1 %vm289_vm0, %v8238_v4  ;;  %v1908_v4 = vrot.slane %v7818_v25, 2 }
  0x53   : > { %6357 = vmatmul.mubr.msk.f32.gmra.mrb[30].mxu0 %vm289_vm0, %v8207_v30  ;;  %6564 = vmatprep.mubr.msk.f32.mxu1 %vm289_vm0, %v8245_v59 }
  0x54   : > { %6363 = vmatprep.mubr.msk.f32.mxu0 %vm289_vm0, %v7848_v41  ;;  %v1906_v41 = vsel %vm1901_vm2, %v1903_v24, %v1905_v11  ;;  %v8293_v25 = vsel %vm1901_vm2, %v1907_v50, %v1908_v4  ;;  %v8303_v27 = vsel %vm1901_vm2, %v1908_v4, %v1910_v3  ;;  %v8312_v50 = vsel %vm1901_vm2, %v1912_v49, %v1913_v63 }
  0x55   : > { %10048 = vst [vmem:[#allocation36_spill] sm:$0xff] %v8293_v25  ;;  %10049 = vst [vmem:[#allocation37_spill] sm:$0xff] %v8303_v27  ;;  %v1918_v11 = vrot.slane %v7877_v53, 2  ;;  %v10053_v4 = vmax.f32 %v7859_v46, 0.0  ;;  %v1925_v3 = vrot.slane %v10056_v57, 2 }
  0x56   : > { %6565 = vmatmul.mubr.msk.f32.gmra.mrb[30].mxu1 %vm289_vm0, %v8264_v19  ;;  %10051 = vst [vmem:[#allocation38_spill] sm:$0xff] %v8312_v50 }
  0x57   : > { %6364 = vmatmul.mubr.msk.f32.vlgmr.msra.gmra.mrb[0].mxu0 %vm289_vm0, %v7864_v47  ;;  %6571 = vmatprep.mubr.msk.f32.mxu1 %vm289_vm0, %v1904_v20  ;;  %v8296_v47 = vpack.c.bf16 %v5357_v18, %v5356_v35  ;;  %v1920_v20 = vrot.slane %v10053_v4, 2  ;;  %v1922_v18 = vrot.slane %v7886_v56, 2  ;;  %v1932_v4 = vrot.slane %v7945_v14, 2 }
  0x58   : > { %6366 = vmatprep.mubr.msk.f32.mxu0 %vm289_vm0, %v7867_v48  ;;  %7150 = vmatpush3.bf16.msra.mxu0 %v7825_v29  ;;  %v10050_v29 = vmax.f32 %v7842_v38, 0.0 }
  0x59   : > { %7152 = vmatprep.subr.bf16.mxu0 %v8271_v22  ;;  %v8342_v46 = vsel %vm1901_vm2, %v1918_v11, %v1920_v20  ;;  %v1933_v20 = vrot.slane %v7955_v23, 2 }
  0x5a   : > { %6572 = vmatmul.mubr.msk.f32.vlgmr.msra.gmra.mrb[0].mxu1 %vm289_vm0, %v1906_v41  ;;  %v1915_v24 = vrot.slane %v10050_v29, 2  ;;  %v1923_v41 = vrot.slane %v7898_v61, 2  ;;  %10055 = vst [vmem:[#allocation41_spill] sm:$0xff] %v8342_v46  ;;  %v1928_v29 = vrot.slane %v7927_v8, 2 }
  0x5b   : > { %7166 = vmatpush3.bf16.msra.mxu1 %v7845_v40  ;;  %6367 = vmatmul.mubr.msk.f32.gmra.mrb[2].mxu0 %vm289_vm0, %v7882_v54  ;;  %v1917_v40 = vrot.slane %v7855_v44, 2  ;;  %v8385_v57 = vsel %vm1901_vm2, %v1932_v4, %v1933_v20  ;;  %v1942_v4 = vrot.slane %v8001_v60, 2 }
  0x5c   : > { %6574 = vmatprep.mubr.msk.f32.mxu1 %vm289_vm0, %v8293_v25  ;;  %6369 = vmatprep.mubr.msk.f32.mxu0 %vm289_vm0, %v7894_v58  ;;  %v8324_v38 = vsel %vm1901_vm2, %v1913_v63, %v1915_v24  ;;  %v8349_v49 = vsel %vm1901_vm2, %v1922_v18, %v1923_v41  ;;  %v1927_v63 = vrot.slane %v7925_v7, 2  ;;  %v8360_v62 = vsel %vm1901_vm2, %v1923_v41, %v1925_v3  ;;  %v10089_v25 = vld [vmem:[#allocation14_spill] sm:$0xff] }
  0x5d   : > { %7168 = vmatprep.subr.bf16.mxu1 %v8296_v47  ;;  %10052 = vst [vmem:[#allocation39_spill] sm:$0xff] %v8324_v38  ;;  %v8331_v35 = vsel %vm1901_vm2, %v1917_v40, %v1918_v11  ;;  %10057 = vst [vmem:[#allocation42_spill] sm:$0xff] %v8349_v49  ;;  %v10059_v24 = vmax.f32 %v7931_v10, 0.0  ;;  %v10062_v18 = vmax.f32 %v7958_v26, 0.0  ;;  %v1937_v3 = vrot.slane %v7981_v43, 2 }
  0x5e   : > { %6575 = vmatmul.mubr.msk.f32.gmra.mrb[2].mxu1 %vm289_vm0, %v8303_v27  ;;  %10054 = vst [vmem:[#allocation40_spill] sm:$0xff] %v8331_v35  ;;  %10058 = vst [vmem:[#allocation43_spill] sm:$0xff] %v8360_v62  ;;  %v8367_v11 = vsel %vm1901_vm2, %v1927_v63, %v1928_v29  ;;  %v1938_v63 = vrot.slane %v7983_v45, 2 }
  0x5f   : > { %6370 = vmatmul.mubr.msk.f32.gmra.mrb[4].mxu0 %vm289_vm0, %v7913_v1  ;;  %6577 = vmatprep.mubr.msk.f32.mxu1 %vm289_vm0, %v8312_v50  ;;  %v1930_v40 = vrot.slane %v10059_v24, 2  ;;  %10060 = vst [vmem:[#allocation44_spill] sm:$0xff] %v8367_v11  ;;  %v1935_v41 = vrot.slane %v10062_v18, 2  ;;  %10063 = vst [vmem:[#allocation46_spill] sm:$0xff] %v8385_v57  ;;  %v1943_v18 = vrot.slane %v8011_v6, 2 }
  0x60   : > { %6372 = vmatprep.mubr.msk.f32.mxu0 %vm289_vm0, %v7922_v5 }
  0x61   : > { %v8378_v10 = vsel %vm1901_vm2, %v1928_v29, %v1930_v40  ;;  %v8396_v26 = vsel %vm1901_vm2, %v1933_v20, %v1935_v41  ;;  %v10065_v29 = vmax.f32 %v7987_v51, 0.0  ;;  %v8403_v40 = vsel %vm1901_vm2, %v1937_v3, %v1938_v63  ;;  %v10069_v20 = vld [vmem:[#allocation3_spill] sm:$0xff] }
  0x62   : > { %6578 = vmatmul.mubr.msk.f32.gmra.mrb[4].mxu1 %vm289_vm0, %v8324_v38  ;;  %10061 = vst [vmem:[#allocation45_spill] sm:$0xff] %v8378_v10  ;;  %10064 = vst [vmem:[#allocation47_spill] sm:$0xff] %v8396_v26  ;;  %v10070_v41 = vmax.f32 %v10069_v20, 0.0  ;;  %v10082_v38 = vld [vmem:[#allocation10_spill] sm:$0xff] }
  0x63   : > { %6373 = vmatmul.mubr.msk.f32.gmra.mrb[6].mxu0 %vm289_vm0, %v7941_v12  ;;  %6580 = vmatprep.mubr.msk.f32.mxu1 %vm289_vm0, %v8331_v35  ;;  %v1940_v24 = vrot.slane %v10065_v29, 2  ;;  %10066 = vst [vmem:[#allocation48_spill] sm:$0xff] %v8403_v40  ;;  %v10071_v29 = vld [vmem:[#allocation9_spill] sm:$0xff]  ;;  %v10081_v35 = vld [vmem:[#allocation8_spill] sm:$0xff]  ;;  %v1953_v50 = vrot.slane %v10082_v38, 2  ;;  %v10090_v38 = vld [vmem:[#allocation15_spill] sm:$0xff] }
  0x64   : > { %6375 = vmatprep.mubr.msk.f32.mxu0 %vm289_vm0, %v7951_v16  ;;  %v1945_v3 = vrot.slane %v10070_v41, 2  ;;  %v10079_v41 = vld [vmem:[#allocation13_spill] sm:$0xff] }
  0x65   : > { %v8414_v51 = vsel %vm1901_vm2, %v1938_v63, %v1940_v24  ;;  %v10077_v24 = vld [vmem:[#allocation6_spill] sm:$0xff] }
  0x66   : > { %6581 = vmatmul.mubr.msk.f32.gmra.mrb[6].mxu1 %vm289_vm0, %v8342_v46  ;;  %v8432_v63 = vsel %vm1901_vm2, %v1943_v18, %v1945_v3  ;;  %v10078_v20 = vmax.f32 %v10077_v24, 0.0  ;;  %v10085_v3 = vld [vmem:[#allocation11_spill] sm:$0xff] }
  0x67   : > { %6376 = vmatmul.mubr.msk.f32.gmra.mrb[8].mxu0 %vm289_vm0, %v7969_v31  ;;  %6583 = vmatprep.mubr.msk.f32.mxu1 %vm289_vm0, %v8349_v49  ;;  %10076 = vst [vmem:[#allocation9_spill] sm:$0xff] %v8432_v63  ;;  %v10086_v24 = vmax.f32 %v10085_v3, 0.0 }
  0x68   : > { %6378 = vmatprep.mubr.msk.f32.mxu0 %vm289_vm0, %v7978_v36 }
  0x6a   : > { %6584 = vmatmul.mubr.msk.f32.gmra.mrb[8].mxu1 %vm289_vm0, %v8360_v62  ;;  %v10074_v62 = vld [vmem:[#allocation5_spill] sm:$0xff] }
  0x6b   : > { %6379 = vmatmul.mubr.msk.f32.gmra.mrb[10].mxu0 %vm289_vm0, %v7997_v55  ;;  %6586 = vmatprep.mubr.msk.f32.mxu1 %vm289_vm0, %v8367_v11  ;;  %v10073_v11 = vld [vmem:[#allocation4_spill] sm:$0xff]  ;;  %v1948_v49 = vrot.slane %v10074_v62, 2 }
  0x6c   : > { %6381 = vmatprep.mubr.msk.f32.mxu0 %vm289_vm0, %v8007_v0 }
  0x6e   : > { %6587 = vmatmul.mubr.msk.f32.gmra.mrb[10].mxu1 %vm289_vm0, %v8378_v10  ;;  %v8421_v10 = vsel %vm1901_vm2, %v1942_v4, %v1943_v18  ;;  %v1950_v4 = vrot.slane %v10078_v20, 2  ;;  %v10087_v20 = vld [vmem:[#allocation19_spill] sm:$0xff] }
  0x6f   : > { %6382 = vmatmul.mubr.msk.f32.gmra.mrb[12].mxu0 %vm289_vm0, %v8025_v17  ;;  %6589 = vmatprep.mubr.msk.f32.mxu1 %vm289_vm0, %v8385_v57  ;;  %v10067_v57 = vld [vmem:[#allocation7_spill] sm:$0xff]  ;;  %10072 = vst [vmem:[#allocation3_spill] sm:$0xff] %v8421_v10 }
  0x70   : > { %6384 = vmatprep.mubr.msk.f32.mxu0 %vm289_vm0, %v8034_v32  ;;  %10068 = vst [vmem:[#allocation7_spill] sm:$0xff] %v8414_v51  ;;  %v8450_v18 = vsel %vm1901_vm2, %v1948_v49, %v1950_v4  ;;  %v10093_v4 = vld [vmem:[#allocation16_spill] sm:$0xff] }
  0x71   : > { %v10094_v3 = vmax.f32 %v10093_v4, 0.0 }
  0x72   : > { %6590 = vmatmul.mubr.msk.f32.gmra.mrb[12].mxu1 %vm289_vm0, %v8396_v26  ;;  %v1947_v26 = vrot.slane %v10073_v11, 2 }
  0x73   : > { %6385 = vmatmul.mubr.msk.f32.gmra.mrb[14].mxu0 %vm289_vm0, %v10067_v57  ;;  %6592 = vmatprep.mubr.msk.f32.mxu1 %vm289_vm0, %v8403_v40  ;;  %v10075_v40 = vld [vmem:[#allocation12_spill] sm:$0xff] }
  0x74   : > { %6387 = vmatprep.mubr.msk.f32.mxu0 %vm289_vm0, %v10071_v29  ;;  %v8439_v46 = vsel %vm1901_vm2, %v1947_v26, %v1948_v49  ;;  %10084 = vst [vmem:[#allocation12_spill] sm:$0xff] %v8450_v18  ;;  %v1955_v26 = vrot.slane %v10086_v24, 2  ;;  %v10095_v24 = vld [vmem:[#allocation23_spill] sm:$0xff] }
  0x75   : > { %10080 = vst [vmem:[#allocation4_spill] sm:$0xff] %v8439_v46 }
  0x76   : > { %6593 = vmatmul.mubr.msk.f32.gmra.mrb[14].mxu1 %vm289_vm0, %v8414_v51  ;;  %v1952_v51 = vrot.slane %v10081_v35, 2  ;;  %v1958_v35 = vrot.slane %v10090_v38, 2  ;;  %v8468_v49 = vsel %vm1901_vm2, %v1953_v50, %v1955_v26  ;;  %v10101_v26 = vld [vmem:[#allocation21_spill] sm:$0xff] }
  0x77   : > { %6388 = vmatmul.mubr.msk.f32.gmra.mrb[16].mxu0 %vm289_vm0, %v10075_v40  ;;  %6595 = vmatprep.mubr.msk.f32.mxu1 %vm289_vm0, %v8421_v10  ;;  %v10083_v10 = vld [vmem:[#allocation17_spill] sm:$0xff]  ;;  %10092 = vst [vmem:[#allocation13_spill] sm:$0xff] %v8468_v49  ;;  %v10102_v4 = vmax.f32 %v10101_v26, 0.0 }
  0x78   : > { %6390 = vmatprep.mubr.msk.f32.mxu0 %vm289_vm0, %v10079_v41  ;;  %v8457_v27 = vsel %vm1901_vm2, %v1952_v51, %v1953_v50  ;;  %v1960_v51 = vrot.slane %v10094_v3, 2  ;;  %v10103_v3 = vld [vmem:[#allocation29_spill] sm:$0xff] }
  0x79   : > { %10088 = vst [vmem:[#allocation6_spill] sm:$0xff] %v8457_v27 }
  0x7a   : > { %6596 = vmatmul.mubr.msk.f32.gmra.mrb[16].mxu1 %vm289_vm0, %v8432_v63  ;;  %v1957_v63 = vrot.slane %v10089_v25, 2  ;;  %v10097_v25 = vld [vmem:[#allocation18_spill] sm:$0xff]  ;;  %v8486_v50 = vsel %vm1901_vm2, %v1958_v35, %v1960_v51 }
  0x7b   : > { %6391 = vmatmul.mubr.msk.f32.gmra.mrb[18].mxu0 %vm289_vm0, %v10083_v10  ;;  %6598 = vmatprep.mubr.msk.f32.mxu1 %vm289_vm0, %v8439_v46  ;;  %v10091_v46 = vld [vmem:[#allocation22_spill] sm:$0xff] }
  0x7c   : > { %6393 = vmatprep.mubr.msk.f32.mxu0 %vm289_vm0, %v10087_v20  ;;  %v8475_v38 = vsel %vm1901_vm2, %v1957_v63, %v1958_v35  ;;  %v10098_v20 = vld [vmem:[#allocation20_spill] sm:$0xff]  ;;  %10100 = vst [vmem:[#allocation22_spill] sm:$0xff] %v8486_v50  ;;  %v1965_v63 = vrot.slane %v10102_v4, 2  ;;  %v10106_v51 = vld [vmem:[#allocation26_spill] sm:$0xff] }
  0x7d   : > { %10096 = vst [vmem:[#allocation11_spill] sm:$0xff] %v8475_v38  ;;  %v1963_v10 = vrot.slane %v10098_v20, 2  ;;  %v10107_v26 = vmax.f32 %v10106_v51, 0.0 }
  0x7e   : > { %6599 = vmatmul.mubr.msk.f32.gmra.mrb[18].mxu1 %vm289_vm0, %v8450_v18  ;;  %v1962_v18 = vrot.slane %v10097_v25, 2  ;;  %v1968_v25 = vrot.slane %v8151_v28, 2 }
  0x7f   : > { %6394 = vmatmul.mubr.msk.f32.gmra.mrb[20].mxu0 %vm289_vm0, %v10091_v46  ;;  %6601 = vmatprep.mubr.msk.f32.mxu1 %vm289_vm0, %v8457_v27  ;;  %v10099_v27 = vld [vmem:[#allocation27_spill] sm:$0xff]  ;;  %v8504_v35 = vsel %vm1901_vm2, %v1963_v10, %v1965_v63 }
  0x80   : > { %6396 = vmatprep.mubr.msk.f32.mxu0 %vm289_vm0, %v10095_v24  ;;  %v8493_v20 = vsel %vm1901_vm2, %v1962_v18, %v1963_v10  ;;  %10105 = vst [vmem:[#allocation23_spill] sm:$0xff] %v8504_v35  ;;  %v1970_v18 = vrot.slane %v10107_v26, 2  ;;  %v10110_v63 = vld [vmem:[#allocation31_spill] sm:$0xff] }
  0x81   : > { %10104 = vst [vmem:[#allocation16_spill] sm:$0xff] %v8493_v20  ;;  %v10111_v51 = vmax.f32 %v10110_v63, 0.0 }
  0x82   : > { %6602 = vmatmul.mubr.msk.f32.gmra.mrb[20].mxu1 %vm289_vm0, %v8468_v49  ;;  %v1967_v49 = vrot.slane %v8149_v13, 2  ;;  %v8522_v10 = vsel %vm1901_vm2, %v1968_v25, %v1970_v18  ;;  %v10115_v18 = vld [vmem:[#allocation34_spill] sm:$0xff] }
  0x83   : > { %6397 = vmatmul.mubr.msk.f32.gmra.mrb[22].mxu0 %vm289_vm0, %v10099_v27  ;;  %6604 = vmatprep.mubr.msk.f32.mxu1 %vm289_vm0, %v8475_v38  ;;  %v1973_v38 = vrot.slane %v8179_v2, 2  ;;  %10109 = vst [vmem:[#allocation21_spill] sm:$0xff] %v8522_v10  ;;  %v10116_v63 = vmax.f32 %v10115_v18, 0.0  ;;  %v5592_v18 = vld [vmem:[%s9869_s1 + $0xc0] sm:$0xff] }
  0x84   : > { %6399 = vmatprep.mubr.msk.f32.mxu0 %vm289_vm0, %v10103_v3  ;;  %v8511_v4 = vsel %vm1901_vm2, %v1967_v49, %v1968_v25  ;;  %v1975_v49 = vrot.slane %v10111_v51, 2 }
  0x85   : > { %10108 = vst [vmem:[#allocation27_spill] sm:$0xff] %v8511_v4 }
  0x86   : > { %6605 = vmatmul.mubr.msk.f32.gmra.mrb[22].mxu1 %vm289_vm0, %v8486_v50  ;;  %v1972_v50 = vrot.slane %v8169_v34, 2  ;;  %v8540_v25 = vsel %vm1901_vm2, %v1973_v38, %v1975_v49 }
  0x87   : > { %6400 = vmatmul.mubr.msk.f32.gmra.mrb[24].mxu0 %vm289_vm0, %v8193_v37  ;;  %6607 = vmatprep.mubr.msk.f32.mxu1 %vm289_vm0, %v8493_v20  ;;  %v1978_v20 = vrot.slane %v8207_v30, 2  ;;  %10114 = vst [vmem:[#allocation26_spill] sm:$0xff] %v8540_v25 }
  0x88   : > { %6402 = vmatprep.mubr.msk.f32.mxu0 %vm289_vm0, %v8202_v52  ;;  %v8529_v26 = vsel %vm1901_vm2, %v1972_v50, %v1973_v38  ;;  %v1980_v50 = vrot.slane %v10116_v63, 2  ;;  %v5424_v38 = vld [vmem:[%s9869_s1 + $0x88] sm:$0xff] }
  0x89   : > { %10112 = vst [vmem:[#allocation29_spill] sm:$0xff] %v8529_v26  ;;  %v5593_v63 = vld [vmem:[%s9869_s1 + $0xc8] sm:$0xff] }
  0x8a   : > { %6608 = vmatmul.mubr.msk.f32.gmra.mrb[24].mxu1 %vm289_vm0, %v8504_v35  ;;  %v1977_v35 = vrot.slane %v8205_v39, 2 }
  0x8b   : > { %6403 = vmatmul.mubr.msk.f32.gmra.mrb[26].mxu0 %vm289_vm0, %v8219_v15  ;;  %6610 = vmatprep.mubr.msk.f32.mxu1 %vm289_vm0, %v8511_v4  ;;  %v10113_v4 = vld [vmem:[#allocation35_spill] sm:$0xff] }
  0x8c   : > { %6405 = vmatprep.mubr.msk.f32.mxu0 %vm289_vm0, %v8227_v9  ;;  %v8547_v51 = vsel %vm1901_vm2, %v1977_v35, %v1978_v20  ;;  %v8562_v35 = vsel %vm1901_vm2, %v1978_v20, %v1980_v50  ;;  %v8584_v20 = vpack.c.bf16 %v5593_v63, %v5592_v18  ;;  %v10123_v50 = vld [vmem:[#allocation19_spill] sm:$0xff]  ;;  %v10126_v63 = vld [vmem:[#allocation18_spill] sm:$0xff] }
  0x8d   : > { %10117 = vst [vmem:[#allocation31_spill] sm:$0xff] %v8547_v51  ;;  %10118 = vst [vmem:[#allocation35_spill] sm:$0xff] %v8562_v35  ;;  %v10125_v18 = vld [vmem:[#allocation15_spill] sm:$0xff] }
  0x8e   : > { %6611 = vmatmul.mubr.msk.f32.gmra.mrb[26].mxu1 %vm289_vm0, %v8522_v10  ;;  %v5423_v10 = vld [vmem:[%s9869_s1 + $0x80] sm:$0xff] }
  0x8f   : > { %6406 = vmatmul.mubr.msk.f32.gmra.mrb[28].mxu0 %vm289_vm0, %v10113_v4  ;;  %6613 = vmatprep.mubr.msk.f32.mxu1 %vm289_vm0, %v8529_v26  ;;  %v8566_v49 = vpack.c.bf16 %v5424_v38, %v5423_v10  ;;  %v10122_v10 = vld [vmem:[#allocation10_spill] sm:$0xff] }
  0x90   : > { %6408 = vmatprep.mubr.msk.f32.mxu0 %vm289_vm0, %v8245_v59  ;;  %v10124_v38 = vld [vmem:[#allocation14_spill] sm:$0xff] }
  0x92   : > { %6614 = vmatmul.mubr.msk.f32.gmra.mrb[28].mxu1 %vm289_vm0, %v8540_v25 }
  0x93   : > { %6409 = vmatmul.mubr.msk.f32.gmra.mrb[30].mxu0 %vm289_vm0, %v8264_v19  ;;  %6616 = vmatprep.mubr.msk.f32.mxu1 %vm289_vm0, %v8547_v51  ;;  %v10119_v51 = vld [vmem:[#allocation2_spill] sm:$0xff] }
  0x94   : > { %6415 = vmatprep.mubr.msk.f32.mxu0 %vm289_vm0, %v7811_v21 }
  0x96   : > { %6617 = vmatmul.mubr.msk.f32.gmra.mrb[30].mxu1 %vm289_vm0, %v8562_v35 }
  0x97   : > { %6416 = vmatmul.mubr.msk.f32.vlgmr.msra.gmra.mrb[0].mxu0 %vm289_vm0, %v10119_v51  ;;  %6623 = vmatprep.mubr.msk.f32.mxu1 %vm289_vm0, %v7867_v48 }
  0x98   : > { %6418 = vmatprep.mubr.msk.f32.mxu0 %vm289_vm0, %v7832_v33  ;;  %7154 = vmatpush3.bf16.msra.mxu0 %v8271_v22  ;;  %v10120_v22 = vld [vmem:[#allocation8_spill] sm:$0xff] }
  0x99   : > { %7172 = vmatprep.subr.bf16.mxu0 %v8566_v49 }
  0x9a   : > { %6624 = vmatmul.mubr.msk.f32.vlgmr.msra.gmra.mrb[0].mxu1 %vm289_vm0, %v7882_v54 }
  0x9b   : > { %7170 = vmatpush3.bf16.msra.mxu1 %v8296_v47  ;;  %6419 = vmatmul.mubr.msk.f32.gmra.mrb[2].mxu0 %vm289_vm0, %v7852_v42  ;;  %v10121_v47 = vld [vmem:[#allocation17_spill] sm:$0xff] }
  0x9c   : > { %6626 = vmatprep.mubr.msk.f32.mxu1 %vm289_vm0, %v7894_v58  ;;  %6421 = vmatprep.mubr.msk.f32.mxu0 %vm289_vm0, %v7855_v44 }
  0x9d   : > { %7188 = vmatprep.subr.bf16.mxu1 %v8584_v20 }
  0x9e   : > { %6627 = vmatmul.mubr.msk.f32.gmra.mrb[2].mxu1 %vm289_vm0, %v7913_v1 }
  0x9f   : > { %6422 = vmatmul.mubr.msk.f32.gmra.mrb[4].mxu0 %vm289_vm0, %v7877_v53  ;;  %6629 = vmatprep.mubr.msk.f32.mxu1 %vm289_vm0, %v7922_v5 }
  0xa0   : > { %6424 = vmatprep.mubr.msk.f32.mxu0 %vm289_vm0, %v7886_v56 }
  0xa2   : > { %6630 = vmatmul.mubr.msk.f32.gmra.mrb[4].mxu1 %vm289_vm0, %v7941_v12 }
  0xa3   : > { %6425 = vmatmul.mubr.msk.f32.gmra.mrb[6].mxu0 %vm289_vm0, %v7898_v61  ;;  %6632 = vmatprep.mubr.msk.f32.mxu1 %vm289_vm0, %v7951_v16 }
  0xa4   : > { %6427 = vmatprep.mubr.msk.f32.mxu0 %vm289_vm0, %v7925_v7 }
  0xa6   : > { %6633 = vmatmul.mubr.msk.f32.gmra.mrb[6].mxu1 %vm289_vm0, %v7969_v31 }
  0xa7   : > { %6428 = vmatmul.mubr.msk.f32.gmra.mrb[8].mxu0 %vm289_vm0, %v7927_v8  ;;  %6635 = vmatprep.mubr.msk.f32.mxu1 %vm289_vm0, %v7978_v36 }
  0xa8   : > { %6430 = vmatprep.mubr.msk.f32.mxu0 %vm289_vm0, %v7945_v14 }
  0xaa   : > { %6636 = vmatmul.mubr.msk.f32.gmra.mrb[8].mxu1 %vm289_vm0, %v7997_v55 }
  0xab   : > { %6431 = vmatmul.mubr.msk.f32.gmra.mrb[10].mxu0 %vm289_vm0, %v7955_v23  ;;  %6638 = vmatprep.mubr.msk.f32.mxu1 %vm289_vm0, %v8007_v0 }
  0xac   : > { %6433 = vmatprep.mubr.msk.f32.mxu0 %vm289_vm0, %v7981_v43 }
  0xae   : > { %6639 = vmatmul.mubr.msk.f32.gmra.mrb[10].mxu1 %vm289_vm0, %v8025_v17 }
  0xaf   : > { %6434 = vmatmul.mubr.msk.f32.gmra.mrb[12].mxu0 %vm289_vm0, %v7983_v45  ;;  %6641 = vmatprep.mubr.msk.f32.mxu1 %vm289_vm0, %v8034_v32 }
  0xb0   : > { %6436 = vmatprep.mubr.msk.f32.mxu0 %vm289_vm0, %v8001_v60 }
  0xb2   : > { %6642 = vmatmul.mubr.msk.f32.gmra.mrb[12].mxu1 %vm289_vm0, %v10067_v57 }
  0xb3   : > { %6437 = vmatmul.mubr.msk.f32.gmra.mrb[14].mxu0 %vm289_vm0, %v8011_v6  ;;  %6644 = vmatprep.mubr.msk.f32.mxu1 %vm289_vm0, %v10071_v29 }
  0xb4   : > { %6439 = vmatprep.mubr.msk.f32.mxu0 %vm289_vm0, %v10073_v11 }
  0xb6   : > { %6645 = vmatmul.mubr.msk.f32.gmra.mrb[14].mxu1 %vm289_vm0, %v10075_v40 }
  0xb7   : > { %6440 = vmatmul.mubr.msk.f32.gmra.mrb[16].mxu0 %vm289_vm0, %v10074_v62  ;;  %6647 = vmatprep.mubr.msk.f32.mxu1 %vm289_vm0, %v10079_v41  ;;  %v5627_v62 = vld [vmem:[%s9869_s1 + $0xd8] sm:$0xff] }
  0xb8   : > { %6442 = vmatprep.mubr.msk.f32.mxu0 %vm289_vm0, %v10120_v22  ;;  %v8691_v22 = vld [vmem:[%s7793_s8 + $0x190] sm:$0x3] }
  0xba   : > { %6648 = vmatmul.mubr.msk.f32.gmra.mrb[16].mxu1 %vm289_vm0, %v10121_v47 }
  0xbb   : > { %6443 = vmatmul.mubr.msk.f32.gmra.mrb[18].mxu0 %vm289_vm0, %v10122_v10  ;;  %6650 = vmatprep.mubr.msk.f32.mxu1 %vm289_vm0, %v10123_v50  ;;  %v10127_v10 = vld [vmem:[#allocation20_spill] sm:$0xff] }
  0xbc   : > { %6445 = vmatprep.mubr.msk.f32.mxu0 %vm289_vm0, %v10124_v38  ;;  %v219_v38 = vld [vmem:[%s7793_s8 + $0x180] sm:$0xff] }
  0xbe   : > { %6651 = vmatmul.mubr.msk.f32.gmra.mrb[18].mxu1 %vm289_vm0, %v10091_v46 }
  0xbf   : > { %6446 = vmatmul.mubr.msk.f32.gmra.mrb[20].mxu0 %vm289_vm0, %v10125_v18  ;;  %6653 = vmatprep.mubr.msk.f32.mxu1 %vm289_vm0, %v10095_v24  ;;  %v220_v18 = vld [vmem:[%s7793_s8 + $0x188] sm:$0xff] }
  0xc0   : > { %6448 = vmatprep.mubr.msk.f32.mxu0 %vm289_vm0, %v10126_v63  ;;  %v8688_v63 = vmax.f32 %v220_v18, 0.0 }
  0xc2   : > { %6654 = vmatmul.mubr.msk.f32.gmra.mrb[20].mxu1 %vm289_vm0, %v10099_v27  ;;  %10129 = vst [vmem:[#allocation2_spill] sm:$0xff] %v8688_v63  ;;  %v1332_v18 = vrot.slane %v8688_v63, 1 }
  0xc3   : > { %6449 = vmatmul.mubr.msk.f32.gmra.mrb[22].mxu0 %vm289_vm0, %v10127_v10  ;;  %6656 = vmatprep.mubr.msk.f32.mxu1 %vm289_vm0, %v10103_v3  ;;  %v8686_v10 = vmax.f32 %v219_v38, 0.0 }
  0xc4   : > { %6451 = vmatprep.mubr.msk.f32.mxu0 %vm289_vm0, %v8149_v13  ;;  %v5626_v13 = vld [vmem:[%s9869_s1 + $0xd0] sm:$0xff] }
  0xc5   : > { %10128 = vst [vmem:[#allocation34_spill] sm:$0xff] %v8686_v10  ;;  %v1331_v38 = vrot.slane %v8686_v10, 1 }
  0xc6   : > { %6657 = vmatmul.mubr.msk.f32.gmra.mrb[22].mxu1 %vm289_vm0, %v8193_v37 }
  0xc7   : > { %6452 = vmatmul.mubr.msk.f32.gmra.mrb[24].mxu0 %vm289_vm0, %v8151_v28  ;;  %6659 = vmatprep.mubr.msk.f32.mxu1 %vm289_vm0, %v8202_v52  ;;  %v10000_v28 = vmax.f32 %v8691_v22, 0.0 }
  0xc8   : > { %6454 = vmatprep.mubr.msk.f32.mxu0 %vm289_vm0, %v8169_v34  ;;  %v5457_v34 = vld [vmem:[%s9869_s1 + $0x90] sm:$0xff] }
  0xca   : > { %6660 = vmatmul.mubr.msk.f32.gmra.mrb[24].mxu1 %vm289_vm0, %v8219_v15 }
  0xcb   : > { %6455 = vmatmul.mubr.msk.f32.gmra.mrb[26].mxu0 %vm289_vm0, %v8179_v2  ;;  %6662 = vmatprep.mubr.msk.f32.mxu1 %vm289_vm0, %v8227_v9  ;;  %v1334_v2 = vrot.slane %v10000_v28, 1 }
  0xcc   : > { %6457 = vmatprep.mubr.msk.f32.mxu0 %vm289_vm0, %v8205_v39  ;;  %v8715_v39 = vsel %vm659_vm1, %v1331_v38, %v1332_v18 }
  0xcd   : > { %v8730_v38 = vsel %vm659_vm1, %v1332_v18, %v1334_v2  ;;  %v10130_v2 = vld [vmem:[#allocation36_spill] sm:$0xff]  ;;  %v10132_v18 = vld [vmem:[#allocation38_spill] sm:$0xff] }
  0xce   : > { %6663 = vmatmul.mubr.msk.f32.gmra.mrb[26].mxu1 %vm289_vm0, %v10113_v4 }
  0xcf   : > { %6458 = vmatmul.mubr.msk.f32.gmra.mrb[28].mxu0 %vm289_vm0, %v8207_v30  ;;  %6665 = vmatprep.mubr.msk.f32.mxu1 %vm289_vm0, %v8245_v59  ;;  %v5458_v30 = vld [vmem:[%s9869_s1 + $0x98] sm:$0xff] }
  0xd0   : > { %6460 = vmatprep.mubr.msk.f32.mxu0 %vm289_vm0, %v8686_v10  ;;  %v8734_v28 = vpack.c.bf16 %v5458_v30, %v5457_v34  ;;  %v8752_v30 = vpack.c.bf16 %v5627_v62, %v5626_v13  ;;  %v10131_v34 = vld [vmem:[#allocation37_spill] sm:$0xff]  ;;  %v10134_v13 = vld [vmem:[#allocation40_spill] sm:$0xff] }
  0xd1   : > { %v10135_v62 = vld [vmem:[#allocation41_spill] sm:$0xff] }
  0xd2   : > { %6666 = vmatmul.mubr.msk.f32.gmra.mrb[28].mxu1 %vm289_vm0, %v8264_v19 }
  0xd3   : > { %6461 = vmatmul.mubr.msk.f32.gmra.mrb[30].mxu0 %vm289_vm0, %v8688_v63  ;;  %6668 = vmatprep.mubr.msk.f32.mxu1 %vm289_vm0, %v8715_v39 }
  0xd4   : > { %6467 = vmatprep.mubr.msk.f32.mxu0 %vm289_vm0, %v7867_v48 }
  0xd6   : > { %6669 = vmatmul.mubr.msk.f32.gmra.mrb[30].mxu1 %vm289_vm0, %v8730_v38 }
  0xd7   : > { %6468 = vmatmul.mubr.msk.f32.vlgmr.msra.gmra.mrb[0].mxu0 %vm289_vm0, %v7882_v54  ;;  %6675 = vmatprep.mubr.msk.f32.mxu1 %vm289_vm0, %v10130_v2 }
  0xd8   : > { %6470 = vmatprep.mubr.msk.f32.mxu0 %vm289_vm0, %v7894_v58  ;;  %7174 = vmatpush3.bf16.msra.mxu0 %v8566_v49  ;;  %v10133_v49 = vld [vmem:[#allocation39_spill] sm:$0xff] }
  0xd9   : > { %7176 = vmatprep.subr.bf16.mxu0 %v8734_v28 }
  0xda   : > { %6676 = vmatmul.mubr.msk.f32.vlgmr.msra.gmra.mrb[0].mxu1 %vm289_vm0, %v10131_v34 }
  0xdb   : > { %7190 = vmatpush3.bf16.msra.mxu1 %v8584_v20  ;;  %6471 = vmatmul.mubr.msk.f32.gmra.mrb[2].mxu0 %vm289_vm0, %v7913_v1  ;;  %v10136_v20 = vld [vmem:[#allocation42_spill] sm:$0xff] }
  0xdc   : > { %6678 = vmatprep.mubr.msk.f32.mxu1 %vm289_vm0, %v10132_v18  ;;  %6473 = vmatprep.mubr.msk.f32.mxu0 %vm289_vm0, %v7922_v5 }
  0xdd   : > { %7192 = vmatprep.subr.bf16.mxu1 %v8752_v30 }
  0xde   : > { %6679 = vmatmul.mubr.msk.f32.gmra.mrb[2].mxu1 %vm289_vm0, %v10133_v49  ;;  %v10137_v49 = vld [vmem:[#allocation43_spill] sm:$0xff] }
  0xdf   : > { %6474 = vmatmul.mubr.msk.f32.gmra.mrb[4].mxu0 %vm289_vm0, %v7941_v12  ;;  %6681 = vmatprep.mubr.msk.f32.mxu1 %vm289_vm0, %v10134_v13  ;;  %v10138_v13 = vld [vmem:[#allocation44_spill] sm:$0xff] }
  0xe0   : > { %6476 = vmatprep.mubr.msk.f32.mxu0 %vm289_vm0, %v7951_v16 }
  0xe2   : > { %6682 = vmatmul.mubr.msk.f32.gmra.mrb[4].mxu1 %vm289_vm0, %v10135_v62  ;;  %v10139_v62 = vld [vmem:[#allocation45_spill] sm:$0xff] }
  0xe3   : > { %6477 = vmatmul.mubr.msk.f32.gmra.mrb[6].mxu0 %vm289_vm0, %v7969_v31  ;;  %6684 = vmatprep.mubr.msk.f32.mxu1 %vm289_vm0, %v10136_v20  ;;  %v10140_v20 = vld [vmem:[#allocation46_spill] sm:$0xff] }
  0xe4   : > { %6479 = vmatprep.mubr.msk.f32.mxu0 %vm289_vm0, %v7978_v36 }
  0xe6   : > { %6685 = vmatmul.mubr.msk.f32.gmra.mrb[6].mxu1 %vm289_vm0, %v10137_v49  ;;  %v10141_v49 = vld [vmem:[#allocation47_spill] sm:$0xff] }
  0xe7   : > { %6480 = vmatmul.mubr.msk.f32.gmra.mrb[8].mxu0 %vm289_vm0, %v7997_v55  ;;  %6687 = vmatprep.mubr.msk.f32.mxu1 %vm289_vm0, %v10138_v13  ;;  %v10142_v13 = vld [vmem:[#allocation48_spill] sm:$0xff] }
  0xe8   : > { %6482 = vmatprep.mubr.msk.f32.mxu0 %vm289_vm0, %v8007_v0 }
  0xea   : > { %6688 = vmatmul.mubr.msk.f32.gmra.mrb[8].mxu1 %vm289_vm0, %v10139_v62  ;;  %v10143_v62 = vld [vmem:[#allocation7_spill] sm:$0xff] }
  0xeb   : > { %6483 = vmatmul.mubr.msk.f32.gmra.mrb[10].mxu0 %vm289_vm0, %v8025_v17  ;;  %6690 = vmatprep.mubr.msk.f32.mxu1 %vm289_vm0, %v10140_v20  ;;  %v10144_v20 = vld [vmem:[#allocation3_spill] sm:$0xff] }
  0xec   : > { %6485 = vmatprep.mubr.msk.f32.mxu0 %vm289_vm0, %v8034_v32 }
  0xee   : > { %6691 = vmatmul.mubr.msk.f32.gmra.mrb[10].mxu1 %vm289_vm0, %v10141_v49  ;;  %v10145_v49 = vld [vmem:[#allocation9_spill] sm:$0xff] }
  0xef   : > { %6486 = vmatmul.mubr.msk.f32.gmra.mrb[12].mxu0 %vm289_vm0, %v10067_v57  ;;  %6693 = vmatprep.mubr.msk.f32.mxu1 %vm289_vm0, %v10142_v13  ;;  %v10146_v13 = vld [vmem:[#allocation4_spill] sm:$0xff] }
  0xf0   : > { %6488 = vmatprep.mubr.msk.f32.mxu0 %vm289_vm0, %v10071_v29 }
  0xf2   : > { %6694 = vmatmul.mubr.msk.f32.gmra.mrb[12].mxu1 %vm289_vm0, %v10143_v62  ;;  %v10147_v62 = vld [vmem:[#allocation12_spill] sm:$0xff] }
  0xf3   : > { %6489 = vmatmul.mubr.msk.f32.gmra.mrb[14].mxu0 %vm289_vm0, %v10075_v40  ;;  %6696 = vmatprep.mubr.msk.f32.mxu1 %vm289_vm0, %v10144_v20  ;;  %v10148_v20 = vld [vmem:[#allocation6_spill] sm:$0xff] }
  0xf4   : > { %6491 = vmatprep.mubr.msk.f32.mxu0 %vm289_vm0, %v10079_v41 }
  0xf6   : > { %6697 = vmatmul.mubr.msk.f32.gmra.mrb[14].mxu1 %vm289_vm0, %v10145_v49  ;;  %v10149_v49 = vld [vmem:[#allocation13_spill] sm:$0xff] }
  0xf7   : > { %6492 = vmatmul.mubr.msk.f32.gmra.mrb[16].mxu0 %vm289_vm0, %v10121_v47  ;;  %6699 = vmatprep.mubr.msk.f32.mxu1 %vm289_vm0, %v10146_v13  ;;  %v10150_v13 = vld [vmem:[#allocation11_spill] sm:$0xff] }
  0xf8   : > { %6494 = vmatprep.mubr.msk.f32.mxu0 %vm289_vm0, %v10123_v50 }
  0xfa   : > { %6700 = vmatmul.mubr.msk.f32.gmra.mrb[16].mxu1 %vm289_vm0, %v10147_v62  ;;  %v10151_v62 = vld [vmem:[#allocation22_spill] sm:$0xff] }
  0xfb   : > { %6495 = vmatmul.mubr.msk.f32.gmra.mrb[18].mxu0 %vm289_vm0, %v10091_v46  ;;  %6702 = vmatprep.mubr.msk.f32.mxu1 %vm289_vm0, %v10148_v20  ;;  %v10152_v20 = vld [vmem:[#allocation16_spill] sm:$0xff] }
  0xfc   : > { %6497 = vmatprep.mubr.msk.f32.mxu0 %vm289_vm0, %v10095_v24 }
  0xfe   : > { %6703 = vmatmul.mubr.msk.f32.gmra.mrb[18].mxu1 %vm289_vm0, %v10149_v49  ;;  %v10153_v49 = vld [vmem:[#allocation23_spill] sm:$0xff] }
  0xff   : > { %6498 = vmatmul.mubr.msk.f32.gmra.mrb[20].mxu0 %vm289_vm0, %v10099_v27  ;;  %6705 = vmatprep.mubr.msk.f32.mxu1 %vm289_vm0, %v10150_v13  ;;  %v10154_v13 = vld [vmem:[#allocation27_spill] sm:$0xff] }
 0x100   : > { %6500 = vmatprep.mubr.msk.f32.mxu0 %vm289_vm0, %v10103_v3 }
 0x102   : > { %6706 = vmatmul.mubr.msk.f32.gmra.mrb[20].mxu1 %vm289_vm0, %v10151_v62  ;;  %v10155_v62 = vld [vmem:[#allocation21_spill] sm:$0xff] }
 0x103   : > { %6501 = vmatmul.mubr.msk.f32.gmra.mrb[22].mxu0 %vm289_vm0, %v8193_v37  ;;  %6708 = vmatprep.mubr.msk.f32.mxu1 %vm289_vm0, %v10152_v20  ;;  %v2567_v20 = vrot.slane %v8688_v63, 2 }
 0x104   : > { %6503 = vmatprep.mubr.msk.f32.mxu0 %vm289_vm0, %v8202_v52 }
 0x106   : > { %6709 = vmatmul.mubr.msk.f32.gmra.mrb[22].mxu1 %vm289_vm0, %v10153_v49  ;;  %v2566_v49 = vrot.slane %v8686_v10, 2 }
 0x107   : > { %6504 = vmatmul.mubr.msk.f32.gmra.mrb[24].mxu0 %vm289_vm0, %v8219_v15  ;;  %6711 = vmatprep.mubr.msk.f32.mxu1 %vm289_vm0, %v10154_v13  ;;  %v10157_v13 = vmax.f32 %v8691_v22, 0.0 }
 0x108   : > { %6506 = vmatprep.mubr.msk.f32.mxu0 %vm289_vm0, %v8227_v9 }
 0x109   : > { %v2569_v18 = vrot.slane %v10157_v13, 2  ;;  %v5660_v13 = vld [vmem:[%s9869_s1 + $0xe0] sm:$0xff] }
 0x10a   : > { %6712 = vmatmul.mubr.msk.f32.gmra.mrb[24].mxu1 %vm289_vm0, %v10155_v62  ;;  %v10156_v62 = vld [vmem:[#allocation31_spill] sm:$0xff] }
 0x10b   : > { %6507 = vmatmul.mubr.msk.f32.gmra.mrb[26].mxu0 %vm289_vm0, %v10113_v4  ;;  %6714 = vmatprep.mubr.msk.f32.mxu1 %vm289_vm0, %v8529_v26  ;;  %v8873_v26 = vsel %vm1901_vm2, %v2566_v49, %v2567_v20  ;;  %v8888_v22 = vsel %vm1901_vm2, %v2567_v20, %v2569_v18  ;;  %v10163_v18 = vld [vmem:[#allocation18_spill] sm:$0xff]  ;;  %v10165_v20 = vld [vmem:[#allocation24_spill] sm:$0xff] }
 0x10c   : > { %6509 = vmatprep.mubr.msk.f32.mxu0 %vm289_vm0, %v8245_v59 }
 0x10e   : > { %6715 = vmatmul.mubr.msk.f32.gmra.mrb[26].mxu1 %vm289_vm0, %v8540_v25  ;;  %v5491_v25 = vld [vmem:[%s9869_s1 + $0xa0] sm:$0xff] }
 0x10f   : > { %6510 = vmatmul.mubr.msk.f32.gmra.mrb[28].mxu0 %vm289_vm0, %v8264_v19  ;;  %6717 = vmatprep.mubr.msk.f32.mxu1 %vm289_vm0, %v10156_v62  ;;  %v5492_v62 = vld [vmem:[%s9869_s1 + $0xa8] sm:$0xff] }
 0x110   : > { %6512 = vmatprep.mubr.msk.f32.mxu0 %vm289_vm0, %v8715_v39  ;;  %v8892_v49 = vpack.c.bf16 %v5492_v62, %v5491_v25  ;;  %v10159_v25 = vld [vmem:[#allocation8_spill] sm:$0xff] }
 0x111   : > { %v10164_v62 = vld [vmem:[#allocation20_spill] sm:$0xff] }
 0x112   : > { %6718 = vmatmul.mubr.msk.f32.gmra.mrb[28].mxu1 %vm289_vm0, %v8562_v35  ;;  %v5661_v35 = vld [vmem:[%s9869_s1 + $0xe8] sm:$0xff] }
 0x113   : > { %6513 = vmatmul.mubr.msk.f32.gmra.mrb[30].mxu0 %vm289_vm0, %v8730_v38  ;;  %6720 = vmatprep.mubr.msk.f32.mxu1 %vm289_vm0, %v8873_v26 }
 0x114   : > { %6727 = vmatprep.mubr.msk.f32.mxu0 %vm289_vm0, %v7811_v21  ;;  %v8910_v21 = vpack.c.bf16 %v5661_v35, %v5660_v13  ;;  %v10161_v35 = vld [vmem:[#allocation14_spill] sm:$0xff]  ;;  %v10166_v13 = vld [vmem:[#allocation25_spill] sm:$0xff] }
 0x116   : > { %6721 = vmatmul.mubr.msk.f32.gmra.mrb[30].mxu1 %vm289_vm0, %v8888_v22 }
 0x117   : > { %6728 = vmatmul.mubr.msk.f32.vlgmr.msra.gmra.mrb[32].mxu0 %vm289_vm0, %v10119_v51  ;;  %6935 = vmatprep.mubr.msk.f32.mxu1 %vm289_vm0, %v7867_v48  ;;  %v10160_v51 = vld [vmem:[#allocation10_spill] sm:$0xff] }
 0x118   : > { %6730 = vmatprep.mubr.msk.f32.mxu0 %vm289_vm0, %v7832_v33  ;;  %7178 = vmatpush3.bf16.msra.mxu0 %v8734_v28  ;;  %v10158_v28 = vld [vmem:[#allocation5_spill] sm:$0xff] }
 0x119   : > { %7180 = vmatprep.subr.bf16.mxu0 %v8892_v49 }
 0x11a   : > { %6936 = vmatmul.mubr.msk.f32.vlgmr.msra.gmra.mrb[32].mxu1 %vm289_vm0, %v7882_v54 }
 0x11b   : > { %7194 = vmatpush3.bf16.msra.mxu1 %v8752_v30  ;;  %6731 = vmatmul.mubr.msk.f32.gmra.mrb[34].mxu0 %vm289_vm0, %v7852_v42  ;;  %v10162_v30 = vld [vmem:[#allocation15_spill] sm:$0xff] }
 0x11c   : > { %6938 = vmatprep.mubr.msk.f32.mxu1 %vm289_vm0, %v7894_v58  ;;  %6733 = vmatprep.mubr.msk.f32.mxu0 %vm289_vm0, %v7855_v44 }
 0x11d   : > { %7196 = vmatprep.subr.bf16.mxu1 %v8910_v21 }
 0x11e   : > { %6939 = vmatmul.mubr.msk.f32.gmra.mrb[34].mxu1 %vm289_vm0, %v7913_v1 }
 0x11f   : > { %6734 = vmatmul.mubr.msk.f32.gmra.mrb[36].mxu0 %vm289_vm0, %v7877_v53  ;;  %6941 = vmatprep.mubr.msk.f32.mxu1 %vm289_vm0, %v7922_v5 }
 0x120   : > { %6736 = vmatprep.mubr.msk.f32.mxu0 %vm289_vm0, %v7886_v56 }
 0x122   : > { %6942 = vmatmul.mubr.msk.f32.gmra.mrb[36].mxu1 %vm289_vm0, %v7941_v12 }
 0x123   : > { %6737 = vmatmul.mubr.msk.f32.gmra.mrb[38].mxu0 %vm289_vm0, %v7898_v61  ;;  %6944 = vmatprep.mubr.msk.f32.mxu1 %vm289_vm0, %v7951_v16 }
 0x124   : > { %6739 = vmatprep.mubr.msk.f32.mxu0 %vm289_vm0, %v7925_v7 }
 0x126   : > { %6945 = vmatmul.mubr.msk.f32.gmra.mrb[38].mxu1 %vm289_vm0, %v7969_v31 }
 0x127   : > { %6740 = vmatmul.mubr.msk.f32.gmra.mrb[40].mxu0 %vm289_vm0, %v7927_v8  ;;  %6947 = vmatprep.mubr.msk.f32.mxu1 %vm289_vm0, %v7978_v36 }
 0x128   : > { %6742 = vmatprep.mubr.msk.f32.mxu0 %vm289_vm0, %v7945_v14 }
 0x12a   : > { %6948 = vmatmul.mubr.msk.f32.gmra.mrb[40].mxu1 %vm289_vm0, %v7997_v55 }
 0x12b   : > { %6743 = vmatmul.mubr.msk.f32.gmra.mrb[42].mxu0 %vm289_vm0, %v7955_v23  ;;  %6950 = vmatprep.mubr.msk.f32.mxu1 %vm289_vm0, %v8007_v0 }
 0x12c   : > { %6745 = vmatprep.mubr.msk.f32.mxu0 %vm289_vm0, %v7981_v43 }
 0x12e   : > { %6951 = vmatmul.mubr.msk.f32.gmra.mrb[42].mxu1 %vm289_vm0, %v8025_v17 }
 0x12f   : > { %6746 = vmatmul.mubr.msk.f32.gmra.mrb[44].mxu0 %vm289_vm0, %v7983_v45  ;;  %6953 = vmatprep.mubr.msk.f32.mxu1 %vm289_vm0, %v8034_v32 }
 0x130   : > { %6748 = vmatprep.mubr.msk.f32.mxu0 %vm289_vm0, %v8001_v60 }
 0x132   : > { %6954 = vmatmul.mubr.msk.f32.gmra.mrb[44].mxu1 %vm289_vm0, %v10067_v57 }
 0x133   : > { %6749 = vmatmul.mubr.msk.f32.gmra.mrb[46].mxu0 %vm289_vm0, %v8011_v6  ;;  %6956 = vmatprep.mubr.msk.f32.mxu1 %vm289_vm0, %v10071_v29 }
 0x134   : > { %6751 = vmatprep.mubr.msk.f32.mxu0 %vm289_vm0, %v10073_v11 }
 0x136   : > { %6957 = vmatmul.mubr.msk.f32.gmra.mrb[46].mxu1 %vm289_vm0, %v10075_v40 }
 0x137   : > { %6752 = vmatmul.mubr.msk.f32.gmra.mrb[48].mxu0 %vm289_vm0, %v10158_v28  ;;  %6959 = vmatprep.mubr.msk.f32.mxu1 %vm289_vm0, %v10079_v41 }
 0x138   : > { %6754 = vmatprep.mubr.msk.f32.mxu0 %vm289_vm0, %v10159_v25 }
 0x13a   : > { %6960 = vmatmul.mubr.msk.f32.gmra.mrb[48].mxu1 %vm289_vm0, %v10121_v47 }
 0x13b   : > { %6755 = vmatmul.mubr.msk.f32.gmra.mrb[50].mxu0 %vm289_vm0, %v10160_v51  ;;  %6962 = vmatprep.mubr.msk.f32.mxu1 %vm289_vm0, %v10123_v50 }
 0x13c   : > { %6757 = vmatprep.mubr.msk.f32.mxu0 %vm289_vm0, %v10161_v35 }
 0x13e   : > { %6963 = vmatmul.mubr.msk.f32.gmra.mrb[50].mxu1 %vm289_vm0, %v10091_v46 }
 0x13f   : > { %6758 = vmatmul.mubr.msk.f32.gmra.mrb[52].mxu0 %vm289_vm0, %v10162_v30  ;;  %6965 = vmatprep.mubr.msk.f32.mxu1 %vm289_vm0, %v10095_v24 }
 0x140   : > { %6760 = vmatprep.mubr.msk.f32.mxu0 %vm289_vm0, %v10163_v18  ;;  %v10167_v18 = vld [vmem:[#allocation28_spill] sm:$0xff] }
 0x142   : > { %6966 = vmatmul.mubr.msk.f32.gmra.mrb[52].mxu1 %vm289_vm0, %v10099_v27 }
 0x143   : > { %6761 = vmatmul.mubr.msk.f32.gmra.mrb[54].mxu0 %vm289_vm0, %v10164_v62  ;;  %6968 = vmatprep.mubr.msk.f32.mxu1 %vm289_vm0, %v10103_v3  ;;  %v10168_v62 = vld [vmem:[#allocation30_spill] sm:$0xff] }
 0x144   : > { %6763 = vmatprep.mubr.msk.f32.mxu0 %vm289_vm0, %v10165_v20  ;;  %v10169_v20 = vld [vmem:[#allocation32_spill] sm:$0xff] }
 0x146   : > { %6969 = vmatmul.mubr.msk.f32.gmra.mrb[54].mxu1 %vm289_vm0, %v8193_v37 }
 0x147   : > { %6764 = vmatmul.mubr.msk.f32.gmra.mrb[56].mxu0 %vm289_vm0, %v10166_v13  ;;  %6971 = vmatprep.mubr.msk.f32.mxu1 %vm289_vm0, %v8202_v52  ;;  %v10170_v13 = vld [vmem:[#allocation33_spill] sm:$0xff] }
 0x148   : > { %6766 = vmatprep.mubr.msk.f32.mxu0 %vm289_vm0, %v10167_v18  ;;  %v5695_v18 = vld [vmem:[%s9869_s1 + $0xf8] sm:$0xff] }
 0x14a   : > { %6972 = vmatmul.mubr.msk.f32.gmra.mrb[56].mxu1 %vm289_vm0, %v8219_v15 }
 0x14b   : > { %6767 = vmatmul.mubr.msk.f32.gmra.mrb[58].mxu0 %vm289_vm0, %v10168_v62  ;;  %6974 = vmatprep.mubr.msk.f32.mxu1 %vm289_vm0, %v8227_v9  ;;  %v5525_v62 = vld [vmem:[%s9869_s1 + $0xb0] sm:$0xff] }
 0x14c   : > { %6769 = vmatprep.mubr.msk.f32.mxu0 %vm289_vm0, %v10169_v20  ;;  %v5526_v20 = vld [vmem:[%s9869_s1 + $0xb8] sm:$0xff] }
 0x14e   : > { %6975 = vmatmul.mubr.msk.f32.gmra.mrb[58].mxu1 %vm289_vm0, %v10113_v4 }
 0x14f   : > { %6770 = vmatmul.mubr.msk.f32.gmra.mrb[60].mxu0 %vm289_vm0, %v10170_v13  ;;  %6977 = vmatprep.mubr.msk.f32.mxu1 %vm289_vm0, %v8245_v59  ;;  %v5694_v13 = vld [vmem:[%s9869_s1 + $0xf0] sm:$0xff] }
 0x150   : > { %6772 = vmatprep.mubr.msk.f32.mxu0 %vm289_vm0, %v8686_v10  ;;  %v9040_v10 = vpack.c.bf16 %v5526_v20, %v5525_v62  ;;  %v10177_v62 = vld [vmem:[#allocation44_spill] sm:$0xff]  ;;  %v10178_v20 = vld [vmem:[#allocation45_spill] sm:$0xff] }
 0x152   : > { %6978 = vmatmul.mubr.msk.f32.gmra.mrb[60].mxu1 %vm289_vm0, %v8264_v19 }
 0x153   : > { %6773 = vmatmul.mubr.msk.f32.gmra.mrb[62].mxu0 %vm289_vm0, %v8688_v63  ;;  %6980 = vmatprep.mubr.msk.f32.mxu1 %vm289_vm0, %v8715_v39 }
 0x154   : > { %6779 = vmatprep.mubr.msk.f32.mxu0 %vm289_vm0, %v7867_v48  ;;  %v9058_v48 = vpack.c.bf16 %v5695_v18, %v5694_v13  ;;  %v10176_v18 = vld [vmem:[#allocation43_spill] sm:$0xff]  ;;  %v10179_v13 = vld [vmem:[#allocation46_spill] sm:$0xff] }
 0x156   : > { %6981 = vmatmul.mubr.msk.f32.gmra.mrb[62].mxu1 %vm289_vm0, %v8730_v38 }
 0x157   : > { %6780 = vmatmul.mubr.msk.f32.vlgmr.msra.gmra.mrb[32].mxu0 %vm289_vm0, %v7882_v54  ;;  %6987 = vmatprep.mubr.msk.f32.mxu1 %vm289_vm0, %v10130_v2  ;;  %v10171_v54 = vld [vmem:[#allocation38_spill] sm:$0xff]  ;;  %v10172_v2 = vld [vmem:[#allocation39_spill] sm:$0xff] }
 0x158   : > { %6782 = vmatprep.mubr.msk.f32.mxu0 %vm289_vm0, %v7894_v58  ;;  %7182 = vmatpush3.bf16.msra.mxu0 %v8892_v49  ;;  %v10174_v49 = vld [vmem:[#allocation41_spill] sm:$0xff] }
 0x159   : > { %7184 = vmatprep.subr.bf16.mxu0 %v9040_v10 }
 0x15a   : > { %6988 = vmatmul.mubr.msk.f32.vlgmr.msra.gmra.mrb[32].mxu1 %vm289_vm0, %v10131_v34  ;;  %v10173_v34 = vld [vmem:[#allocation40_spill] sm:$0xff] }
 0x15b   : > { %7198 = vmatpush3.bf16.msra.mxu1 %v8910_v21  ;;  %6783 = vmatmul.mubr.msk.f32.gmra.mrb[34].mxu0 %vm289_vm0, %v7913_v1  ;;  %v10175_v21 = vld [vmem:[#allocation42_spill] sm:$0xff] }
 0x15c   : > { %6990 = vmatprep.mubr.msk.f32.mxu1 %vm289_vm0, %v10171_v54  ;;  %6785 = vmatprep.mubr.msk.f32.mxu0 %vm289_vm0, %v7922_v5  ;;  %v10198_v54 = vld [vmem:[#allocation35_spill] sm:$0xff] }
 0x15d   : > { %7200 = vmatprep.subr.bf16.mxu1 %v9058_v48 }
 0x15e   : > { %6991 = vmatmul.mubr.msk.f32.gmra.mrb[34].mxu1 %vm289_vm0, %v10172_v2 }
 0x15f   : > { %6786 = vmatmul.mubr.msk.f32.gmra.mrb[36].mxu0 %vm289_vm0, %v7941_v12  ;;  %6993 = vmatprep.mubr.msk.f32.mxu1 %vm289_vm0, %v10173_v34 }
 0x160   : > { %6788 = vmatprep.mubr.msk.f32.mxu0 %vm289_vm0, %v7951_v16 }
 0x162   : > { %6994 = vmatmul.mubr.msk.f32.gmra.mrb[36].mxu1 %vm289_vm0, %v10174_v49  ;;  %v10196_v49 = vld [vmem:[#allocation26_spill] sm:$0xff] }
 0x163   : > { %6789 = vmatmul.mubr.msk.f32.gmra.mrb[38].mxu0 %vm289_vm0, %v7969_v31  ;;  %6996 = vmatprep.mubr.msk.f32.mxu1 %vm289_vm0, %v10175_v21  ;;  %v223_v21 = vld [vmem:[%s7793_s8 + $0x1a0] sm:$0xff] }
 0x164   : > { %6791 = vmatprep.mubr.msk.f32.mxu0 %vm289_vm0, %v7978_v36  ;;  %v9181_v34 = vmax.f32 %v223_v21, 0.0 }
 0x166   : > { %6997 = vmatmul.mubr.msk.f32.gmra.mrb[38].mxu1 %vm289_vm0, %v10176_v18  ;;  %v10180_v18 = vld [vmem:[#allocation47_spill] sm:$0xff]  ;;  %v4754_v63 = vrot.slane %v9181_v34, 2 }
 0x167   : > { %6792 = vmatmul.mubr.msk.f32.gmra.mrb[40].mxu0 %vm289_vm0, %v7997_v55  ;;  %6999 = vmatprep.mubr.msk.f32.mxu1 %vm289_vm0, %v10177_v62  ;;  %v10181_v62 = vld [vmem:[#allocation48_spill] sm:$0xff] }
 0x168   : > { %6794 = vmatprep.mubr.msk.f32.mxu0 %vm289_vm0, %v8007_v0 }
 0x16a   : > { %7000 = vmatmul.mubr.msk.f32.gmra.mrb[40].mxu1 %vm289_vm0, %v10178_v20  ;;  %v10182_v20 = vld [vmem:[#allocation7_spill] sm:$0xff] }
 0x16b   : > { %6795 = vmatmul.mubr.msk.f32.gmra.mrb[42].mxu0 %vm289_vm0, %v8025_v17  ;;  %7002 = vmatprep.mubr.msk.f32.mxu1 %vm289_vm0, %v10179_v13  ;;  %v10183_v13 = vld [vmem:[#allocation3_spill] sm:$0xff] }
 0x16c   : > { %6797 = vmatprep.mubr.msk.f32.mxu0 %vm289_vm0, %v8034_v32 }
 0x16e   : > { %7003 = vmatmul.mubr.msk.f32.gmra.mrb[42].mxu1 %vm289_vm0, %v10180_v18  ;;  %v10184_v18 = vld [vmem:[#allocation9_spill] sm:$0xff] }
 0x16f   : > { %6798 = vmatmul.mubr.msk.f32.gmra.mrb[44].mxu0 %vm289_vm0, %v10067_v57  ;;  %7005 = vmatprep.mubr.msk.f32.mxu1 %vm289_vm0, %v10181_v62  ;;  %v10185_v62 = vld [vmem:[#allocation4_spill] sm:$0xff] }
 0x170   : > { %6800 = vmatprep.mubr.msk.f32.mxu0 %vm289_vm0, %v10071_v29 }
 0x172   : > { %7006 = vmatmul.mubr.msk.f32.gmra.mrb[44].mxu1 %vm289_vm0, %v10182_v20  ;;  %v10186_v20 = vld [vmem:[#allocation12_spill] sm:$0xff] }
 0x173   : > { %6801 = vmatmul.mubr.msk.f32.gmra.mrb[46].mxu0 %vm289_vm0, %v10075_v40  ;;  %7008 = vmatprep.mubr.msk.f32.mxu1 %vm289_vm0, %v10183_v13  ;;  %v10187_v13 = vld [vmem:[#allocation6_spill] sm:$0xff] }
 0x174   : > { %6803 = vmatprep.mubr.msk.f32.mxu0 %vm289_vm0, %v10079_v41 }
 0x176   : > { %7009 = vmatmul.mubr.msk.f32.gmra.mrb[46].mxu1 %vm289_vm0, %v10184_v18  ;;  %v10188_v18 = vld [vmem:[#allocation13_spill] sm:$0xff] }
 0x177   : > { %6804 = vmatmul.mubr.msk.f32.gmra.mrb[48].mxu0 %vm289_vm0, %v10121_v47  ;;  %7011 = vmatprep.mubr.msk.f32.mxu1 %vm289_vm0, %v10185_v62  ;;  %v10189_v62 = vld [vmem:[#allocation11_spill] sm:$0xff] }
 0x178   : > { %6806 = vmatprep.mubr.msk.f32.mxu0 %vm289_vm0, %v10123_v50 }
 0x17a   : > { %7012 = vmatmul.mubr.msk.f32.gmra.mrb[48].mxu1 %vm289_vm0, %v10186_v20  ;;  %v10190_v20 = vld [vmem:[#allocation22_spill] sm:$0xff] }
 0x17b   : > { %6807 = vmatmul.mubr.msk.f32.gmra.mrb[50].mxu0 %vm289_vm0, %v10091_v46  ;;  %7014 = vmatprep.mubr.msk.f32.mxu1 %vm289_vm0, %v10187_v13  ;;  %v10191_v13 = vld [vmem:[#allocation16_spill] sm:$0xff] }
 0x17c   : > { %6809 = vmatprep.mubr.msk.f32.mxu0 %vm289_vm0, %v10095_v24 }
 0x17e   : > { %7015 = vmatmul.mubr.msk.f32.gmra.mrb[50].mxu1 %vm289_vm0, %v10188_v18  ;;  %v10192_v18 = vld [vmem:[#allocation23_spill] sm:$0xff] }
 0x17f   : > { %6810 = vmatmul.mubr.msk.f32.gmra.mrb[52].mxu0 %vm289_vm0, %v10099_v27  ;;  %7017 = vmatprep.mubr.msk.f32.mxu1 %vm289_vm0, %v10189_v62  ;;  %v10193_v62 = vld [vmem:[#allocation27_spill] sm:$0xff] }
 0x180   : > { %6812 = vmatprep.mubr.msk.f32.mxu0 %vm289_vm0, %v10103_v3 }
 0x182   : > { %7018 = vmatmul.mubr.msk.f32.gmra.mrb[52].mxu1 %vm289_vm0, %v10190_v20  ;;  %v10194_v20 = vld [vmem:[#allocation21_spill] sm:$0xff] }
 0x183   : > { %6813 = vmatmul.mubr.msk.f32.gmra.mrb[54].mxu0 %vm289_vm0, %v8193_v37  ;;  %7020 = vmatprep.mubr.msk.f32.mxu1 %vm289_vm0, %v10191_v13  ;;  %v10195_v13 = vld [vmem:[#allocation29_spill] sm:$0xff] }
 0x184   : > { %6815 = vmatprep.mubr.msk.f32.mxu0 %vm289_vm0, %v8202_v52 }
 0x186   : > { %7021 = vmatmul.mubr.msk.f32.gmra.mrb[54].mxu1 %vm289_vm0, %v10192_v18  ;;  %v222_v18 = vld [vmem:[%s7793_s8 + $0x198] sm:$0xff] }
 0x187   : > { %6816 = vmatmul.mubr.msk.f32.gmra.mrb[56].mxu0 %vm289_vm0, %v8219_v15  ;;  %7023 = vmatprep.mubr.msk.f32.mxu1 %vm289_vm0, %v10193_v62  ;;  %v9171_v62 = vld [vmem:[%s7793_s8 + $0x1a8] sm:$0x3]  ;;  %s5762_s8 = sshll.u32 %s10237_s13, 10 }
 0x188   : > { %6818 = vmatprep.mubr.msk.f32.mxu0 %vm289_vm0, %v8227_v9  ;;  %v278_v2 = vmax.f32 %v9171_v62, 0.0  ;;  %s9253_s11 = scalar_lea.vmem %s9871_s3, %s5762_s8 }
 0x18a   : > { %7024 = vmatmul.mubr.msk.f32.gmra.mrb[56].mxu1 %vm289_vm0, %v10194_v20  ;;  %v10197_v20 = vld [vmem:[#allocation31_spill] sm:$0xff] }
 0x18b   : > { %6819 = vmatmul.mubr.msk.f32.gmra.mrb[58].mxu0 %vm289_vm0, %v10113_v4  ;;  %7026 = vmatprep.mubr.msk.f32.mxu1 %vm289_vm0, %v10195_v13  ;;  %v9179_v13 = vmax.f32 %v222_v18, 0.0  ;;  %v4756_v18 = vrot.slane %v278_v2, 2 }
 0x18c   : > { %6821 = vmatprep.mubr.msk.f32.mxu0 %vm289_vm0, %v8245_v59 }
 0x18e   : > { %7027 = vmatmul.mubr.msk.f32.gmra.mrb[58].mxu1 %vm289_vm0, %v10196_v49  ;;  %v4753_v49 = vrot.slane %v9179_v13, 2 }
 0x18f   : > { %6822 = vmatmul.mubr.msk.f32.gmra.mrb[60].mxu0 %vm289_vm0, %v8264_v19  ;;  %7029 = vmatprep.mubr.msk.f32.mxu1 %vm289_vm0, %v10197_v20 }
 0x190   : > { %6824 = vmatprep.mubr.msk.f32.mxu0 %vm289_vm0, %v8715_v39  ;;  %v9197_v21 = vsel %vm1901_vm2, %v4753_v49, %v4754_v63 }
 0x192   : > { %7030 = vmatmul.mubr.msk.f32.gmra.mrb[60].mxu1 %vm289_vm0, %v10198_v54  ;;  %v9200_v54 = vsel %vm1901_vm2, %v4754_v63, %v4756_v18 }
 0x193   : > { %6825 = vmatmul.mubr.msk.f32.gmra.mrb[62].mxu0 %vm289_vm0, %v8730_v38  ;;  %7032 = vmatprep.mubr.msk.f32.mxu1 %vm289_vm0, %v8873_v26 }
 0x194   : > { %6831 = vmatprep.mubr.msk.f32.mxu0 %vm289_vm0, %v7832_v33  ;;  %v9246_v33 = vld [vmem:[%s9870_s2] ss:$0 sm:$0xff] }
 0x196   : > { %7033 = vmatmul.mubr.msk.f32.gmra.mrb[62].mxu1 %vm289_vm0, %v8888_v22 }
 0x197   : > { %6832 = vmatmul.mubr.msk.f32.vlgmr.msra.gmra.mrb[32].mxu0 %vm289_vm0, %v7852_v42  ;;  %7039 = vmatprep.mubr.msk.f32.mxu1 %vm289_vm0, %v7894_v58 }
 0x198   : > { %6834 = vmatprep.mubr.msk.f32.mxu0 %vm289_vm0, %v7855_v44  ;;  %7186 = vmatpush3.bf16.msra.mxu0 %v9040_v10 }
 0x19a   : > { %7040 = vmatmul.mubr.msk.f32.vlgmr.msra.gmra.mrb[32].mxu1 %vm289_vm0, %v7913_v1 }
 0x19b   : > { %7202 = vmatpush3.bf16.msra.mxu1 %v9058_v48  ;;  %6835 = vmatmul.mubr.msk.f32.gmra.mrb[34].mxu0 %vm289_vm0, %v7877_v53 }
 0x19c   : > { %7042 = vmatprep.mubr.msk.f32.mxu1 %vm289_vm0, %v7922_v5  ;;  %6837 = vmatprep.mubr.msk.f32.mxu0 %vm289_vm0, %v7886_v56 }
 0x19e   : > { %7043 = vmatmul.mubr.msk.f32.gmra.mrb[34].mxu1 %vm289_vm0, %v7941_v12 }
 0x19f   : > { %6838 = vmatmul.mubr.msk.f32.gmra.mrb[36].mxu0 %vm289_vm0, %v7898_v61  ;;  %7045 = vmatprep.mubr.msk.f32.mxu1 %vm289_vm0, %v7951_v16 }
 0x1a0   : > { %6840 = vmatprep.mubr.msk.f32.mxu0 %vm289_vm0, %v7925_v7 }
 0x1a2   : > { %7046 = vmatmul.mubr.msk.f32.gmra.mrb[36].mxu1 %vm289_vm0, %v7969_v31 }
 0x1a3   : > { %6841 = vmatmul.mubr.msk.f32.gmra.mrb[38].mxu0 %vm289_vm0, %v7927_v8  ;;  %7048 = vmatprep.mubr.msk.f32.mxu1 %vm289_vm0, %v7978_v36 }
 0x1a4   : > { %6843 = vmatprep.mubr.msk.f32.mxu0 %vm289_vm0, %v7945_v14 }
 0x1a6   : > { %7049 = vmatmul.mubr.msk.f32.gmra.mrb[38].mxu1 %vm289_vm0, %v7997_v55 }
 0x1a7   : > { %6844 = vmatmul.mubr.msk.f32.gmra.mrb[40].mxu0 %vm289_vm0, %v7955_v23  ;;  %7051 = vmatprep.mubr.msk.f32.mxu1 %vm289_vm0, %v8007_v0 }
 0x1a8   : > { %6846 = vmatprep.mubr.msk.f32.mxu0 %vm289_vm0, %v7981_v43 }
 0x1aa   : > { %v6469_v42 = vpop.f32.mrb[0].mxu0  ;;  %7052 = vmatmul.mubr.msk.f32.gmra.mrb[40].mxu1 %vm289_vm0, %v8025_v17 }
 0x1ab   : > { %v7203_v44 = vadd.f32 %v6469_v42, %v9246_v33  ;;  %v1409_v53 = vpop.f32.mrb[1].mxu0  ;;  %6847 = vmatmul.mubr.msk.f32.gmra.mrb[42].mxu0 %vm289_vm0, %v7983_v45  ;;  %7054 = vmatprep.mubr.msk.f32.mxu1 %vm289_vm0, %v8034_v32 }
 0x1ac   : > { %v7204_v56 = vadd.f32 %v9246_v33, %v1409_v53  ;;  %6849 = vmatprep.mubr.msk.f32.mxu0 %vm289_vm0, %v8001_v60 }
 0x1ad   : > { %1602 = vst.msk [vmem:[%s9253_s11 + $0x8] sm:$0xff] %vm1600_vm3, %v7203_v44  ;;  %v6677_v61 = vpop.f32.mrb[0].mxu1 }
 0x1ae   : > { %1601 = vst.msk [vmem:[%s9253_s11] sm:$0xff] %vm1600_vm3, %v7204_v56  ;;  %v7235_v7 = vadd.f32 %v6677_v61, %v9246_v33  ;;  %v6472_v8 = vpop.f32.mrb[2].mxu0  ;;  %v2644_v14 = vpop.f32.mrb[1].mxu1  ;;  %7055 = vmatmul.mubr.msk.f32.gmra.mrb[42].mxu1 %vm289_vm0, %v10067_v57 }
 0x1af   : > { %v7205_v23 = vadd.f32 %v6472_v8, %v9246_v33  ;;  %v7236_v43 = vadd.f32 %v9246_v33, %v2644_v14  ;;  %v1419_v45 = vpop.f32.mrb[3].mxu0  ;;  %6850 = vmatmul.mubr.msk.f32.gmra.mrb[44].mxu0 %vm289_vm0, %v8011_v6  ;;  %7057 = vmatprep.mubr.msk.f32.mxu1 %vm289_vm0, %v10071_v29 }
 0x1b0   : > { %5391 = vst.msk [vmem:[%s9253_s11 + $0x108] sm:$0xff] %vm1600_vm3, %v7235_v7  ;;  %v7206_v60 = vadd.f32 %v9246_v33, %v1419_v45  ;;  %6852 = vmatprep.mubr.msk.f32.mxu0 %vm289_vm0, %v10073_v11 }
 0x1b1   : > { %1604 = vst.msk [vmem:[%s9253_s11 + $0x18] sm:$0xff] %vm1600_vm3, %v7205_v23  ;;  %5390 = vst.msk [vmem:[%s9253_s11 + $0x100] sm:$0xff] %vm1600_vm3, %v7236_v43  ;;  %v6680_v10 = vpop.f32.mrb[2].mxu1 }
 0x1b2   : > { %1603 = vst.msk [vmem:[%s9253_s11 + $0x10] sm:$0xff] %vm1600_vm3, %v7206_v60  ;;  %v7237_v6 = vadd.f32 %v6680_v10, %v9246_v33  ;;  %v6475_v63 = vpop.f32.mrb[4].mxu0  ;;  %v2654_v48 = vpop.f32.mrb[3].mxu1  ;;  %7058 = vmatmul.mubr.msk.f32.gmra.mrb[44].mxu1 %vm289_vm0, %v10075_v40 }
 0x1b3   : > { %v7207_v49 = vadd.f32 %v6475_v63, %v9246_v33  ;;  %v7238_v11 = vadd.f32 %v9246_v33, %v2654_v48  ;;  %v1429_v18 = vpop.f32.mrb[5].mxu0  ;;  %6853 = vmatmul.mubr.msk.f32.gmra.mrb[46].mxu0 %vm289_vm0, %v10158_v28  ;;  %7060 = vmatprep.mubr.msk.f32.mxu1 %vm289_vm0, %v10079_v41 }
 0x1b4   : > { %5393 = vst.msk [vmem:[%s9253_s11 + $0x118] sm:$0xff] %vm1600_vm3, %v7237_v6  ;;  %v7208_v42 = vadd.f32 %v9246_v33, %v1429_v18  ;;  %6855 = vmatprep.mubr.msk.f32.mxu0 %vm289_vm0, %v10159_v25  ;;  %v10199_v6 = vld [vmem:[#allocation18_spill] sm:$0xff] }
 0x1b5   : > { %1606 = vst.msk [vmem:[%s9253_s11 + $0x28] sm:$0xff] %vm1600_vm3, %v7207_v49  ;;  %5392 = vst.msk [vmem:[%s9253_s11 + $0x110] sm:$0xff] %vm1600_vm3, %v7238_v11  ;;  %v6683_v44 = vpop.f32.mrb[4].mxu1 }
 0x1b6   : > { %1605 = vst.msk [vmem:[%s9253_s11 + $0x20] sm:$0xff] %vm1600_vm3, %v7208_v42  ;;  %v7239_v28 = vadd.f32 %v6683_v44, %v9246_v33  ;;  %v6478_v53 = vpop.f32.mrb[6].mxu0  ;;  %v2664_v56 = vpop.f32.mrb[5].mxu1  ;;  %7061 = vmatmul.mubr.msk.f32.gmra.mrb[46].mxu1 %vm289_vm0, %v10121_v47  ;;  %v10200_v44 = vld [vmem:[#allocation20_spill] sm:$0xff] }
 0x1b7   : > { %v7209_v61 = vadd.f32 %v6478_v53, %v9246_v33  ;;  %v7240_v25 = vadd.f32 %v9246_v33, %v2664_v56  ;;  %v1439_v7 = vpop.f32.mrb[7].mxu0  ;;  %6856 = vmatmul.mubr.msk.f32.gmra.mrb[48].mxu0 %vm289_vm0, %v10160_v51  ;;  %7063 = vmatprep.mubr.msk.f32.mxu1 %vm289_vm0, %v10123_v50  ;;  %v10201_v53 = vld [vmem:[#allocation24_spill] sm:$0xff] }
 0x1b8   : > { %5395 = vst.msk [vmem:[%s9253_s11 + $0x128] sm:$0xff] %vm1600_vm3, %v7239_v28  ;;  %v7210_v8 = vadd.f32 %v9246_v33, %v1439_v7  ;;  %6858 = vmatprep.mubr.msk.f32.mxu0 %vm289_vm0, %v10161_v35 }
 0x1b9   : > { %1608 = vst.msk [vmem:[%s9253_s11 + $0x38] sm:$0xff] %vm1600_vm3, %v7209_v61  ;;  %5394 = vst.msk [vmem:[%s9253_s11 + $0x120] sm:$0xff] %vm1600_vm3, %v7240_v25  ;;  %v6686_v14 = vpop.f32.mrb[6].mxu1 }
 0x1ba   : > { %1607 = vst.msk [vmem:[%s9253_s11 + $0x30] sm:$0xff] %vm1600_vm3, %v7210_v8  ;;  %v7241_v51 = vadd.f32 %v6686_v14, %v9246_v33  ;;  %v6481_v23 = vpop.f32.mrb[8].mxu0  ;;  %v2674_v43 = vpop.f32.mrb[7].mxu1  ;;  %7064 = vmatmul.mubr.msk.f32.gmra.mrb[48].mxu1 %vm289_vm0, %v10091_v46 }
 0x1bb   : > { %v7211_v45 = vadd.f32 %v6481_v23, %v9246_v33  ;;  %v7242_v35 = vadd.f32 %v9246_v33, %v2674_v43  ;;  %v1449_v60 = vpop.f32.mrb[9].mxu0  ;;  %6859 = vmatmul.mubr.msk.f32.gmra.mrb[50].mxu0 %vm289_vm0, %v10162_v30  ;;  %7066 = vmatprep.mubr.msk.f32.mxu1 %vm289_vm0, %v10095_v24  ;;  %v10202_v23 = vld [vmem:[#allocation25_spill] sm:$0xff] }
 0x1bc   : > { %5397 = vst.msk [vmem:[%s9253_s11 + $0x138] sm:$0xff] %vm1600_vm3, %v7241_v51  ;;  %v7212_v10 = vadd.f32 %v9246_v33, %v1449_v60  ;;  %6861 = vmatprep.mubr.msk.f32.mxu0 %vm289_vm0, %v10199_v6 }
 0x1bd   : > { %1610 = vst.msk [vmem:[%s9253_s11 + $0x48] sm:$0xff] %vm1600_vm3, %v7211_v45  ;;  %5396 = vst.msk [vmem:[%s9253_s11 + $0x130] sm:$0xff] %vm1600_vm3, %v7242_v35  ;;  %v6689_v63 = vpop.f32.mrb[8].mxu1  ;;  %v10203_v45 = vld [vmem:[#allocation28_spill] sm:$0xff] }
 0x1be   : > { %1609 = vst.msk [vmem:[%s9253_s11 + $0x40] sm:$0xff] %vm1600_vm3, %v7212_v10  ;;  %v7243_v30 = vadd.f32 %v6689_v63, %v9246_v33  ;;  %v6484_v48 = vpop.f32.mrb[10].mxu0  ;;  %v2684_v49 = vpop.f32.mrb[9].mxu1  ;;  %7067 = vmatmul.mubr.msk.f32.gmra.mrb[50].mxu1 %vm289_vm0, %v10099_v27 }
 0x1bf   : > { %v7213_v11 = vadd.f32 %v6484_v48, %v9246_v33  ;;  %v7244_v18 = vadd.f32 %v9246_v33, %v2684_v49  ;;  %v1459_v42 = vpop.f32.mrb[11].mxu0  ;;  %6862 = vmatmul.mubr.msk.f32.gmra.mrb[52].mxu0 %vm289_vm0, %v10200_v44  ;;  %7069 = vmatprep.mubr.msk.f32.mxu1 %vm289_vm0, %v10103_v3  ;;  %v10204_v49 = vld [vmem:[#allocation30_spill] sm:$0xff] }
 0x1c0   : > { %5399 = vst.msk [vmem:[%s9253_s11 + $0x148] sm:$0xff] %vm1600_vm3, %v7243_v30  ;;  %v7214_v28 = vadd.f32 %v9246_v33, %v1459_v42  ;;  %6864 = vmatprep.mubr.msk.f32.mxu0 %vm289_vm0, %v10201_v53 }
 0x1c1   : > { %1612 = vst.msk [vmem:[%s9253_s11 + $0x58] sm:$0xff] %vm1600_vm3, %v7213_v11  ;;  %5398 = vst.msk [vmem:[%s9253_s11 + $0x140] sm:$0xff] %vm1600_vm3, %v7244_v18  ;;  %v6692_v56 = vpop.f32.mrb[10].mxu1  ;;  %v10205_v18 = vld [vmem:[#allocation32_spill] sm:$0xff] }
 0x1c2   : > { %1611 = vst.msk [vmem:[%s9253_s11 + $0x50] sm:$0xff] %vm1600_vm3, %v7214_v28  ;;  %v7245_v61 = vadd.f32 %v6692_v56, %v9246_v33  ;;  %v6487_v25 = vpop.f32.mrb[12].mxu0  ;;  %v2694_v7 = vpop.f32.mrb[11].mxu1  ;;  %7070 = vmatmul.mubr.msk.f32.gmra.mrb[52].mxu1 %vm289_vm0, %v8193_v37 }
 0x1c3   : > { %v7215_v8 = vadd.f32 %v6487_v25, %v9246_v33  ;;  %v7246_v14 = vadd.f32 %v9246_v33, %v2694_v7  ;;  %v1469_v51 = vpop.f32.mrb[13].mxu0  ;;  %6865 = vmatmul.mubr.msk.f32.gmra.mrb[54].mxu0 %vm289_vm0, %v10202_v23  ;;  %7072 = vmatprep.mubr.msk.f32.mxu1 %vm289_vm0, %v8202_v52  ;;  %v10206_v7 = vld [vmem:[#allocation33_spill] sm:$0xff]  ;;  %v3664_v23 = vrot.slane %v9181_v34, 1 }
 0x1c4   : > { %5401 = vst.msk [vmem:[%s9253_s11 + $0x158] sm:$0xff] %vm1600_vm3, %v7245_v61  ;;  %v7216_v43 = vadd.f32 %v9246_v33, %v1469_v51  ;;  %6867 = vmatprep.mubr.msk.f32.mxu0 %vm289_vm0, %v10203_v45  ;;  %v3663_v51 = vrot.slane %v9179_v13, 1 }
 0x1c5   : > { %1614 = vst.msk [vmem:[%s9253_s11 + $0x68] sm:$0xff] %vm1600_vm3, %v7215_v8  ;;  %5400 = vst.msk [vmem:[%s9253_s11 + $0x150] sm:$0xff] %vm1600_vm3, %v7246_v14  ;;  %v6695_v35 = vpop.f32.mrb[12].mxu1  ;;  %v10207_v14 = vld [vmem:[#allocation34_spill] sm:$0xff] }
 0x1c6   : > { %1613 = vst.msk [vmem:[%s9253_s11 + $0x60] sm:$0xff] %vm1600_vm3, %v7216_v43  ;;  %v7247_v60 = vadd.f32 %v6695_v35, %v9246_v33  ;;  %v6490_v10 = vpop.f32.mrb[14].mxu0  ;;  %v2704_v6 = vpop.f32.mrb[13].mxu1  ;;  %7073 = vmatmul.mubr.msk.f32.gmra.mrb[54].mxu1 %vm289_vm0, %v8219_v15 }
 0x1c7   : > { %v7217_v63 = vadd.f32 %v6490_v10, %v9246_v33  ;;  %v7248_v30 = vadd.f32 %v9246_v33, %v2704_v6  ;;  %v1479_v48 = vpop.f32.mrb[15].mxu0  ;;  %6868 = vmatmul.mubr.msk.f32.gmra.mrb[56].mxu0 %vm289_vm0, %v10204_v49  ;;  %7075 = vmatprep.mubr.msk.f32.mxu1 %vm289_vm0, %v8227_v9 }
 0x1c8   : > { %5403 = vst.msk [vmem:[%s9253_s11 + $0x168] sm:$0xff] %vm1600_vm3, %v7247_v60  ;;  %v7218_v11 = vadd.f32 %v9246_v33, %v1479_v48  ;;  %6870 = vmatprep.mubr.msk.f32.mxu0 %vm289_vm0, %v10205_v18  ;;  %v3666_v48 = vrot.slane %v278_v2, 1 }
 0x1c9   : > { %1616 = vst.msk [vmem:[%s9253_s11 + $0x78] sm:$0xff] %vm1600_vm3, %v7217_v63  ;;  %5402 = vst.msk [vmem:[%s9253_s11 + $0x160] sm:$0xff] %vm1600_vm3, %v7248_v30  ;;  %v6698_v42 = vpop.f32.mrb[14].mxu1  ;;  %v10208_v30 = vld [vmem:[#allocation2_spill] sm:$0xff] }
 0x1ca   : > { %1615 = vst.msk [vmem:[%s9253_s11 + $0x70] sm:$0xff] %vm1600_vm3, %v7218_v11  ;;  %v7249_v44 = vadd.f32 %v6698_v42, %v9246_v33  ;;  %v6493_v28 = vpop.f32.mrb[16].mxu0  ;;  %v2714_v53 = vpop.f32.mrb[15].mxu1  ;;  %7076 = vmatmul.mubr.msk.f32.gmra.mrb[56].mxu1 %vm289_vm0, %v10113_v4  ;;  %v9448_v11 = vsel %vm659_vm1, %v3663_v51, %v3664_v23  ;;  %v10209_v51 = vld [vmem:[#allocation38_spill] sm:$0xff] }
 0x1cb   : > { %v7219_v56 = vadd.f32 %v6493_v28, %v9246_v33  ;;  %v7250_v61 = vadd.f32 %v9246_v33, %v2714_v53  ;;  %v1489_v25 = vpop.f32.mrb[17].mxu0  ;;  %6871 = vmatmul.mubr.msk.f32.gmra.mrb[58].mxu0 %vm289_vm0, %v10206_v7  ;;  %7078 = vmatprep.mubr.msk.f32.mxu1 %vm289_vm0, %v8245_v59  ;;  %v9466_v53 = vsel %vm659_vm1, %v3664_v23, %v3666_v48 }
 0x1cc   : > { %5405 = vst.msk [vmem:[%s9253_s11 + $0x178] sm:$0xff] %vm1600_vm3, %v7249_v44  ;;  %v7220_v8 = vadd.f32 %v9246_v33, %v1489_v25  ;;  %6873 = vmatprep.mubr.msk.f32.mxu0 %vm289_vm0, %v10207_v14 }
 0x1cd   : > { %1618 = vst.msk [vmem:[%s9253_s11 + $0x88] sm:$0xff] %vm1600_vm3, %v7219_v56  ;;  %5404 = vst.msk [vmem:[%s9253_s11 + $0x170] sm:$0xff] %vm1600_vm3, %v7250_v61  ;;  %v6701_v43 = vpop.f32.mrb[16].mxu1 }
 0x1ce   : > { %1617 = vst.msk [vmem:[%s9253_s11 + $0x80] sm:$0xff] %vm1600_vm3, %v7220_v8  ;;  %v7251_v45 = vadd.f32 %v6701_v43, %v9246_v33  ;;  %v6496_v35 = vpop.f32.mrb[18].mxu0  ;;  %v2724_v60 = vpop.f32.mrb[17].mxu1  ;;  %7079 = vmatmul.mubr.msk.f32.gmra.mrb[58].mxu1 %vm289_vm0, %v8264_v19 }
 0x1cf   : > { %v7221_v10 = vadd.f32 %v6496_v35, %v9246_v33  ;;  %v7252_v6 = vadd.f32 %v9246_v33, %v2724_v60  ;;  %v1499_v63 = vpop.f32.mrb[19].mxu0  ;;  %6874 = vmatmul.mubr.msk.f32.gmra.mrb[60].mxu0 %vm289_vm0, %v10208_v30  ;;  %7081 = vmatprep.mubr.msk.f32.mxu1 %vm289_vm0, %v8715_v39  ;;  %v10210_v60 = vld [vmem:[#allocation39_spill] sm:$0xff] }
 0x1d0   : > { %5407 = vst.msk [vmem:[%s9253_s11 + $0x188] sm:$0xff] %vm1600_vm3, %v7251_v45  ;;  %v7222_v49 = vadd.f32 %v9246_v33, %v1499_v63  ;;  %6876 = vmatprep.mubr.msk.f32.mxu0 %vm289_vm0, %v9179_v13  ;;  %v10211_v63 = vld [vmem:[#allocation40_spill] sm:$0xff] }
 0x1d1   : > { %1620 = vst.msk [vmem:[%s9253_s11 + $0x98] sm:$0xff] %vm1600_vm3, %v7221_v10  ;;  %5406 = vst.msk [vmem:[%s9253_s11 + $0x180] sm:$0xff] %vm1600_vm3, %v7252_v6  ;;  %v6704_v18 = vpop.f32.mrb[18].mxu1 }
 0x1d2   : > { %1619 = vst.msk [vmem:[%s9253_s11 + $0x90] sm:$0xff] %vm1600_vm3, %v7222_v49  ;;  %v7253_v2 = vadd.f32 %v6704_v18, %v9246_v33  ;;  %v6499_v62 = vpop.f32.mrb[20].mxu0  ;;  %v2734_v42 = vpop.f32.mrb[19].mxu1  ;;  %7082 = vmatmul.mubr.msk.f32.gmra.mrb[60].mxu1 %vm289_vm0, %v8730_v38 }
 0x1d3   : > { %v7223_v13 = vadd.f32 %v6499_v62, %v9246_v33  ;;  %v7254_v44 = vadd.f32 %v9246_v33, %v2734_v42  ;;  %v1509_v28 = vpop.f32.mrb[21].mxu0  ;;  %6877 = vmatmul.mubr.msk.f32.gmra.mrb[62].mxu0 %vm289_vm0, %v9181_v34  ;;  %7084 = vmatprep.mubr.msk.f32.mxu1 %vm289_vm0, %v9448_v11 }
 0x1d4   : > { %5409 = vst.msk [vmem:[%s9253_s11 + $0x198] sm:$0xff] %vm1600_vm3, %v7253_v2  ;;  %v7224_v56 = vadd.f32 %v9246_v33, %v1509_v28  ;;  %6883 = vmatprep.mubr.msk.f32.mxu0 %vm289_vm0, %v7894_v58  ;;  %v10212_v2 = vld [vmem:[#allocation41_spill] sm:$0xff] }
 0x1d5   : > { %1622 = vst.msk [vmem:[%s9253_s11 + $0xa8] sm:$0xff] %vm1600_vm3, %v7223_v13  ;;  %5408 = vst.msk [vmem:[%s9253_s11 + $0x190] sm:$0xff] %vm1600_vm3, %v7254_v44  ;;  %v6707_v34 = vpop.f32.mrb[20].mxu1  ;;  %v10213_v13 = vld [vmem:[#allocation42_spill] sm:$0xff] }
 0x1d6   : > { %1621 = vst.msk [vmem:[%s9253_s11 + $0xa0] sm:$0xff] %vm1600_vm3, %v7224_v56  ;;  %v7255_v61 = vadd.f32 %v6707_v34, %v9246_v33  ;;  %v6502_v25 = vpop.f32.mrb[22].mxu0  ;;  %v2744_v7 = vpop.f32.mrb[21].mxu1  ;;  %7085 = vmatmul.mubr.msk.f32.gmra.mrb[62].mxu1 %vm289_vm0, %v9466_v53 }
 0x1d7   : > { %v7225_v8 = vadd.f32 %v6502_v25, %v9246_v33  ;;  %v7256_v58 = vadd.f32 %v9246_v33, %v2744_v7  ;;  %v1519_v14 = vpop.f32.mrb[23].mxu0  ;;  %6884 = vmatmul.mubr.msk.f32.vlgmr.msra.gmra.mrb[32].mxu0 %vm289_vm0, %v7913_v1  ;;  %7091 = vmatprep.mubr.msk.f32.mxu1 %vm289_vm0, %v10209_v51 }
 0x1d8   : > { %5411 = vst.msk [vmem:[%s9253_s11 + $0x1a8] sm:$0xff] %vm1600_vm3, %v7255_v61  ;;  %v7226_v23 = vadd.f32 %v9246_v33, %v1519_v14  ;;  %6886 = vmatprep.mubr.msk.f32.mxu0 %vm289_vm0, %v7922_v5  ;;  %v10214_v61 = vld [vmem:[#allocation43_spill] sm:$0xff] }
 0x1d9   : > { %1624 = vst.msk [vmem:[%s9253_s11 + $0xb8] sm:$0xff] %vm1600_vm3, %v7225_v8  ;;  %5410 = vst.msk [vmem:[%s9253_s11 + $0x1a0] sm:$0xff] %vm1600_vm3, %v7256_v58  ;;  %v6710_v43 = vpop.f32.mrb[22].mxu1  ;;  %v10215_v8 = vld [vmem:[#allocation44_spill] sm:$0xff] }
 0x1da   : > { %1623 = vst.msk [vmem:[%s9253_s11 + $0xb0] sm:$0xff] %vm1600_vm3, %v7226_v23  ;;  %v7257_v1 = vadd.f32 %v6710_v43, %v9246_v33  ;;  %v6505_v45 = vpop.f32.mrb[24].mxu0  ;;  %v2754_v35 = vpop.f32.mrb[23].mxu1  ;;  %7092 = vmatmul.mubr.msk.f32.vlgmr.msra.gmra.mrb[32].mxu1 %vm289_vm0, %v10210_v60  ;;  %v10216_v43 = vld [vmem:[#allocation45_spill] sm:$0xff] }
 0x1db   : > { %v7227_v10 = vadd.f32 %v6505_v45, %v9246_v33  ;;  %v7258_v5 = vadd.f32 %v9246_v33, %v2754_v35  ;;  %v1529_v6 = vpop.f32.mrb[25].mxu0  ;;  %6887 = vmatmul.mubr.msk.f32.gmra.mrb[34].mxu0 %vm289_vm0, %v7941_v12  ;;  %7094 = vmatprep.mubr.msk.f32.mxu1 %vm289_vm0, %v10211_v63  ;;  %v10217_v35 = vld [vmem:[#allocation46_spill] sm:$0xff] }
 0x1dc   : > { %5413 = vst.msk [vmem:[%s9253_s11 + $0x1b8] sm:$0xff] %vm1600_vm3, %v7257_v1  ;;  %v7228_v30 = vadd.f32 %v9246_v33, %v1529_v6  ;;  %6889 = vmatprep.mubr.msk.f32.mxu0 %vm289_vm0, %v7951_v16  ;;  %v10218_v6 = vld [vmem:[#allocation47_spill] sm:$0xff] }
 0x1dd   : > { %1626 = vst.msk [vmem:[%s9253_s11 + $0xc8] sm:$0xff] %vm1600_vm3, %v7227_v10  ;;  %5412 = vst.msk [vmem:[%s9253_s11 + $0x1b0] sm:$0xff] %vm1600_vm3, %v7258_v5  ;;  %v6713_v48 = vpop.f32.mrb[24].mxu1 }
 0x1de   : > { %1625 = vst.msk [vmem:[%s9253_s11 + $0xc0] sm:$0xff] %vm1600_vm3, %v7228_v30  ;;  %v7259_v12 = vadd.f32 %v6713_v48, %v9246_v33  ;;  %v6508_v49 = vpop.f32.mrb[26].mxu0  ;;  %v2764_v18 = vpop.f32.mrb[25].mxu1  ;;  %7095 = vmatmul.mubr.msk.f32.gmra.mrb[34].mxu1 %vm289_vm0, %v10212_v2  ;;  %v10219_v30 = vld [vmem:[#allocation48_spill] sm:$0xff]  ;;  %v10221_v48 = vld [vmem:[#allocation3_spill] sm:$0xff] }
 0x1df   : > { %v7229_v62 = vadd.f32 %v6508_v49, %v9246_v33  ;;  %v7260_v16 = vadd.f32 %v9246_v33, %v2764_v18  ;;  %v1539_v42 = vpop.f32.mrb[27].mxu0  ;;  %6890 = vmatmul.mubr.msk.f32.gmra.mrb[36].mxu0 %vm289_vm0, %v7969_v31  ;;  %7097 = vmatprep.mubr.msk.f32.mxu1 %vm289_vm0, %v10213_v13 }
 0x1e0   : > { %5415 = vst.msk [vmem:[%s9253_s11 + $0x1c8] sm:$0xff] %vm1600_vm3, %v7259_v12  ;;  %v7230_v44 = vadd.f32 %v9246_v33, %v1539_v42  ;;  %6892 = vmatprep.mubr.msk.f32.mxu0 %vm289_vm0, %v7978_v36  ;;  %v10224_v12 = vld [vmem:[#allocation12_spill] sm:$0xff] }
 0x1e1   : > { %1628 = vst.msk [vmem:[%s9253_s11 + $0xd8] sm:$0xff] %vm1600_vm3, %v7229_v62  ;;  %5414 = vst.msk [vmem:[%s9253_s11 + $0x1c0] sm:$0xff] %vm1600_vm3, %v7260_v16  ;;  %v6716_v28 = vpop.f32.mrb[26].mxu1 }
 0x1e2   : > { %1627 = vst.msk [vmem:[%s9253_s11 + $0xd0] sm:$0xff] %vm1600_vm3, %v7230_v44  ;;  %v7261_v31 = vadd.f32 %v6716_v28, %v9246_v33  ;;  %v6511_v56 = vpop.f32.mrb[28].mxu0  ;;  %v2774_v34 = vpop.f32.mrb[27].mxu1  ;;  %7098 = vmatmul.mubr.msk.f32.gmra.mrb[36].mxu1 %vm289_vm0, %v10214_v61 }
 0x1e3   : > { %v7231_v25 = vadd.f32 %v6511_v56, %v9246_v33  ;;  %v7262_v36 = vadd.f32 %v9246_v33, %v2774_v34  ;;  %v1549_v7 = vpop.f32.mrb[29].mxu0  ;;  %6893 = vmatmul.mubr.msk.f32.gmra.mrb[38].mxu0 %vm289_vm0, %v7997_v55  ;;  %7100 = vmatprep.mubr.msk.f32.mxu1 %vm289_vm0, %v10215_v8 }
 0x1e4   : > { %5417 = vst.msk [vmem:[%s9253_s11 + $0x1d8] sm:$0xff] %vm1600_vm3, %v7261_v31  ;;  %v7232_v58 = vadd.f32 %v9246_v33, %v1549_v7  ;;  %6895 = vmatprep.mubr.msk.f32.mxu0 %vm289_vm0, %v8007_v0 }
 0x1e5   : > { %1630 = vst.msk [vmem:[%s9253_s11 + $0xe8] sm:$0xff] %vm1600_vm3, %v7231_v25  ;;  %5416 = vst.msk [vmem:[%s9253_s11 + $0x1d0] sm:$0xff] %vm1600_vm3, %v7262_v36  ;;  %v6719_v14 = vpop.f32.mrb[28].mxu1 }
 0x1e6   : > { %1629 = vst.msk [vmem:[%s9253_s11 + $0xe0] sm:$0xff] %vm1600_vm3, %v7232_v58  ;;  %v7263_v55 = vadd.f32 %v6719_v14, %v9246_v33  ;;  %v6514_v51 = vpop.f32.mrb[30].mxu0  ;;  %v2784_v23 = vpop.f32.mrb[29].mxu1  ;;  %7101 = vmatmul.mubr.msk.f32.gmra.mrb[38].mxu1 %vm289_vm0, %v10216_v43 }
 0x1e7   : > { %v7233_v1 = vadd.f32 %v6514_v51, %v9246_v33  ;;  %v7264_v0 = vadd.f32 %v9246_v33, %v2784_v23  ;;  %v1559_v45 = vpop.f32.mrb[31].mxu0  ;;  %6896 = vmatmul.mubr.msk.f32.gmra.mrb[40].mxu0 %vm289_vm0, %v8025_v17  ;;  %7103 = vmatprep.mubr.msk.f32.mxu1 %vm289_vm0, %v10217_v35 }
 0x1e8   : > { %5419 = vst.msk [vmem:[%s9253_s11 + $0x1e8] sm:$0xff] %vm1600_vm3, %v7263_v55  ;;  %v7234_v60 = vadd.f32 %v9246_v33, %v1559_v45  ;;  %6898 = vmatprep.mubr.msk.f32.mxu0 %vm289_vm0, %v8034_v32  ;;  %v10220_v32 = vld [vmem:[#allocation7_spill] sm:$0xff] }
 0x1e9   : > { %1632 = vst.msk [vmem:[%s9253_s11 + $0xf8] sm:$0xff] %vm1600_vm3, %v7233_v1  ;;  %5418 = vst.msk [vmem:[%s9253_s11 + $0x1e0] sm:$0xff] %vm1600_vm3, %v7264_v0  ;;  %v6722_v10 = vpop.f32.mrb[30].mxu1 }
 0x1ea   : > { %1631 = vst.msk [vmem:[%s9253_s11 + $0xf0] sm:$0xff] %vm1600_vm3, %v7234_v60  ;;  %v7265_v17 = vadd.f32 %v6722_v10, %v9246_v33  ;;  %v2794_v5 = vpop.f32.mrb[31].mxu1  ;;  %7104 = vmatmul.mubr.msk.f32.gmra.mrb[40].mxu1 %vm289_vm0, %v10218_v6 }
 0x1eb   : > { %v7266_v63 = vadd.f32 %v9246_v33, %v2794_v5  ;;  %6899 = vmatmul.mubr.msk.f32.gmra.mrb[42].mxu0 %vm289_vm0, %v10067_v57  ;;  %7106 = vmatprep.mubr.msk.f32.mxu1 %vm289_vm0, %v10219_v30  ;;  %v10222_v57 = vld [vmem:[#allocation9_spill] sm:$0xff] }
 0x1ec   : > { %5421 = vst.msk [vmem:[%s9253_s11 + $0x1f8] sm:$0xff] %vm1600_vm3, %v7265_v17  ;;  %6901 = vmatprep.mubr.msk.f32.mxu0 %vm289_vm0, %v10071_v29  ;;  %v10223_v29 = vld [vmem:[#allocation4_spill] sm:$0xff] }
 0x1ed   : > { %5420 = vst.msk [vmem:[%s9253_s11 + $0x1f0] sm:$0xff] %vm1600_vm3, %v7266_v63 }
 0x1ee   : > { %7107 = vmatmul.mubr.msk.f32.gmra.mrb[42].mxu1 %vm289_vm0, %v10220_v32 }
 0x1ef   : > { %6902 = vmatmul.mubr.msk.f32.gmra.mrb[44].mxu0 %vm289_vm0, %v10075_v40  ;;  %7109 = vmatprep.mubr.msk.f32.mxu1 %vm289_vm0, %v10221_v48  ;;  %v10225_v40 = vld [vmem:[#allocation6_spill] sm:$0xff] }
 0x1f0   : > { %6904 = vmatprep.mubr.msk.f32.mxu0 %vm289_vm0, %v10079_v41  ;;  %v10226_v41 = vld [vmem:[#allocation13_spill] sm:$0xff] }
 0x1f2   : > { %7110 = vmatmul.mubr.msk.f32.gmra.mrb[44].mxu1 %vm289_vm0, %v10222_v57 }
 0x1f3   : > { %6905 = vmatmul.mubr.msk.f32.gmra.mrb[46].mxu0 %vm289_vm0, %v10121_v47  ;;  %7112 = vmatprep.mubr.msk.f32.mxu1 %vm289_vm0, %v10223_v29  ;;  %v10227_v47 = vld [vmem:[#allocation11_spill] sm:$0xff] }
 0x1f4   : > { %6907 = vmatprep.mubr.msk.f32.mxu0 %vm289_vm0, %v10123_v50  ;;  %v10228_v50 = vld [vmem:[#allocation22_spill] sm:$0xff] }
 0x1f6   : > { %7113 = vmatmul.mubr.msk.f32.gmra.mrb[46].mxu1 %vm289_vm0, %v10224_v12 }
 0x1f7   : > { %6908 = vmatmul.mubr.msk.f32.gmra.mrb[48].mxu0 %vm289_vm0, %v10091_v46  ;;  %7115 = vmatprep.mubr.msk.f32.mxu1 %vm289_vm0, %v10225_v40  ;;  %v10229_v46 = vld [vmem:[#allocation16_spill] sm:$0xff] }
 0x1f8   : > { %6910 = vmatprep.mubr.msk.f32.mxu0 %vm289_vm0, %v10095_v24  ;;  %v10230_v24 = vld [vmem:[#allocation23_spill] sm:$0xff] }
 0x1fa   : > { %7116 = vmatmul.mubr.msk.f32.gmra.mrb[48].mxu1 %vm289_vm0, %v10226_v41 }
 0x1fb   : > { %6911 = vmatmul.mubr.msk.f32.gmra.mrb[50].mxu0 %vm289_vm0, %v10099_v27  ;;  %7118 = vmatprep.mubr.msk.f32.mxu1 %vm289_vm0, %v10227_v47  ;;  %v10231_v27 = vld [vmem:[#allocation27_spill] sm:$0xff] }
 0x1fc   : > { %6913 = vmatprep.mubr.msk.f32.mxu0 %vm289_vm0, %v10103_v3  ;;  %v10232_v3 = vld [vmem:[#allocation21_spill] sm:$0xff] }
 0x1fe   : > { %7119 = vmatmul.mubr.msk.f32.gmra.mrb[50].mxu1 %vm289_vm0, %v10228_v50 }
 0x1ff   : > { %6914 = vmatmul.mubr.msk.f32.gmra.mrb[52].mxu0 %vm289_vm0, %v8193_v37  ;;  %7121 = vmatprep.mubr.msk.f32.mxu1 %vm289_vm0, %v10229_v46  ;;  %v10233_v37 = vld [vmem:[#allocation29_spill] sm:$0xff] }
 0x200   : > { %6916 = vmatprep.mubr.msk.f32.mxu0 %vm289_vm0, %v8202_v52  ;;  %v10234_v52 = vld [vmem:[#allocation26_spill] sm:$0xff] }
 0x202   : > { %7122 = vmatmul.mubr.msk.f32.gmra.mrb[52].mxu1 %vm289_vm0, %v10230_v24 }
 0x203   : > { %6917 = vmatmul.mubr.msk.f32.gmra.mrb[54].mxu0 %vm289_vm0, %v8219_v15  ;;  %7124 = vmatprep.mubr.msk.f32.mxu1 %vm289_vm0, %v10231_v27  ;;  %v10235_v15 = vld [vmem:[#allocation35_spill] sm:$0xff] }
 0x204   : > { %6919 = vmatprep.mubr.msk.f32.mxu0 %vm289_vm0, %v8227_v9 }
 0x206   : > { %7125 = vmatmul.mubr.msk.f32.gmra.mrb[54].mxu1 %vm289_vm0, %v10232_v3 }
 0x207   : > { %6920 = vmatmul.mubr.msk.f32.gmra.mrb[56].mxu0 %vm289_vm0, %v10113_v4  ;;  %7127 = vmatprep.mubr.msk.f32.mxu1 %vm289_vm0, %v10233_v37 }
 0x208   : > { %6922 = vmatprep.mubr.msk.f32.mxu0 %vm289_vm0, %v8245_v59 }
 0x20a   : > { %7128 = vmatmul.mubr.msk.f32.gmra.mrb[56].mxu1 %vm289_vm0, %v10234_v52 }
 0x20b   : > { %6923 = vmatmul.mubr.msk.f32.gmra.mrb[58].mxu0 %vm289_vm0, %v8264_v19  ;;  %7130 = vmatprep.mubr.msk.f32.mxu1 %vm289_vm0, %v10197_v20 }
 0x20c   : > { %6925 = vmatprep.mubr.msk.f32.mxu0 %vm289_vm0, %v8715_v39 }
 0x20e   : > { %7131 = vmatmul.mubr.msk.f32.gmra.mrb[58].mxu1 %vm289_vm0, %v10235_v15 }
 0x20f   : > { %6926 = vmatmul.mubr.msk.f32.gmra.mrb[60].mxu0 %vm289_vm0, %v8730_v38  ;;  %7133 = vmatprep.mubr.msk.f32.mxu1 %vm289_vm0, %v8873_v26 }
 0x210   : > { %6928 = vmatprep.mubr.msk.f32.mxu0 %vm289_vm0, %v9448_v11 }
 0x212   : > { %7134 = vmatmul.mubr.msk.f32.gmra.mrb[60].mxu1 %vm289_vm0, %v8888_v22 }
 0x213   : > { %6929 = vmatmul.mubr.msk.f32.gmra.mrb[62].mxu0 %vm289_vm0, %v9466_v53  ;;  %7136 = vmatprep.mubr.msk.f32.mxu1 %vm289_vm0, %v9197_v21 }
 0x216   : > { %7137 = vmatmul.mubr.msk.f32.gmra.mrb[62].mxu1 %vm289_vm0, %v9200_v54 }
 0x2aa   : > { %v6885_v39 = vpop.f32.mrb[32].mxu0 }
 0x2ab   : > { %v7267_v9 = vadd.f32 %v6885_v39, %v9246_v33  ;;  %v3741_v59 = vpop.f32.mrb[33].mxu0 }
 0x2ac   : > { %v7268_v19 = vadd.f32 %v9246_v33, %v3741_v59 }
 0x2ad   : > { %5560 = vst.msk [vmem:[%s9253_s11 + $0x208] sm:$0xff] %vm1600_vm3, %v7267_v9  ;;  %v7093_v4 = vpop.f32.mrb[32].mxu1 }
 0x2ae   : > { %5559 = vst.msk [vmem:[%s9253_s11 + $0x200] sm:$0xff] %vm1600_vm3, %v7268_v19  ;;  %v7299_v26 = vadd.f32 %v7093_v4, %v9246_v33  ;;  %v6888_v38 = vpop.f32.mrb[34].mxu0  ;;  %v4831_v22 = vpop.f32.mrb[33].mxu1 }
 0x2af   : > { %v7269_v54 = vadd.f32 %v6888_v38, %v9246_v33  ;;  %v7300_v20 = vadd.f32 %v9246_v33, %v4831_v22  ;;  %v3751_v21 = vpop.f32.mrb[35].mxu0 }
 0x2b0   : > { %5729 = vst.msk [vmem:[%s9253_s11 + $0x308] sm:$0xff] %vm1600_vm3, %v7299_v26  ;;  %v7270_v11 = vadd.f32 %v9246_v33, %v3751_v21 }
 0x2b1   : > { %5562 = vst.msk [vmem:[%s9253_s11 + $0x218] sm:$0xff] %vm1600_vm3, %v7269_v54  ;;  %5728 = vst.msk [vmem:[%s9253_s11 + $0x300] sm:$0xff] %vm1600_vm3, %v7300_v20  ;;  %v7096_v53 = vpop.f32.mrb[34].mxu1 }
 0x2b2   : > { %5561 = vst.msk [vmem:[%s9253_s11 + $0x210] sm:$0xff] %vm1600_vm3, %v7270_v11  ;;  %v7301_v49 = vadd.f32 %v7096_v53, %v9246_v33  ;;  %v6891_v18 = vpop.f32.mrb[36].mxu0  ;;  %v4841_v2 = vpop.f32.mrb[35].mxu1 }
 0x2b3   : > { %v7271_v62 = vadd.f32 %v6891_v18, %v9246_v33  ;;  %v7302_v16 = vadd.f32 %v9246_v33, %v4841_v2  ;;  %v3761_v42 = vpop.f32.mrb[37].mxu0 }
 0x2b4   : > { %5731 = vst.msk [vmem:[%s9253_s11 + $0x318] sm:$0xff] %vm1600_vm3, %v7301_v49  ;;  %v7272_v13 = vadd.f32 %v9246_v33, %v3761_v42 }
 0x2b5   : > { %5564 = vst.msk [vmem:[%s9253_s11 + $0x228] sm:$0xff] %vm1600_vm3, %v7271_v62  ;;  %5730 = vst.msk [vmem:[%s9253_s11 + $0x310] sm:$0xff] %vm1600_vm3, %v7302_v16  ;;  %v7099_v44 = vpop.f32.mrb[36].mxu1 }
 0x2b6   : > { %5563 = vst.msk [vmem:[%s9253_s11 + $0x220] sm:$0xff] %vm1600_vm3, %v7272_v13  ;;  %v7303_v28 = vadd.f32 %v7099_v44, %v9246_v33  ;;  %v6894_v31 = vpop.f32.mrb[38].mxu0  ;;  %v4851_v56 = vpop.f32.mrb[37].mxu1 }
 0x2b7   : > { %v7273_v34 = vadd.f32 %v6894_v31, %v9246_v33  ;;  %v7304_v61 = vadd.f32 %v9246_v33, %v4851_v56  ;;  %v3771_v25 = vpop.f32.mrb[39].mxu0 }
 0x2b8   : > { %5733 = vst.msk [vmem:[%s9253_s11 + $0x328] sm:$0xff] %vm1600_vm3, %v7303_v28  ;;  %v7274_v36 = vadd.f32 %v9246_v33, %v3771_v25 }
 0x2b9   : > { %5566 = vst.msk [vmem:[%s9253_s11 + $0x238] sm:$0xff] %vm1600_vm3, %v7273_v34  ;;  %5732 = vst.msk [vmem:[%s9253_s11 + $0x320] sm:$0xff] %vm1600_vm3, %v7304_v61  ;;  %v7102_v7 = vpop.f32.mrb[38].mxu1 }
 0x2ba   : > { %5565 = vst.msk [vmem:[%s9253_s11 + $0x230] sm:$0xff] %vm1600_vm3, %v7274_v36  ;;  %v7305_v8 = vadd.f32 %v7102_v7, %v9246_v33  ;;  %v6897_v58 = vpop.f32.mrb[40].mxu0  ;;  %v4861_v14 = vpop.f32.mrb[39].mxu1 }
 0x2bb   : > { %v7275_v55 = vadd.f32 %v6897_v58, %v9246_v33  ;;  %v7306_v51 = vadd.f32 %v9246_v33, %v4861_v14  ;;  %v3781_v23 = vpop.f32.mrb[41].mxu0 }
 0x2bc   : > { %5735 = vst.msk [vmem:[%s9253_s11 + $0x338] sm:$0xff] %vm1600_vm3, %v7305_v8  ;;  %v7276_v43 = vadd.f32 %v9246_v33, %v3781_v23 }
 0x2bd   : > { %5568 = vst.msk [vmem:[%s9253_s11 + $0x248] sm:$0xff] %vm1600_vm3, %v7275_v55  ;;  %5734 = vst.msk [vmem:[%s9253_s11 + $0x330] sm:$0xff] %vm1600_vm3, %v7306_v51  ;;  %v7105_v1 = vpop.f32.mrb[40].mxu1 }
 0x2be   : > { %5567 = vst.msk [vmem:[%s9253_s11 + $0x240] sm:$0xff] %vm1600_vm3, %v7276_v43  ;;  %v7307_v0 = vadd.f32 %v7105_v1, %v9246_v33  ;;  %v6900_v45 = vpop.f32.mrb[42].mxu0  ;;  %v4871_v35 = vpop.f32.mrb[41].mxu1 }
 0x2bf   : > { %v7277_v60 = vadd.f32 %v6900_v45, %v9246_v33  ;;  %v7308_v10 = vadd.f32 %v9246_v33, %v4871_v35  ;;  %v3791_v17 = vpop.f32.mrb[43].mxu0 }
 0x2c0   : > { %5737 = vst.msk [vmem:[%s9253_s11 + $0x348] sm:$0xff] %vm1600_vm3, %v7307_v0  ;;  %v7278_v5 = vadd.f32 %v9246_v33, %v3791_v17 }
 0x2c1   : > { %5570 = vst.msk [vmem:[%s9253_s11 + $0x258] sm:$0xff] %vm1600_vm3, %v7277_v60  ;;  %5736 = vst.msk [vmem:[%s9253_s11 + $0x340] sm:$0xff] %vm1600_vm3, %v7308_v10  ;;  %v7108_v6 = vpop.f32.mrb[42].mxu1 }
 0x2c2   : > { %5569 = vst.msk [vmem:[%s9253_s11 + $0x250] sm:$0xff] %vm1600_vm3, %v7278_v5  ;;  %v7309_v63 = vadd.f32 %v7108_v6, %v9246_v33  ;;  %v6903_v30 = vpop.f32.mrb[44].mxu0  ;;  %v4881_v32 = vpop.f32.mrb[43].mxu1 }
 0x2c3   : > { %v7279_v48 = vadd.f32 %v6903_v30, %v9246_v33  ;;  %v7310_v57 = vadd.f32 %v9246_v33, %v4881_v32  ;;  %v3801_v29 = vpop.f32.mrb[45].mxu0 }
 0x2c4   : > { %5739 = vst.msk [vmem:[%s9253_s11 + $0x358] sm:$0xff] %vm1600_vm3, %v7309_v63  ;;  %v7280_v12 = vadd.f32 %v9246_v33, %v3801_v29 }
 0x2c5   : > { %5572 = vst.msk [vmem:[%s9253_s11 + $0x268] sm:$0xff] %vm1600_vm3, %v7279_v48  ;;  %5738 = vst.msk [vmem:[%s9253_s11 + $0x350] sm:$0xff] %vm1600_vm3, %v7310_v57  ;;  %v7111_v40 = vpop.f32.mrb[44].mxu1 }
 0x2c6   : > { %5571 = vst.msk [vmem:[%s9253_s11 + $0x260] sm:$0xff] %vm1600_vm3, %v7280_v12  ;;  %v7311_v41 = vadd.f32 %v7111_v40, %v9246_v33  ;;  %v6906_v47 = vpop.f32.mrb[46].mxu0  ;;  %v4891_v50 = vpop.f32.mrb[45].mxu1 }
 0x2c7   : > { %v7281_v46 = vadd.f32 %v6906_v47, %v9246_v33  ;;  %v7312_v24 = vadd.f32 %v9246_v33, %v4891_v50  ;;  %v3811_v27 = vpop.f32.mrb[47].mxu0 }
 0x2c8   : > { %5741 = vst.msk [vmem:[%s9253_s11 + $0x368] sm:$0xff] %vm1600_vm3, %v7311_v41  ;;  %v7282_v3 = vadd.f32 %v9246_v33, %v3811_v27 }
 0x2c9   : > { %5574 = vst.msk [vmem:[%s9253_s11 + $0x278] sm:$0xff] %vm1600_vm3, %v7281_v46  ;;  %5740 = vst.msk [vmem:[%s9253_s11 + $0x360] sm:$0xff] %vm1600_vm3, %v7312_v24  ;;  %v7114_v37 = vpop.f32.mrb[46].mxu1 }
 0x2ca   : > { %5573 = vst.msk [vmem:[%s9253_s11 + $0x270] sm:$0xff] %vm1600_vm3, %v7282_v3  ;;  %v7313_v52 = vadd.f32 %v7114_v37, %v9246_v33  ;;  %v6909_v15 = vpop.f32.mrb[48].mxu0  ;;  %v4901_v39 = vpop.f32.mrb[47].mxu1 }
 0x2cb   : > { %v7283_v9 = vadd.f32 %v6909_v15, %v9246_v33  ;;  %v7314_v59 = vadd.f32 %v9246_v33, %v4901_v39  ;;  %v3821_v19 = vpop.f32.mrb[49].mxu0 }
 0x2cc   : > { %5743 = vst.msk [vmem:[%s9253_s11 + $0x378] sm:$0xff] %vm1600_vm3, %v7313_v52  ;;  %v7284_v4 = vadd.f32 %v9246_v33, %v3821_v19 }
 0x2cd   : > { %5576 = vst.msk [vmem:[%s9253_s11 + $0x288] sm:$0xff] %vm1600_vm3, %v7283_v9  ;;  %5742 = vst.msk [vmem:[%s9253_s11 + $0x370] sm:$0xff] %vm1600_vm3, %v7314_v59  ;;  %v7117_v26 = vpop.f32.mrb[48].mxu1 }
 0x2ce   : > { %5575 = vst.msk [vmem:[%s9253_s11 + $0x280] sm:$0xff] %vm1600_vm3, %v7284_v4  ;;  %v7315_v38 = vadd.f32 %v7117_v26, %v9246_v33  ;;  %v6912_v22 = vpop.f32.mrb[50].mxu0  ;;  %v4911_v54 = vpop.f32.mrb[49].mxu1 }
 0x2cf   : > { %v7285_v20 = vadd.f32 %v6912_v22, %v9246_v33  ;;  %v7316_v21 = vadd.f32 %v9246_v33, %v4911_v54  ;;  %v3831_v11 = vpop.f32.mrb[51].mxu0 }
 0x2d0   : > { %5745 = vst.msk [vmem:[%s9253_s11 + $0x388] sm:$0xff] %vm1600_vm3, %v7315_v38  ;;  %v7286_v53 = vadd.f32 %v9246_v33, %v3831_v11 }
 0x2d1   : > { %5578 = vst.msk [vmem:[%s9253_s11 + $0x298] sm:$0xff] %vm1600_vm3, %v7285_v20  ;;  %5744 = vst.msk [vmem:[%s9253_s11 + $0x380] sm:$0xff] %vm1600_vm3, %v7316_v21  ;;  %v7120_v49 = vpop.f32.mrb[50].mxu1 }
 0x2d2   : > { %5577 = vst.msk [vmem:[%s9253_s11 + $0x290] sm:$0xff] %vm1600_vm3, %v7286_v53  ;;  %v7317_v18 = vadd.f32 %v7120_v49, %v9246_v33  ;;  %v6915_v2 = vpop.f32.mrb[52].mxu0  ;;  %v4921_v62 = vpop.f32.mrb[51].mxu1 }
 0x2d3   : > { %v7287_v16 = vadd.f32 %v6915_v2, %v9246_v33  ;;  %v7318_v42 = vadd.f32 %v9246_v33, %v4921_v62  ;;  %v3841_v13 = vpop.f32.mrb[53].mxu0 }
 0x2d4   : > { %5747 = vst.msk [vmem:[%s9253_s11 + $0x398] sm:$0xff] %vm1600_vm3, %v7317_v18  ;;  %v7288_v44 = vadd.f32 %v9246_v33, %v3841_v13 }
 0x2d5   : > { %5580 = vst.msk [vmem:[%s9253_s11 + $0x2a8] sm:$0xff] %vm1600_vm3, %v7287_v16  ;;  %5746 = vst.msk [vmem:[%s9253_s11 + $0x390] sm:$0xff] %vm1600_vm3, %v7318_v42  ;;  %v7123_v28 = vpop.f32.mrb[52].mxu1 }
 0x2d6   : > { %5579 = vst.msk [vmem:[%s9253_s11 + $0x2a0] sm:$0xff] %vm1600_vm3, %v7288_v44  ;;  %v7319_v31 = vadd.f32 %v7123_v28, %v9246_v33  ;;  %v6918_v56 = vpop.f32.mrb[54].mxu0  ;;  %v4931_v34 = vpop.f32.mrb[53].mxu1 }
 0x2d7   : > { %v7289_v61 = vadd.f32 %v6918_v56, %v9246_v33  ;;  %v7320_v25 = vadd.f32 %v9246_v33, %v4931_v34  ;;  %v3851_v36 = vpop.f32.mrb[55].mxu0 }
 0x2d8   : > { %5749 = vst.msk [vmem:[%s9253_s11 + $0x3a8] sm:$0xff] %vm1600_vm3, %v7319_v31  ;;  %v7290_v7 = vadd.f32 %v9246_v33, %v3851_v36 }
 0x2d9   : > { %5582 = vst.msk [vmem:[%s9253_s11 + $0x2b8] sm:$0xff] %vm1600_vm3, %v7289_v61  ;;  %5748 = vst.msk [vmem:[%s9253_s11 + $0x3a0] sm:$0xff] %vm1600_vm3, %v7320_v25  ;;  %v7126_v8 = vpop.f32.mrb[54].mxu1 }
 0x2da   : > { %5581 = vst.msk [vmem:[%s9253_s11 + $0x2b0] sm:$0xff] %vm1600_vm3, %v7290_v7  ;;  %v7321_v58 = vadd.f32 %v7126_v8, %v9246_v33  ;;  %v6921_v14 = vpop.f32.mrb[56].mxu0  ;;  %v4941_v55 = vpop.f32.mrb[55].mxu1 }
 0x2db   : > { %v7291_v51 = vadd.f32 %v6921_v14, %v9246_v33  ;;  %v7322_v23 = vadd.f32 %v9246_v33, %v4941_v55  ;;  %v3861_v43 = vpop.f32.mrb[57].mxu0 }
 0x2dc   : > { %5751 = vst.msk [vmem:[%s9253_s11 + $0x3b8] sm:$0xff] %vm1600_vm3, %v7321_v58  ;;  %v7292_v1 = vadd.f32 %v9246_v33, %v3861_v43 }
 0x2dd   : > { %5584 = vst.msk [vmem:[%s9253_s11 + $0x2c8] sm:$0xff] %vm1600_vm3, %v7291_v51  ;;  %5750 = vst.msk [vmem:[%s9253_s11 + $0x3b0] sm:$0xff] %vm1600_vm3, %v7322_v23  ;;  %v7129_v0 = vpop.f32.mrb[56].mxu1 }
 0x2de   : > { %5583 = vst.msk [vmem:[%s9253_s11 + $0x2c0] sm:$0xff] %vm1600_vm3, %v7292_v1  ;;  %v7323_v45 = vadd.f32 %v7129_v0, %v9246_v33  ;;  %v6924_v35 = vpop.f32.mrb[58].mxu0  ;;  %v4951_v60 = vpop.f32.mrb[57].mxu1 }
 0x2df   : > { %v7293_v10 = vadd.f32 %v6924_v35, %v9246_v33  ;;  %v7324_v17 = vadd.f32 %v9246_v33, %v4951_v60  ;;  %v3871_v5 = vpop.f32.mrb[59].mxu0 }
 0x2e0   : > { %5753 = vst.msk [vmem:[%s9253_s11 + $0x3c8] sm:$0xff] %vm1600_vm3, %v7323_v45  ;;  %v7294_v6 = vadd.f32 %v9246_v33, %v3871_v5 }
 0x2e1   : > { %5586 = vst.msk [vmem:[%s9253_s11 + $0x2d8] sm:$0xff] %vm1600_vm3, %v7293_v10  ;;  %5752 = vst.msk [vmem:[%s9253_s11 + $0x3c0] sm:$0xff] %vm1600_vm3, %v7324_v17  ;;  %v7132_v63 = vpop.f32.mrb[58].mxu1 }
 0x2e2   : > { %5585 = vst.msk [vmem:[%s9253_s11 + $0x2d0] sm:$0xff] %vm1600_vm3, %v7294_v6  ;;  %v7325_v30 = vadd.f32 %v7132_v63, %v9246_v33  ;;  %v6927_v32 = vpop.f32.mrb[60].mxu0  ;;  %v4961_v48 = vpop.f32.mrb[59].mxu1 }
 0x2e3   : > { %v7295_v57 = vadd.f32 %v6927_v32, %v9246_v33  ;;  %v7326_v29 = vadd.f32 %v9246_v33, %v4961_v48  ;;  %v3881_v12 = vpop.f32.mrb[61].mxu0 }
 0x2e4   : > { %5755 = vst.msk [vmem:[%s9253_s11 + $0x3d8] sm:$0xff] %vm1600_vm3, %v7325_v30  ;;  %v7296_v40 = vadd.f32 %v9246_v33, %v3881_v12 }
 0x2e5   : > { %5588 = vst.msk [vmem:[%s9253_s11 + $0x2e8] sm:$0xff] %vm1600_vm3, %v7295_v57  ;;  %5754 = vst.msk [vmem:[%s9253_s11 + $0x3d0] sm:$0xff] %vm1600_vm3, %v7326_v29  ;;  %v7135_v41 = vpop.f32.mrb[60].mxu1 }
 0x2e6   : > { %5587 = vst.msk [vmem:[%s9253_s11 + $0x2e0] sm:$0xff] %vm1600_vm3, %v7296_v40  ;;  %v7327_v47 = vadd.f32 %v7135_v41, %v9246_v33  ;;  %v6930_v50 = vpop.f32.mrb[62].mxu0  ;;  %v4971_v46 = vpop.f32.mrb[61].mxu1 }
 0x2e7   : > { %v7297_v24 = vadd.f32 %v6930_v50, %v9246_v33  ;;  %v7328_v27 = vadd.f32 %v9246_v33, %v4971_v46  ;;  %v3891_v3 = vpop.f32.mrb[63].mxu0 }
 0x2e8   : > { %5757 = vst.msk [vmem:[%s9253_s11 + $0x3e8] sm:$0xff] %vm1600_vm3, %v7327_v47  ;;  %v7298_v37 = vadd.f32 %v9246_v33, %v3891_v3 }
 0x2e9   : > { %5590 = vst.msk [vmem:[%s9253_s11 + $0x2f8] sm:$0xff] %vm1600_vm3, %v7297_v24  ;;  %5756 = vst.msk [vmem:[%s9253_s11 + $0x3e0] sm:$0xff] %vm1600_vm3, %v7328_v27  ;;  %v7138_v52 = vpop.f32.mrb[62].mxu1 }
 0x2ea   : > { %5589 = vst.msk [vmem:[%s9253_s11 + $0x2f0] sm:$0xff] %vm1600_vm3, %v7298_v37  ;;  %v7329_v15 = vadd.f32 %v7138_v52, %v9246_v33  ;;  %v4981_v39 = vpop.f32.mrb[63].mxu1 }
 0x2eb   : > { %v7330_v9 = vadd.f32 %v9246_v33, %v4981_v39 }
 0x2ec   : > { %5759 = vst.msk [vmem:[%s9253_s11 + $0x3f8] sm:$0xff] %vm1600_vm3, %v7329_v15 }
 0x2ed   : > { %5758 = vst.msk [vmem:[%s9253_s11 + $0x3f0] sm:$0xff] %vm1600_vm3, %v7330_v9 }
 0x2ee PF: > { %s13_s12 = sadd.s32 1, %s7730_s12  }
 0x2ef   : > { %p10_p4 = scmp.ge.s32.totalorder %s13_s12, 4  }
 0x2f1   :  { %12 = sbr.rel (!%p10_p4) target bundleno = 1 (0x1), region = 80 }

</bundles_post_ra>
